<compile_context>
chip_gen: v7x
topology: tpu7x:2x2x1
jax: 0.10.0
libtpu: 0.0.40
codegen_flags: <defaults>
</compile_context>

<pallas_src>
import math

import jax
import jax.numpy as jnp
from jax import lax
from jax.experimental import pallas as pl
from jax.experimental.pallas import tpu as pltpu  # noqa: F401  (kept for TPU backend)

# ----- model hyper-parameters (small, consistent with the module) -----------
D_MODEL = 32
D_STATE = 16
D_CONV = 4
EXPAND = 2
D_INNER = EXPAND * D_MODEL                 # 64
DT_RANK = math.ceil(D_MODEL / 16)          # 2  (mamba "auto" dt_rank)
N_VOCAB = 16
N_LAYERS = 2
B = 2
L = 8
BL = B * L                                 # 16
EMB_ROWS = 32                              # embedding table padded (rows >= 17 are zero)


# ======================= fused Pallas kernel ================================
def _model_kernel(tok_ref, embed_ref, in_w_ref, conv_w_ref, conv_b_ref,
                  xproj_ref, dt_b_ref, a_ref, d_ref, out_w_ref,
                  ln_g_ref, ln_b_ref, head_w_ref, head_b_ref, o_ref):
    """Full forward: embedding -> N_LAYERS x (Mamba + residual + LayerNorm) -> head."""
    f32 = jnp.float32

    # ---- embedding: one-hot matmul (padding row of the table is zero) -------
    tok = tok_ref[...]                                                # (BL, 1) int32
    vocab = lax.broadcasted_iota(jnp.int32, (BL, EMB_ROWS), 1)
    onehot = (tok == vocab).astype(f32)                               # (BL, EMB_ROWS)
    x = jnp.dot(onehot, embed_ref[...], preferred_element_type=f32)   # (BL, D_MODEL)

    for l in range(N_LAYERS):                                         # static unroll (2)
        # ---- in_proj (no bias) ----------------------------------------------
        xz = jnp.dot(x, in_w_ref[l], preferred_element_type=f32)      # (BL, 2*D_INNER)
        xc = xz[:, :D_INNER]                                          # conv / SSM branch
        zg = xz[:, D_INNER:]                                          # gate branch

        # ---- causal depthwise conv1d (per batch) + bias, then SiLU ----------
        conv_w = conv_w_ref[l]                                        # (D_CONV, D_INNER)
        xc3 = xc.reshape(B, L, D_INNER)
        xpad = jnp.concatenate(
            [jnp.zeros((B, D_CONV - 1, D_INNER), f32), xc3], axis=1)  # (B, L+3, D_INNER)
        acc = jnp.broadcast_to(conv_b_ref[l], (B, L, D_INNER))
        for k in range(D_CONV):                                       # static unroll
            acc = acc + xpad[:, k:k + L, :] * conv_w[k][None, None, :]
        u = (acc * jax.nn.sigmoid(acc)).reshape(BL, D_INNER)          # SiLU, (BL, D_INNER)

        # ---- fused x_proj (+ folded dt_proj) -> [dt | B | C] -----------------
        x_dbl = jnp.dot(u, xproj_ref[l], preferred_element_type=f32)  # (BL, D_INNER+2*D_STATE)
        dt = x_dbl[:, :D_INNER] + dt_b_ref[l]
        # numerically stable softplus
        delta = jnp.maximum(dt, 0.0) + jnp.log1p(jnp.exp(-jnp.abs(dt)))
        Bm = x_dbl[:, D_INNER:D_INNER + D_STATE]                      # (BL, D_STATE)
        Cm = x_dbl[:, D_INNER + D_STATE:]                             # (BL, D_STATE)

        # ---- lane-dense scan layout: lane index j = b*D_INNER + d (width 128)
        du = delta * u
        deltaT = jnp.concatenate(
            [delta[b * L:(b + 1) * L, :] for b in range(B)], axis=1)  # (L, 128)
        duT = jnp.concatenate(
            [du[b * L:(b + 1) * L, :] for b in range(B)], axis=1)     # (L, 128)
        Bm_lane = jnp.concatenate(
            [jnp.broadcast_to(Bm[b * L:(b + 1) * L, :, None], (L, D_STATE, D_INNER))
             for b in range(B)], axis=2)                              # (L, D_STATE, 128)
        Cm_lane = jnp.concatenate(
            [jnp.broadcast_to(Cm[b * L:(b + 1) * L, :, None], (L, D_STATE, D_INNER))
             for b in range(B)], axis=2)                              # (L, D_STATE, 128)

        # a_ref[l] is A^T tiled over batch: (D_STATE, B*D_INNER), A[d,s] at lane b*64+d
        dA = jnp.exp(deltaT[:, None, :] * a_ref[l][None, :, :])       # (L, D_STATE, 128)
        dBu = duT[:, None, :] * Bm_lane                               # (L, D_STATE, 128)

        # ---- selective scan, fully unrolled, h carried as a value ------------
        h = jnp.zeros((D_STATE, B * D_INNER), f32)
        hs = []
        for t in range(L):                                            # static unroll (8)
            h = dA[t] * h + dBu[t]
            hs.append(h)
        h_all = jnp.stack(hs, axis=0)                                 # (L, D_STATE, 128)
        yT = jnp.sum(h_all * Cm_lane, axis=1)                         # (L, 128)

        # back to (BL, D_INNER) row layout
        y = jnp.concatenate(
            [yT[:, b * D_INNER:(b + 1) * D_INNER] for b in range(B)], axis=0)
        y = y + d_ref[l] * u                                          # + D * u skip
        y = y * (zg * jax.nn.sigmoid(zg))                             # gate with SiLU(z)

        # ---- out_proj + residual + post-LayerNorm (dropout = identity) -------
        m_out = jnp.dot(y, out_w_ref[l], preferred_element_type=f32)  # (BL, D_MODEL)
        res = x + m_out
        mean = jnp.mean(res, axis=-1, keepdims=True)
        cen = res - mean
        var = jnp.mean(cen * cen, axis=-1, keepdims=True)
        x = cen * lax.rsqrt(var + 1e-5) * ln_g_ref[l] + ln_b_ref[l]

    # ---- classifier head ------------------------------------------------------
    logits = (jnp.dot(x, head_w_ref[...], preferred_element_type=f32)
              + head_b_ref[...])                                      # (BL, N_VOCAB)
    o_ref[...] = logits.reshape(B, L, N_VOCAB)
    # TODO(synk): final store stays (B, L, 16) (masked lanes); lane-dense slab not
    # worth the in-kernel relayout for 256 floats.


# ======================= wrapper =============================================
def model_forward(tokens, packed):
    tok2d = tokens.reshape(BL, 1).astype(jnp.int32)
    return pl.pallas_call(
        _model_kernel,
        out_shape=jax.ShapeDtypeStruct((B, L, N_VOCAB), jnp.float32),
    )(tok2d, packed["embed"], packed["in_w"], packed["conv_w"], packed["conv_b"],
      packed["xproj2"], packed["dt_b"], packed["A_lane"], packed["D"],
      packed["out_w"], packed["ln_g"], packed["ln_b"],
      packed["head_w"], packed["head_b"])


def pack_params(params):
    """Host-side prep: stack per-layer weights, fold dt_proj into x_proj,
    tile A over batch for the lane-dense scan, pad the embedding table."""
    layers = params["layers"]

    def stack(fn):
        return jnp.stack([fn(p) for p in layers], axis=0)

    embed = params["embed"]                                           # (N_VOCAB+1, D_MODEL)
    embed_pad = jnp.zeros((EMB_ROWS, D_MODEL), jnp.float32).at[:N_VOCAB + 1].set(embed)

    return dict(
        embed=embed_pad,
        in_w=stack(lambda p: p["in_w"]),
        conv_w=stack(lambda p: p["conv_w"]),
        conv_b=stack(lambda p: p["conv_b"]),
        # fold dt_proj (low-rank) into x_proj: columns = [dt(pre-bias) | B | C]
        xproj2=stack(lambda p: jnp.concatenate(
            [p["xproj_w"][:, :DT_RANK] @ p["dt_w"], p["xproj_w"][:, DT_RANK:]], axis=1)),
        dt_b=stack(lambda p: p["dt_b"]),
        # A^T tiled over batch: (D_STATE, B*D_INNER), entry [s, b*D_INNER+d] = A[d, s]
        A_lane=stack(lambda p: jnp.tile(p["A"].T, (1, B))),
        D=stack(lambda p: p["D"]),
        out_w=stack(lambda p: p["out_w"]),
        ln_g=stack(lambda p: p["ln_g"]),
        ln_b=stack(lambda p: p["ln_b"]),
        head_w=params["head_w"],
        head_b=params["head_b"],
    )


# ======================= pure-JAX reference (for checking) ==================
def _mamba_block_ref(x, p):
    xz = jnp.einsum("bld,de->ble", x, p["in_w"])
    xc, zg = xz[..., :D_INNER], xz[..., D_INNER:]
    xpad = jnp.pad(xc, ((0, 0), (D_CONV - 1, 0), (0, 0)))
    acc = jnp.broadcast_to(p["conv_b"], (x.shape[0], L, D_INNER))
    for k in range(D_CONV):
        acc = acc + xpad[:, k:k + L, :] * p["conv_w"][k][None, None, :]
    u = acc * jax.nn.sigmoid(acc)
    x_dbl = jnp.einsum("ble,ef->blf", u, p["xproj_w"])
    dt_in = x_dbl[..., :DT_RANK]
    Bm = x_dbl[..., DT_RANK:DT_RANK + D_STATE]
    Cm = x_dbl[..., DT_RANK + D_STATE:]
    dt = jnp.einsum("blr,re->ble", dt_in, p["dt_w"]) + p["dt_b"][0]
    delta = jnp.log1p(jnp.exp(dt))
    dA = jnp.exp(delta[..., None] * p["A"][None, None])
    dBu = (delta * u)[..., None] * Bm[:, :, None, :]
    h = jnp.zeros((x.shape[0], D_INNER, D_STATE), jnp.float32)
    ys = []
    for t in range(L):
        h = dA[:, t] * h + dBu[:, t]
        ys.append(jnp.sum(h * Cm[:, t, None, :], axis=-1))
    y = jnp.stack(ys, axis=1)
    y = y + p["D"][0] * u
    y = y * (zg * jax.nn.sigmoid(zg))
    return jnp.einsum("ble,ed->bld", y, p["out_w"])


def _layernorm_ref(x, g, b):
    mean = jnp.mean(x, axis=-1, keepdims=True)
    var = jnp.mean((x - mean) ** 2, axis=-1, keepdims=True)
    return (x - mean) * lax.rsqrt(var + 1e-5) * g[0] + b[0]


def model_ref(tokens, params):
    x = jnp.take(params["embed"], tokens.astype(jnp.int32), axis=0)
    for p in params["layers"]:
        x = _layernorm_ref(x + _mamba_block_ref(x, p), p["ln_g"], p["ln_b"])
    return jnp.einsum("bld,dv->blv", x, params["head_w"]) + params["head_b"][0]


# ======================= deterministic parameter init =======================
def init_params(key):
    ks = jax.random.split(key, 4 + N_LAYERS)
    embed = 0.5 * jax.random.normal(ks[0], (N_VOCAB + 1, D_MODEL), jnp.float32)
    embed = embed.at[N_VOCAB].set(0.0)          # padding_idx row == 0
    head_w = jax.random.normal(ks[1], (D_MODEL, N_VOCAB), jnp.float32) / jnp.sqrt(D_MODEL)
    head_b = 0.01 * jax.random.normal(ks[2], (1, N_VOCAB), jnp.float32)
    layers = []
    for i in range(N_LAYERS):
        lk = jax.random.split(ks[4 + i], 8)
        a_log = jnp.log(jnp.arange(1, D_STATE + 1, dtype=jnp.float32))
        A = -jnp.exp(jnp.broadcast_to(a_log, (D_INNER, D_STATE)))   # S4D-real init
        layers.append(dict(
            in_w=jax.random.normal(lk[0], (D_MODEL, 2 * D_INNER), jnp.float32) / jnp.sqrt(D_MODEL),
            conv_w=0.3 * jax.random.normal(lk[1], (D_CONV, D_INNER), jnp.float32),
            conv_b=0.1 * jax.random.normal(lk[2], (1, D_INNER), jnp.float32),
            xproj_w=jax.random.normal(lk[3], (D_INNER, DT_RANK + 2 * D_STATE), jnp.float32) / jnp.sqrt(D_INNER),
            dt_w=jax.random.normal(lk[4], (DT_RANK, D_INNER), jnp.float32) / jnp.sqrt(DT_RANK),
            dt_b=0.1 * jax.random.normal(lk[5], (1, D_INNER), jnp.float32) - 2.0,
            A=A,
            D=jnp.ones((1, D_INNER), jnp.float32),
            out_w=jax.random.normal(lk[6], (D_INNER, D_MODEL), jnp.float32) / jnp.sqrt(D_INNER),
            ln_g=jnp.ones((1, D_MODEL), jnp.float32),
            ln_b=jnp.zeros((1, D_MODEL), jnp.float32),
        ))
    return dict(embed=embed, head_w=head_w, head_b=head_b, layers=layers)


# ======================= main ================================================
if __name__ == "__main__":
    key = jax.random.PRNGKey(0)
    pkey, tkey = jax.random.split(key)
    params = init_params(pkey)
    packed = pack_params(params)
    tokens = jax.random.randint(tkey, (B, L), 0, N_VOCAB)

    out = jax.block_until_ready(jax.jit(model_forward)(tokens, packed))
    ref = jax.block_until_ready(model_ref(tokens, params))

    assert out.shape == (B, L, N_VOCAB) and out.dtype == jnp.float32
    max_diff = float(jnp.max(jnp.abs(out - ref)))
    assert max_diff < 5e-2, f"mismatch vs pure-JAX reference: {max_diff}"
    print("KERNEL_OK")
</pallas_src>

<mosaic_0001>
module attributes {stable_mosaic.version = 11 : i64} {
  func.func @_model_kernel(%arg0: memref<16x1xi32, #tpu.memory_space<vmem>>, %arg1: memref<32x32xf32, #tpu.memory_space<vmem>>, %arg2: memref<2x32x128xf32, #tpu.memory_space<vmem>>, %arg3: memref<2x4x64xf32, #tpu.memory_space<vmem>>, %arg4: memref<2x1x64xf32, #tpu.memory_space<vmem>>, %arg5: memref<2x64x96xf32, #tpu.memory_space<vmem>>, %arg6: memref<2x1x64xf32, #tpu.memory_space<vmem>>, %arg7: memref<2x16x128xf32, #tpu.memory_space<vmem>>, %arg8: memref<2x1x64xf32, #tpu.memory_space<vmem>>, %arg9: memref<2x64x32xf32, #tpu.memory_space<vmem>>, %arg10: memref<2x1x32xf32, #tpu.memory_space<vmem>>, %arg11: memref<2x1x32xf32, #tpu.memory_space<vmem>>, %arg12: memref<32x16xf32, #tpu.memory_space<vmem>>, %arg13: memref<1x16xf32, #tpu.memory_space<vmem>>, %arg14: memref<2x8x16xf32, #tpu.memory_space<vmem>>) attributes {dimension_semantics = [], scalar_prefetch = 0 : i64, scratch_operands = 0 : i64, tpu.core_type = #tpu.core_type<tc>} {
    %c0 = arith.constant 0 : index
    %c0_0 = arith.constant 0 : index
    %0 = vector.load %arg0[%c0, %c0_0] : memref<16x1xi32, #tpu.memory_space<vmem>>, vector<16x1xi32>
    %1 = tpu.iota {dimensions = array<i32: 1>} : vector<16x32xi32>
    %2 = vector.broadcast %0 : vector<16x1xi32> to vector<16x32xi32>
    %3 = arith.cmpi eq, %2, %1 : vector<16x32xi32>
    %4 = arith.extui %3 : vector<16x32xi1> to vector<16x32xi32>
    %5 = arith.sitofp %4 : vector<16x32xi32> to vector<16x32xf32>
    %c0_1 = arith.constant 0 : index
    %c0_2 = arith.constant 0 : index
    %6 = vector.load %arg1[%c0_1, %c0_2] : memref<32x32xf32, #tpu.memory_space<vmem>>, vector<32x32xf32>
    %cst = arith.constant dense<0.000000e+00> : vector<16x32xf32>
    %7 = tpu.matmul %5, %6, %cst {dimension_numbers = #tpu.dot_dimension_numbers<[1], [0], [0], [1], [0, 0, 1, 1], [], []>} : vector<16x32xf32>, vector<32x32xf32>, vector<16x32xf32> -> vector<16x32xf32>
    %c0_3 = arith.constant 0 : index
    %c0_4 = arith.constant 0 : index
    %c0_5 = arith.constant 0 : index
    %8 = vector.load %arg2[%c0_3, %c0_4, %c0_5] : memref<2x32x128xf32, #tpu.memory_space<vmem>>, vector<1x32x128xf32>
    %9 = vector.shape_cast %8 : vector<1x32x128xf32> to vector<32x128xf32>
    %cst_6 = arith.constant dense<0.000000e+00> : vector<16x128xf32>
    %10 = tpu.matmul %7, %9, %cst_6 {dimension_numbers = #tpu.dot_dimension_numbers<[1], [0], [0], [1], [0, 0, 1, 1], [], []>} : vector<16x32xf32>, vector<32x128xf32>, vector<16x128xf32> -> vector<16x128xf32>
    %11 = vector.extract_strided_slice %10 {offsets = [0, 0], sizes = [16, 64], strides = [1, 1]} : vector<16x128xf32> to vector<16x64xf32>
    %12 = vector.extract_strided_slice %10 {offsets = [0, 64], sizes = [16, 64], strides = [1, 1]} : vector<16x128xf32> to vector<16x64xf32>
    %c0_7 = arith.constant 0 : index
    %c0_8 = arith.constant 0 : index
    %c0_9 = arith.constant 0 : index
    %13 = vector.load %arg3[%c0_7, %c0_8, %c0_9] : memref<2x4x64xf32, #tpu.memory_space<vmem>>, vector<1x4x64xf32>
    %14 = vector.shape_cast %13 : vector<1x4x64xf32> to vector<4x64xf32>
    %15 = vector.shape_cast %11 : vector<16x64xf32> to vector<2x8x64xf32>
    %cst_10 = arith.constant 0.000000e+00 : f32
    %16 = vector.broadcast %cst_10 : f32 to vector<2x3x64xf32>
    %17 = tpu.concatenate %16, %15 in 1 : vector<2x3x64xf32>, vector<2x8x64xf32> -> vector<2x11x64xf32>
    %c0_11 = arith.constant 0 : index
    %c0_12 = arith.constant 0 : index
    %c0_13 = arith.constant 0 : index
    %18 = vector.load %arg4[%c0_11, %c0_12, %c0_13] : memref<2x1x64xf32, #tpu.memory_space<vmem>>, vector<1x1x64xf32>
    %19 = vector.shape_cast %18 : vector<1x1x64xf32> to vector<1x64xf32>
    %20 = vector.shape_cast %19 : vector<1x64xf32> to vector<1x1x64xf32>
    %21 = vector.broadcast %20 : vector<1x1x64xf32> to vector<2x8x64xf32>
    %22 = vector.extract_strided_slice %17 {offsets = [0, 0, 0], sizes = [2, 8, 64], strides = [1, 1, 1]} : vector<2x11x64xf32> to vector<2x8x64xf32>
    %23 = vector.extract_strided_slice %14 {offsets = [0, 0], sizes = [1, 64], strides = [1, 1]} : vector<4x64xf32> to vector<1x64xf32>
    %24 = vector.shape_cast %23 : vector<1x64xf32> to vector<64xf32>
    %25 = vector.shape_cast %24 : vector<64xf32> to vector<1x1x64xf32>
    %26 = vector.broadcast %25 : vector<1x1x64xf32> to vector<2x8x64xf32>
    %27 = arith.mulf %22, %26 : vector<2x8x64xf32>
    %28 = arith.addf %21, %27 : vector<2x8x64xf32>
    %29 = vector.extract_strided_slice %17 {offsets = [0, 1, 0], sizes = [2, 8, 64], strides = [1, 1, 1]} : vector<2x11x64xf32> to vector<2x8x64xf32>
    %30 = vector.extract_strided_slice %14 {offsets = [1, 0], sizes = [1, 64], strides = [1, 1]} : vector<4x64xf32> to vector<1x64xf32>
    %31 = vector.shape_cast %30 : vector<1x64xf32> to vector<64xf32>
    %32 = vector.shape_cast %31 : vector<64xf32> to vector<1x1x64xf32>
    %33 = vector.broadcast %32 : vector<1x1x64xf32> to vector<2x8x64xf32>
    %34 = arith.mulf %29, %33 : vector<2x8x64xf32>
    %35 = arith.addf %28, %34 : vector<2x8x64xf32>
    %36 = vector.extract_strided_slice %17 {offsets = [0, 2, 0], sizes = [2, 8, 64], strides = [1, 1, 1]} : vector<2x11x64xf32> to vector<2x8x64xf32>
    %37 = vector.extract_strided_slice %14 {offsets = [2, 0], sizes = [1, 64], strides = [1, 1]} : vector<4x64xf32> to vector<1x64xf32>
    %38 = vector.shape_cast %37 : vector<1x64xf32> to vector<64xf32>
    %39 = vector.shape_cast %38 : vector<64xf32> to vector<1x1x64xf32>
    %40 = vector.broadcast %39 : vector<1x1x64xf32> to vector<2x8x64xf32>
    %41 = arith.mulf %36, %40 : vector<2x8x64xf32>
    %42 = arith.addf %35, %41 : vector<2x8x64xf32>
    %43 = vector.extract_strided_slice %17 {offsets = [0, 3, 0], sizes = [2, 8, 64], strides = [1, 1, 1]} : vector<2x11x64xf32> to vector<2x8x64xf32>
    %44 = vector.extract_strided_slice %14 {offsets = [3, 0], sizes = [1, 64], strides = [1, 1]} : vector<4x64xf32> to vector<1x64xf32>
    %45 = vector.shape_cast %44 : vector<1x64xf32> to vector<64xf32>
    %46 = vector.shape_cast %45 : vector<64xf32> to vector<1x1x64xf32>
    %47 = vector.broadcast %46 : vector<1x1x64xf32> to vector<2x8x64xf32>
    %48 = arith.mulf %43, %47 : vector<2x8x64xf32>
    %49 = arith.addf %42, %48 : vector<2x8x64xf32>
    %50 = arith.negf %49 : vector<2x8x64xf32>
    %51 = math.exp %50 : vector<2x8x64xf32>
    %cst_14 = arith.constant 1.000000e+00 : f32
    %52 = vector.broadcast %cst_14 : f32 to vector<2x8x64xf32>
    %53 = arith.addf %52, %51 : vector<2x8x64xf32>
    %54 = arith.divf %52, %53 : vector<2x8x64xf32>
    %55 = arith.mulf %49, %54 : vector<2x8x64xf32>
    %56 = vector.shape_cast %55 : vector<2x8x64xf32> to vector<16x64xf32>
    %c0_15 = arith.constant 0 : index
    %c0_16 = arith.constant 0 : index
    %c0_17 = arith.constant 0 : index
    %57 = vector.load %arg5[%c0_15, %c0_16, %c0_17] : memref<2x64x96xf32, #tpu.memory_space<vmem>>, vector<1x64x96xf32>
    %58 = vector.shape_cast %57 : vector<1x64x96xf32> to vector<64x96xf32>
    %cst_18 = arith.constant dense<0.000000e+00> : vector<16x96xf32>
    %59 = tpu.matmul %56, %58, %cst_18 {dimension_numbers = #tpu.dot_dimension_numbers<[1], [0], [0], [1], [0, 0, 1, 1], [], []>} : vector<16x64xf32>, vector<64x96xf32>, vector<16x96xf32> -> vector<16x96xf32>
    %60 = vector.extract_strided_slice %59 {offsets = [0, 0], sizes = [16, 64], strides = [1, 1]} : vector<16x96xf32> to vector<16x64xf32>
    %c0_19 = arith.constant 0 : index
    %c0_20 = arith.constant 0 : index
    %c0_21 = arith.constant 0 : index
    %61 = vector.load %arg6[%c0_19, %c0_20, %c0_21] : memref<2x1x64xf32, #tpu.memory_space<vmem>>, vector<1x1x64xf32>
    %62 = vector.shape_cast %61 : vector<1x1x64xf32> to vector<1x64xf32>
    %63 = vector.broadcast %62 : vector<1x64xf32> to vector<16x64xf32>
    %64 = arith.addf %60, %63 : vector<16x64xf32>
    %cst_22 = arith.constant 0.000000e+00 : f32
    %65 = vector.broadcast %cst_22 : f32 to vector<16x64xf32>
    %66 = arith.maximumf %64, %65 : vector<16x64xf32>
    %67 = math.absf %64 : vector<16x64xf32>
    %cst_23 = arith.constant 0.000000e+00 : f32
    %68 = vector.broadcast %cst_23 : f32 to vector<16x64xf32>
    %69 = arith.subf %68, %67 : vector<16x64xf32>
    %70 = math.exp %69 : vector<16x64xf32>
    %71 = math.log1p %70 : vector<16x64xf32>
    %72 = arith.addf %66, %71 : vector<16x64xf32>
    %73 = vector.extract_strided_slice %59 {offsets = [0, 64], sizes = [16, 16], strides = [1, 1]} : vector<16x96xf32> to vector<16x16xf32>
    %74 = vector.extract_strided_slice %59 {offsets = [0, 80], sizes = [16, 16], strides = [1, 1]} : vector<16x96xf32> to vector<16x16xf32>
    %75 = arith.mulf %72, %56 : vector<16x64xf32>
    %76 = vector.extract_strided_slice %72 {offsets = [0, 0], sizes = [8, 64], strides = [1, 1]} : vector<16x64xf32> to vector<8x64xf32>
    %77 = vector.extract_strided_slice %72 {offsets = [8, 0], sizes = [8, 64], strides = [1, 1]} : vector<16x64xf32> to vector<8x64xf32>
    %78 = tpu.concatenate %76, %77 in 1 : vector<8x64xf32>, vector<8x64xf32> -> vector<8x128xf32>
    %79 = vector.extract_strided_slice %75 {offsets = [0, 0], sizes = [8, 64], strides = [1, 1]} : vector<16x64xf32> to vector<8x64xf32>
    %80 = vector.extract_strided_slice %75 {offsets = [8, 0], sizes = [8, 64], strides = [1, 1]} : vector<16x64xf32> to vector<8x64xf32>
    %81 = tpu.concatenate %79, %80 in 1 : vector<8x64xf32>, vector<8x64xf32> -> vector<8x128xf32>
    %82 = vector.extract_strided_slice %73 {offsets = [0, 0], sizes = [8, 16], strides = [1, 1]} : vector<16x16xf32> to vector<8x16xf32>
    %83 = vector.shape_cast %82 : vector<8x16xf32> to vector<8x16x1xf32>
    %84 = vector.shape_cast %83 : vector<8x16x1xf32> to vector<8x16x1xf32>
    %85 = vector.broadcast %84 : vector<8x16x1xf32> to vector<8x16x64xf32>
    %86 = vector.extract_strided_slice %73 {offsets = [8, 0], sizes = [8, 16], strides = [1, 1]} : vector<16x16xf32> to vector<8x16xf32>
    %87 = vector.shape_cast %86 : vector<8x16xf32> to vector<8x16x1xf32>
    %88 = vector.shape_cast %87 : vector<8x16x1xf32> to vector<8x16x1xf32>
    %89 = vector.broadcast %88 : vector<8x16x1xf32> to vector<8x16x64xf32>
    %90 = tpu.concatenate %85, %89 in 2 : vector<8x16x64xf32>, vector<8x16x64xf32> -> vector<8x16x128xf32>
    %91 = vector.extract_strided_slice %74 {offsets = [0, 0], sizes = [8, 16], strides = [1, 1]} : vector<16x16xf32> to vector<8x16xf32>
    %92 = vector.shape_cast %91 : vector<8x16xf32> to vector<8x16x1xf32>
    %93 = vector.shape_cast %92 : vector<8x16x1xf32> to vector<8x16x1xf32>
    %94 = vector.broadcast %93 : vector<8x16x1xf32> to vector<8x16x64xf32>
    %95 = vector.extract_strided_slice %74 {offsets = [8, 0], sizes = [8, 16], strides = [1, 1]} : vector<16x16xf32> to vector<8x16xf32>
    %96 = vector.shape_cast %95 : vector<8x16xf32> to vector<8x16x1xf32>
    %97 = vector.shape_cast %96 : vector<8x16x1xf32> to vector<8x16x1xf32>
    %98 = vector.broadcast %97 : vector<8x16x1xf32> to vector<8x16x64xf32>
    %99 = tpu.concatenate %94, %98 in 2 : vector<8x16x64xf32>, vector<8x16x64xf32> -> vector<8x16x128xf32>
    %100 = vector.shape_cast %78 : vector<8x128xf32> to vector<8x1x128xf32>
    %c0_24 = arith.constant 0 : index
    %c0_25 = arith.constant 0 : index
    %c0_26 = arith.constant 0 : index
    %101 = vector.load %arg7[%c0_24, %c0_25, %c0_26] : memref<2x16x128xf32, #tpu.memory_space<vmem>>, vector<1x16x128xf32>
    %102 = vector.shape_cast %101 : vector<1x16x128xf32> to vector<16x128xf32>
    %103 = vector.shape_cast %102 : vector<16x128xf32> to vector<1x16x128xf32>
    %104 = vector.broadcast %100 : vector<8x1x128xf32> to vector<8x16x128xf32>
    %105 = vector.broadcast %103 : vector<1x16x128xf32> to vector<8x16x128xf32>
    %106 = arith.mulf %104, %105 : vector<8x16x128xf32>
    %107 = math.exp %106 : vector<8x16x128xf32>
    %108 = vector.shape_cast %81 : vector<8x128xf32> to vector<8x1x128xf32>
    %109 = vector.broadcast %108 : vector<8x1x128xf32> to vector<8x16x128xf32>
    %110 = arith.mulf %109, %90 : vector<8x16x128xf32>
    %cst_27 = arith.constant 0.000000e+00 : f32
    %111 = vector.broadcast %cst_27 : f32 to vector<16x128xf32>
    %112 = vector.extract_strided_slice %107 {offsets = [0, 0, 0], sizes = [1, 16, 128], strides = [1, 1, 1]} : vector<8x16x128xf32> to vector<1x16x128xf32>
    %113 = vector.shape_cast %112 : vector<1x16x128xf32> to vector<16x128xf32>
    %114 = arith.mulf %113, %111 : vector<16x128xf32>
    %115 = vector.extract_strided_slice %110 {offsets = [0, 0, 0], sizes = [1, 16, 128], strides = [1, 1, 1]} : vector<8x16x128xf32> to vector<1x16x128xf32>
    %116 = vector.shape_cast %115 : vector<1x16x128xf32> to vector<16x128xf32>
    %117 = arith.addf %114, %116 : vector<16x128xf32>
    %118 = vector.extract_strided_slice %107 {offsets = [1, 0, 0], sizes = [1, 16, 128], strides = [1, 1, 1]} : vector<8x16x128xf32> to vector<1x16x128xf32>
    %119 = vector.shape_cast %118 : vector<1x16x128xf32> to vector<16x128xf32>
    %120 = arith.mulf %119, %117 : vector<16x128xf32>
    %121 = vector.extract_strided_slice %110 {offsets = [1, 0, 0], sizes = [1, 16, 128], strides = [1, 1, 1]} : vector<8x16x128xf32> to vector<1x16x128xf32>
    %122 = vector.shape_cast %121 : vector<1x16x128xf32> to vector<16x128xf32>
    %123 = arith.addf %120, %122 : vector<16x128xf32>
    %124 = vector.extract_strided_slice %107 {offsets = [2, 0, 0], sizes = [1, 16, 128], strides = [1, 1, 1]} : vector<8x16x128xf32> to vector<1x16x128xf32>
    %125 = vector.shape_cast %124 : vector<1x16x128xf32> to vector<16x128xf32>
    %126 = arith.mulf %125, %123 : vector<16x128xf32>
    %127 = vector.extract_strided_slice %110 {offsets = [2, 0, 0], sizes = [1, 16, 128], strides = [1, 1, 1]} : vector<8x16x128xf32> to vector<1x16x128xf32>
    %128 = vector.shape_cast %127 : vector<1x16x128xf32> to vector<16x128xf32>
    %129 = arith.addf %126, %128 : vector<16x128xf32>
    %130 = vector.extract_strided_slice %107 {offsets = [3, 0, 0], sizes = [1, 16, 128], strides = [1, 1, 1]} : vector<8x16x128xf32> to vector<1x16x128xf32>
    %131 = vector.shape_cast %130 : vector<1x16x128xf32> to vector<16x128xf32>
    %132 = arith.mulf %131, %129 : vector<16x128xf32>
    %133 = vector.extract_strided_slice %110 {offsets = [3, 0, 0], sizes = [1, 16, 128], strides = [1, 1, 1]} : vector<8x16x128xf32> to vector<1x16x128xf32>
    %134 = vector.shape_cast %133 : vector<1x16x128xf32> to vector<16x128xf32>
    %135 = arith.addf %132, %134 : vector<16x128xf32>
    %136 = vector.extract_strided_slice %107 {offsets = [4, 0, 0], sizes = [1, 16, 128], strides = [1, 1, 1]} : vector<8x16x128xf32> to vector<1x16x128xf32>
    %137 = vector.shape_cast %136 : vector<1x16x128xf32> to vector<16x128xf32>
    %138 = arith.mulf %137, %135 : vector<16x128xf32>
    %139 = vector.extract_strided_slice %110 {offsets = [4, 0, 0], sizes = [1, 16, 128], strides = [1, 1, 1]} : vector<8x16x128xf32> to vector<1x16x128xf32>
    %140 = vector.shape_cast %139 : vector<1x16x128xf32> to vector<16x128xf32>
    %141 = arith.addf %138, %140 : vector<16x128xf32>
    %142 = vector.extract_strided_slice %107 {offsets = [5, 0, 0], sizes = [1, 16, 128], strides = [1, 1, 1]} : vector<8x16x128xf32> to vector<1x16x128xf32>
    %143 = vector.shape_cast %142 : vector<1x16x128xf32> to vector<16x128xf32>
    %144 = arith.mulf %143, %141 : vector<16x128xf32>
    %145 = vector.extract_strided_slice %110 {offsets = [5, 0, 0], sizes = [1, 16, 128], strides = [1, 1, 1]} : vector<8x16x128xf32> to vector<1x16x128xf32>
    %146 = vector.shape_cast %145 : vector<1x16x128xf32> to vector<16x128xf32>
    %147 = arith.addf %144, %146 : vector<16x128xf32>
    %148 = vector.extract_strided_slice %107 {offsets = [6, 0, 0], sizes = [1, 16, 128], strides = [1, 1, 1]} : vector<8x16x128xf32> to vector<1x16x128xf32>
    %149 = vector.shape_cast %148 : vector<1x16x128xf32> to vector<16x128xf32>
    %150 = arith.mulf %149, %147 : vector<16x128xf32>
    %151 = vector.extract_strided_slice %110 {offsets = [6, 0, 0], sizes = [1, 16, 128], strides = [1, 1, 1]} : vector<8x16x128xf32> to vector<1x16x128xf32>
    %152 = vector.shape_cast %151 : vector<1x16x128xf32> to vector<16x128xf32>
    %153 = arith.addf %150, %152 : vector<16x128xf32>
    %154 = vector.extract_strided_slice %107 {offsets = [7, 0, 0], sizes = [1, 16, 128], strides = [1, 1, 1]} : vector<8x16x128xf32> to vector<1x16x128xf32>
    %155 = vector.shape_cast %154 : vector<1x16x128xf32> to vector<16x128xf32>
    %156 = arith.mulf %155, %153 : vector<16x128xf32>
    %157 = vector.extract_strided_slice %110 {offsets = [7, 0, 0], sizes = [1, 16, 128], strides = [1, 1, 1]} : vector<8x16x128xf32> to vector<1x16x128xf32>
    %158 = vector.shape_cast %157 : vector<1x16x128xf32> to vector<16x128xf32>
    %159 = arith.addf %156, %158 : vector<16x128xf32>
    %160 = vector.shape_cast %117 : vector<16x128xf32> to vector<1x16x128xf32>
    %161 = vector.shape_cast %123 : vector<16x128xf32> to vector<1x16x128xf32>
    %162 = vector.shape_cast %129 : vector<16x128xf32> to vector<1x16x128xf32>
    %163 = vector.shape_cast %135 : vector<16x128xf32> to vector<1x16x128xf32>
    %164 = vector.shape_cast %141 : vector<16x128xf32> to vector<1x16x128xf32>
    %165 = vector.shape_cast %147 : vector<16x128xf32> to vector<1x16x128xf32>
    %166 = vector.shape_cast %153 : vector<16x128xf32> to vector<1x16x128xf32>
    %167 = vector.shape_cast %159 : vector<16x128xf32> to vector<1x16x128xf32>
    %168 = tpu.concatenate %160, %161, %162, %163, %164, %165, %166, %167 in 0 : vector<1x16x128xf32>, vector<1x16x128xf32>, vector<1x16x128xf32>, vector<1x16x128xf32>, vector<1x16x128xf32>, vector<1x16x128xf32>, vector<1x16x128xf32>, vector<1x16x128xf32> -> vector<8x16x128xf32>
    %169 = arith.mulf %168, %99 : vector<8x16x128xf32>
    %cst_28 = arith.constant dense<0.000000e+00> : vector<8x128xf32>
    %170 = vector.multi_reduction <add>, %169, %cst_28 [1] : vector<8x16x128xf32> to vector<8x128xf32>
    %171 = vector.extract_strided_slice %170 {offsets = [0, 0], sizes = [8, 64], strides = [1, 1]} : vector<8x128xf32> to vector<8x64xf32>
    %172 = vector.extract_strided_slice %170 {offsets = [0, 64], sizes = [8, 64], strides = [1, 1]} : vector<8x128xf32> to vector<8x64xf32>
    %173 = tpu.concatenate %171, %172 in 0 : vector<8x64xf32>, vector<8x64xf32> -> vector<16x64xf32>
    %c0_29 = arith.constant 0 : index
    %c0_30 = arith.constant 0 : index
    %c0_31 = arith.constant 0 : index
    %174 = vector.load %arg8[%c0_29, %c0_30, %c0_31] : memref<2x1x64xf32, #tpu.memory_space<vmem>>, vector<1x1x64xf32>
    %175 = vector.shape_cast %174 : vector<1x1x64xf32> to vector<1x64xf32>
    %176 = vector.broadcast %175 : vector<1x64xf32> to vector<16x64xf32>
    %177 = arith.mulf %176, %56 : vector<16x64xf32>
    %178 = arith.addf %173, %177 : vector<16x64xf32>
    %179 = arith.negf %12 : vector<16x64xf32>
    %180 = math.exp %179 : vector<16x64xf32>
    %cst_32 = arith.constant 1.000000e+00 : f32
    %181 = vector.broadcast %cst_32 : f32 to vector<16x64xf32>
    %182 = arith.addf %181, %180 : vector<16x64xf32>
    %183 = arith.divf %181, %182 : vector<16x64xf32>
    %184 = arith.mulf %12, %183 : vector<16x64xf32>
    %185 = arith.mulf %178, %184 : vector<16x64xf32>
    %c0_33 = arith.constant 0 : index
    %c0_34 = arith.constant 0 : index
    %c0_35 = arith.constant 0 : index
    %186 = vector.load %arg9[%c0_33, %c0_34, %c0_35] : memref<2x64x32xf32, #tpu.memory_space<vmem>>, vector<1x64x32xf32>
    %187 = vector.shape_cast %186 : vector<1x64x32xf32> to vector<64x32xf32>
    %cst_36 = arith.constant dense<0.000000e+00> : vector<16x32xf32>
    %188 = tpu.matmul %185, %187, %cst_36 {dimension_numbers = #tpu.dot_dimension_numbers<[1], [0], [0], [1], [0, 0, 1, 1], [], []>} : vector<16x64xf32>, vector<64x32xf32>, vector<16x32xf32> -> vector<16x32xf32>
    %189 = arith.addf %7, %188 : vector<16x32xf32>
    %cst_37 = arith.constant dense<0.000000e+00> : vector<16xf32>
    %190 = vector.multi_reduction <add>, %189, %cst_37 [1] : vector<16x32xf32> to vector<16xf32>
    %191 = vector.shape_cast %190 : vector<16xf32> to vector<16x1xf32>
    %cst_38 = arith.constant 3.200000e+01 : f32
    %192 = vector.broadcast %cst_38 : f32 to vector<16x1xf32>
    %193 = arith.divf %191, %192 : vector<16x1xf32>
    %194 = vector.broadcast %193 : vector<16x1xf32> to vector<16x32xf32>
    %195 = arith.subf %189, %194 : vector<16x32xf32>
    %196 = arith.mulf %195, %195 : vector<16x32xf32>
    %cst_39 = arith.constant dense<0.000000e+00> : vector<16xf32>
    %197 = vector.multi_reduction <add>, %196, %cst_39 [1] : vector<16x32xf32> to vector<16xf32>
    %198 = vector.shape_cast %197 : vector<16xf32> to vector<16x1xf32>
    %cst_40 = arith.constant 3.200000e+01 : f32
    %199 = vector.broadcast %cst_40 : f32 to vector<16x1xf32>
    %200 = arith.divf %198, %199 : vector<16x1xf32>
    %cst_41 = arith.constant 9.99999974E-6 : f32
    %201 = vector.broadcast %cst_41 : f32 to vector<16x1xf32>
    %202 = arith.addf %200, %201 : vector<16x1xf32>
    %203 = math.rsqrt %202 : vector<16x1xf32>
    %204 = vector.broadcast %203 : vector<16x1xf32> to vector<16x32xf32>
    %205 = arith.mulf %195, %204 : vector<16x32xf32>
    %c0_42 = arith.constant 0 : index
    %c0_43 = arith.constant 0 : index
    %c0_44 = arith.constant 0 : index
    %206 = vector.load %arg10[%c0_42, %c0_43, %c0_44] : memref<2x1x32xf32, #tpu.memory_space<vmem>>, vector<1x1x32xf32>
    %207 = vector.shape_cast %206 : vector<1x1x32xf32> to vector<1x32xf32>
    %208 = vector.broadcast %207 : vector<1x32xf32> to vector<16x32xf32>
    %209 = arith.mulf %205, %208 : vector<16x32xf32>
    %c0_45 = arith.constant 0 : index
    %c0_46 = arith.constant 0 : index
    %c0_47 = arith.constant 0 : index
    %210 = vector.load %arg11[%c0_45, %c0_46, %c0_47] : memref<2x1x32xf32, #tpu.memory_space<vmem>>, vector<1x1x32xf32>
    %211 = vector.shape_cast %210 : vector<1x1x32xf32> to vector<1x32xf32>
    %212 = vector.broadcast %211 : vector<1x32xf32> to vector<16x32xf32>
    %213 = arith.addf %209, %212 : vector<16x32xf32>
    %c1 = arith.constant 1 : index
    %c0_48 = arith.constant 0 : index
    %c0_49 = arith.constant 0 : index
    %214 = vector.load %arg2[%c1, %c0_48, %c0_49] : memref<2x32x128xf32, #tpu.memory_space<vmem>>, vector<1x32x128xf32>
    %215 = vector.shape_cast %214 : vector<1x32x128xf32> to vector<32x128xf32>
    %cst_50 = arith.constant dense<0.000000e+00> : vector<16x128xf32>
    %216 = tpu.matmul %213, %215, %cst_50 {dimension_numbers = #tpu.dot_dimension_numbers<[1], [0], [0], [1], [0, 0, 1, 1], [], []>} : vector<16x32xf32>, vector<32x128xf32>, vector<16x128xf32> -> vector<16x128xf32>
    %217 = vector.extract_strided_slice %216 {offsets = [0, 0], sizes = [16, 64], strides = [1, 1]} : vector<16x128xf32> to vector<16x64xf32>
    %218 = vector.extract_strided_slice %216 {offsets = [0, 64], sizes = [16, 64], strides = [1, 1]} : vector<16x128xf32> to vector<16x64xf32>
    %c1_51 = arith.constant 1 : index
    %c0_52 = arith.constant 0 : index
    %c0_53 = arith.constant 0 : index
    %219 = vector.load %arg3[%c1_51, %c0_52, %c0_53] : memref<2x4x64xf32, #tpu.memory_space<vmem>>, vector<1x4x64xf32>
    %220 = vector.shape_cast %219 : vector<1x4x64xf32> to vector<4x64xf32>
    %221 = vector.shape_cast %217 : vector<16x64xf32> to vector<2x8x64xf32>
    %cst_54 = arith.constant 0.000000e+00 : f32
    %222 = vector.broadcast %cst_54 : f32 to vector<2x3x64xf32>
    %223 = tpu.concatenate %222, %221 in 1 : vector<2x3x64xf32>, vector<2x8x64xf32> -> vector<2x11x64xf32>
    %c1_55 = arith.constant 1 : index
    %c0_56 = arith.constant 0 : index
    %c0_57 = arith.constant 0 : index
    %224 = vector.load %arg4[%c1_55, %c0_56, %c0_57] : memref<2x1x64xf32, #tpu.memory_space<vmem>>, vector<1x1x64xf32>
    %225 = vector.shape_cast %224 : vector<1x1x64xf32> to vector<1x64xf32>
    %226 = vector.shape_cast %225 : vector<1x64xf32> to vector<1x1x64xf32>
    %227 = vector.broadcast %226 : vector<1x1x64xf32> to vector<2x8x64xf32>
    %228 = vector.extract_strided_slice %223 {offsets = [0, 0, 0], sizes = [2, 8, 64], strides = [1, 1, 1]} : vector<2x11x64xf32> to vector<2x8x64xf32>
    %229 = vector.extract_strided_slice %220 {offsets = [0, 0], sizes = [1, 64], strides = [1, 1]} : vector<4x64xf32> to vector<1x64xf32>
    %230 = vector.shape_cast %229 : vector<1x64xf32> to vector<64xf32>
    %231 = vector.shape_cast %230 : vector<64xf32> to vector<1x1x64xf32>
    %232 = vector.broadcast %231 : vector<1x1x64xf32> to vector<2x8x64xf32>
    %233 = arith.mulf %228, %232 : vector<2x8x64xf32>
    %234 = arith.addf %227, %233 : vector<2x8x64xf32>
    %235 = vector.extract_strided_slice %223 {offsets = [0, 1, 0], sizes = [2, 8, 64], strides = [1, 1, 1]} : vector<2x11x64xf32> to vector<2x8x64xf32>
    %236 = vector.extract_strided_slice %220 {offsets = [1, 0], sizes = [1, 64], strides = [1, 1]} : vector<4x64xf32> to vector<1x64xf32>
    %237 = vector.shape_cast %236 : vector<1x64xf32> to vector<64xf32>
    %238 = vector.shape_cast %237 : vector<64xf32> to vector<1x1x64xf32>
    %239 = vector.broadcast %238 : vector<1x1x64xf32> to vector<2x8x64xf32>
    %240 = arith.mulf %235, %239 : vector<2x8x64xf32>
    %241 = arith.addf %234, %240 : vector<2x8x64xf32>
    %242 = vector.extract_strided_slice %223 {offsets = [0, 2, 0], sizes = [2, 8, 64], strides = [1, 1, 1]} : vector<2x11x64xf32> to vector<2x8x64xf32>
    %243 = vector.extract_strided_slice %220 {offsets = [2, 0], sizes = [1, 64], strides = [1, 1]} : vector<4x64xf32> to vector<1x64xf32>
    %244 = vector.shape_cast %243 : vector<1x64xf32> to vector<64xf32>
    %245 = vector.shape_cast %244 : vector<64xf32> to vector<1x1x64xf32>
    %246 = vector.broadcast %245 : vector<1x1x64xf32> to vector<2x8x64xf32>
    %247 = arith.mulf %242, %246 : vector<2x8x64xf32>
    %248 = arith.addf %241, %247 : vector<2x8x64xf32>
    %249 = vector.extract_strided_slice %223 {offsets = [0, 3, 0], sizes = [2, 8, 64], strides = [1, 1, 1]} : vector<2x11x64xf32> to vector<2x8x64xf32>
    %250 = vector.extract_strided_slice %220 {offsets = [3, 0], sizes = [1, 64], strides = [1, 1]} : vector<4x64xf32> to vector<1x64xf32>
    %251 = vector.shape_cast %250 : vector<1x64xf32> to vector<64xf32>
    %252 = vector.shape_cast %251 : vector<64xf32> to vector<1x1x64xf32>
    %253 = vector.broadcast %252 : vector<1x1x64xf32> to vector<2x8x64xf32>
    %254 = arith.mulf %249, %253 : vector<2x8x64xf32>
    %255 = arith.addf %248, %254 : vector<2x8x64xf32>
    %256 = arith.negf %255 : vector<2x8x64xf32>
    %257 = math.exp %256 : vector<2x8x64xf32>
    %cst_58 = arith.constant 1.000000e+00 : f32
    %258 = vector.broadcast %cst_58 : f32 to vector<2x8x64xf32>
    %259 = arith.addf %258, %257 : vector<2x8x64xf32>
    %260 = arith.divf %258, %259 : vector<2x8x64xf32>
    %261 = arith.mulf %255, %260 : vector<2x8x64xf32>
    %262 = vector.shape_cast %261 : vector<2x8x64xf32> to vector<16x64xf32>
    %c1_59 = arith.constant 1 : index
    %c0_60 = arith.constant 0 : index
    %c0_61 = arith.constant 0 : index
    %263 = vector.load %arg5[%c1_59, %c0_60, %c0_61] : memref<2x64x96xf32, #tpu.memory_space<vmem>>, vector<1x64x96xf32>
    %264 = vector.shape_cast %263 : vector<1x64x96xf32> to vector<64x96xf32>
    %cst_62 = arith.constant dense<0.000000e+00> : vector<16x96xf32>
    %265 = tpu.matmul %262, %264, %cst_62 {dimension_numbers = #tpu.dot_dimension_numbers<[1], [0], [0], [1], [0, 0, 1, 1], [], []>} : vector<16x64xf32>, vector<64x96xf32>, vector<16x96xf32> -> vector<16x96xf32>
    %266 = vector.extract_strided_slice %265 {offsets = [0, 0], sizes = [16, 64], strides = [1, 1]} : vector<16x96xf32> to vector<16x64xf32>
    %c1_63 = arith.constant 1 : index
    %c0_64 = arith.constant 0 : index
    %c0_65 = arith.constant 0 : index
    %267 = vector.load %arg6[%c1_63, %c0_64, %c0_65] : memref<2x1x64xf32, #tpu.memory_space<vmem>>, vector<1x1x64xf32>
    %268 = vector.shape_cast %267 : vector<1x1x64xf32> to vector<1x64xf32>
    %269 = vector.broadcast %268 : vector<1x64xf32> to vector<16x64xf32>
    %270 = arith.addf %266, %269 : vector<16x64xf32>
    %cst_66 = arith.constant 0.000000e+00 : f32
    %271 = vector.broadcast %cst_66 : f32 to vector<16x64xf32>
    %272 = arith.maximumf %270, %271 : vector<16x64xf32>
    %273 = math.absf %270 : vector<16x64xf32>
    %cst_67 = arith.constant 0.000000e+00 : f32
    %274 = vector.broadcast %cst_67 : f32 to vector<16x64xf32>
    %275 = arith.subf %274, %273 : vector<16x64xf32>
    %276 = math.exp %275 : vector<16x64xf32>
    %277 = math.log1p %276 : vector<16x64xf32>
    %278 = arith.addf %272, %277 : vector<16x64xf32>
    %279 = vector.extract_strided_slice %265 {offsets = [0, 64], sizes = [16, 16], strides = [1, 1]} : vector<16x96xf32> to vector<16x16xf32>
    %280 = vector.extract_strided_slice %265 {offsets = [0, 80], sizes = [16, 16], strides = [1, 1]} : vector<16x96xf32> to vector<16x16xf32>
    %281 = arith.mulf %278, %262 : vector<16x64xf32>
    %282 = vector.extract_strided_slice %278 {offsets = [0, 0], sizes = [8, 64], strides = [1, 1]} : vector<16x64xf32> to vector<8x64xf32>
    %283 = vector.extract_strided_slice %278 {offsets = [8, 0], sizes = [8, 64], strides = [1, 1]} : vector<16x64xf32> to vector<8x64xf32>
    %284 = tpu.concatenate %282, %283 in 1 : vector<8x64xf32>, vector<8x64xf32> -> vector<8x128xf32>
    %285 = vector.extract_strided_slice %281 {offsets = [0, 0], sizes = [8, 64], strides = [1, 1]} : vector<16x64xf32> to vector<8x64xf32>
    %286 = vector.extract_strided_slice %281 {offsets = [8, 0], sizes = [8, 64], strides = [1, 1]} : vector<16x64xf32> to vector<8x64xf32>
    %287 = tpu.concatenate %285, %286 in 1 : vector<8x64xf32>, vector<8x64xf32> -> vector<8x128xf32>
    %288 = vector.extract_strided_slice %279 {offsets = [0, 0], sizes = [8, 16], strides = [1, 1]} : vector<16x16xf32> to vector<8x16xf32>
    %289 = vector.shape_cast %288 : vector<8x16xf32> to vector<8x16x1xf32>
    %290 = vector.shape_cast %289 : vector<8x16x1xf32> to vector<8x16x1xf32>
    %291 = vector.broadcast %290 : vector<8x16x1xf32> to vector<8x16x64xf32>
    %292 = vector.extract_strided_slice %279 {offsets = [8, 0], sizes = [8, 16], strides = [1, 1]} : vector<16x16xf32> to vector<8x16xf32>
    %293 = vector.shape_cast %292 : vector<8x16xf32> to vector<8x16x1xf32>
    %294 = vector.shape_cast %293 : vector<8x16x1xf32> to vector<8x16x1xf32>
    %295 = vector.broadcast %294 : vector<8x16x1xf32> to vector<8x16x64xf32>
    %296 = tpu.concatenate %291, %295 in 2 : vector<8x16x64xf32>, vector<8x16x64xf32> -> vector<8x16x128xf32>
    %297 = vector.extract_strided_slice %280 {offsets = [0, 0], sizes = [8, 16], strides = [1, 1]} : vector<16x16xf32> to vector<8x16xf32>
    %298 = vector.shape_cast %297 : vector<8x16xf32> to vector<8x16x1xf32>
    %299 = vector.shape_cast %298 : vector<8x16x1xf32> to vector<8x16x1xf32>
    %300 = vector.broadcast %299 : vector<8x16x1xf32> to vector<8x16x64xf32>
    %301 = vector.extract_strided_slice %280 {offsets = [8, 0], sizes = [8, 16], strides = [1, 1]} : vector<16x16xf32> to vector<8x16xf32>
    %302 = vector.shape_cast %301 : vector<8x16xf32> to vector<8x16x1xf32>
    %303 = vector.shape_cast %302 : vector<8x16x1xf32> to vector<8x16x1xf32>
    %304 = vector.broadcast %303 : vector<8x16x1xf32> to vector<8x16x64xf32>
    %305 = tpu.concatenate %300, %304 in 2 : vector<8x16x64xf32>, vector<8x16x64xf32> -> vector<8x16x128xf32>
    %306 = vector.shape_cast %284 : vector<8x128xf32> to vector<8x1x128xf32>
    %c1_68 = arith.constant 1 : index
    %c0_69 = arith.constant 0 : index
    %c0_70 = arith.constant 0 : index
    %307 = vector.load %arg7[%c1_68, %c0_69, %c0_70] : memref<2x16x128xf32, #tpu.memory_space<vmem>>, vector<1x16x128xf32>
    %308 = vector.shape_cast %307 : vector<1x16x128xf32> to vector<16x128xf32>
    %309 = vector.shape_cast %308 : vector<16x128xf32> to vector<1x16x128xf32>
    %310 = vector.broadcast %306 : vector<8x1x128xf32> to vector<8x16x128xf32>
    %311 = vector.broadcast %309 : vector<1x16x128xf32> to vector<8x16x128xf32>
    %312 = arith.mulf %310, %311 : vector<8x16x128xf32>
    %313 = math.exp %312 : vector<8x16x128xf32>
    %314 = vector.shape_cast %287 : vector<8x128xf32> to vector<8x1x128xf32>
    %315 = vector.broadcast %314 : vector<8x1x128xf32> to vector<8x16x128xf32>
    %316 = arith.mulf %315, %296 : vector<8x16x128xf32>
    %cst_71 = arith.constant 0.000000e+00 : f32
    %317 = vector.broadcast %cst_71 : f32 to vector<16x128xf32>
    %318 = vector.extract_strided_slice %313 {offsets = [0, 0, 0], sizes = [1, 16, 128], strides = [1, 1, 1]} : vector<8x16x128xf32> to vector<1x16x128xf32>
    %319 = vector.shape_cast %318 : vector<1x16x128xf32> to vector<16x128xf32>
    %320 = arith.mulf %319, %317 : vector<16x128xf32>
    %321 = vector.extract_strided_slice %316 {offsets = [0, 0, 0], sizes = [1, 16, 128], strides = [1, 1, 1]} : vector<8x16x128xf32> to vector<1x16x128xf32>
    %322 = vector.shape_cast %321 : vector<1x16x128xf32> to vector<16x128xf32>
    %323 = arith.addf %320, %322 : vector<16x128xf32>
    %324 = vector.extract_strided_slice %313 {offsets = [1, 0, 0], sizes = [1, 16, 128], strides = [1, 1, 1]} : vector<8x16x128xf32> to vector<1x16x128xf32>
    %325 = vector.shape_cast %324 : vector<1x16x128xf32> to vector<16x128xf32>
    %326 = arith.mulf %325, %323 : vector<16x128xf32>
    %327 = vector.extract_strided_slice %316 {offsets = [1, 0, 0], sizes = [1, 16, 128], strides = [1, 1, 1]} : vector<8x16x128xf32> to vector<1x16x128xf32>
    %328 = vector.shape_cast %327 : vector<1x16x128xf32> to vector<16x128xf32>
    %329 = arith.addf %326, %328 : vector<16x128xf32>
    %330 = vector.extract_strided_slice %313 {offsets = [2, 0, 0], sizes = [1, 16, 128], strides = [1, 1, 1]} : vector<8x16x128xf32> to vector<1x16x128xf32>
    %331 = vector.shape_cast %330 : vector<1x16x128xf32> to vector<16x128xf32>
    %332 = arith.mulf %331, %329 : vector<16x128xf32>
    %333 = vector.extract_strided_slice %316 {offsets = [2, 0, 0], sizes = [1, 16, 128], strides = [1, 1, 1]} : vector<8x16x128xf32> to vector<1x16x128xf32>
    %334 = vector.shape_cast %333 : vector<1x16x128xf32> to vector<16x128xf32>
    %335 = arith.addf %332, %334 : vector<16x128xf32>
    %336 = vector.extract_strided_slice %313 {offsets = [3, 0, 0], sizes = [1, 16, 128], strides = [1, 1, 1]} : vector<8x16x128xf32> to vector<1x16x128xf32>
    %337 = vector.shape_cast %336 : vector<1x16x128xf32> to vector<16x128xf32>
    %338 = arith.mulf %337, %335 : vector<16x128xf32>
    %339 = vector.extract_strided_slice %316 {offsets = [3, 0, 0], sizes = [1, 16, 128], strides = [1, 1, 1]} : vector<8x16x128xf32> to vector<1x16x128xf32>
    %340 = vector.shape_cast %339 : vector<1x16x128xf32> to vector<16x128xf32>
    %341 = arith.addf %338, %340 : vector<16x128xf32>
    %342 = vector.extract_strided_slice %313 {offsets = [4, 0, 0], sizes = [1, 16, 128], strides = [1, 1, 1]} : vector<8x16x128xf32> to vector<1x16x128xf32>
    %343 = vector.shape_cast %342 : vector<1x16x128xf32> to vector<16x128xf32>
    %344 = arith.mulf %343, %341 : vector<16x128xf32>
    %345 = vector.extract_strided_slice %316 {offsets = [4, 0, 0], sizes = [1, 16, 128], strides = [1, 1, 1]} : vector<8x16x128xf32> to vector<1x16x128xf32>
    %346 = vector.shape_cast %345 : vector<1x16x128xf32> to vector<16x128xf32>
    %347 = arith.addf %344, %346 : vector<16x128xf32>
    %348 = vector.extract_strided_slice %313 {offsets = [5, 0, 0], sizes = [1, 16, 128], strides = [1, 1, 1]} : vector<8x16x128xf32> to vector<1x16x128xf32>
    %349 = vector.shape_cast %348 : vector<1x16x128xf32> to vector<16x128xf32>
    %350 = arith.mulf %349, %347 : vector<16x128xf32>
    %351 = vector.extract_strided_slice %316 {offsets = [5, 0, 0], sizes = [1, 16, 128], strides = [1, 1, 1]} : vector<8x16x128xf32> to vector<1x16x128xf32>
    %352 = vector.shape_cast %351 : vector<1x16x128xf32> to vector<16x128xf32>
    %353 = arith.addf %350, %352 : vector<16x128xf32>
    %354 = vector.extract_strided_slice %313 {offsets = [6, 0, 0], sizes = [1, 16, 128], strides = [1, 1, 1]} : vector<8x16x128xf32> to vector<1x16x128xf32>
    %355 = vector.shape_cast %354 : vector<1x16x128xf32> to vector<16x128xf32>
    %356 = arith.mulf %355, %353 : vector<16x128xf32>
    %357 = vector.extract_strided_slice %316 {offsets = [6, 0, 0], sizes = [1, 16, 128], strides = [1, 1, 1]} : vector<8x16x128xf32> to vector<1x16x128xf32>
    %358 = vector.shape_cast %357 : vector<1x16x128xf32> to vector<16x128xf32>
    %359 = arith.addf %356, %358 : vector<16x128xf32>
    %360 = vector.extract_strided_slice %313 {offsets = [7, 0, 0], sizes = [1, 16, 128], strides = [1, 1, 1]} : vector<8x16x128xf32> to vector<1x16x128xf32>
    %361 = vector.shape_cast %360 : vector<1x16x128xf32> to vector<16x128xf32>
    %362 = arith.mulf %361, %359 : vector<16x128xf32>
    %363 = vector.extract_strided_slice %316 {offsets = [7, 0, 0], sizes = [1, 16, 128], strides = [1, 1, 1]} : vector<8x16x128xf32> to vector<1x16x128xf32>
    %364 = vector.shape_cast %363 : vector<1x16x128xf32> to vector<16x128xf32>
    %365 = arith.addf %362, %364 : vector<16x128xf32>
    %366 = vector.shape_cast %323 : vector<16x128xf32> to vector<1x16x128xf32>
    %367 = vector.shape_cast %329 : vector<16x128xf32> to vector<1x16x128xf32>
    %368 = vector.shape_cast %335 : vector<16x128xf32> to vector<1x16x128xf32>
    %369 = vector.shape_cast %341 : vector<16x128xf32> to vector<1x16x128xf32>
    %370 = vector.shape_cast %347 : vector<16x128xf32> to vector<1x16x128xf32>
    %371 = vector.shape_cast %353 : vector<16x128xf32> to vector<1x16x128xf32>
    %372 = vector.shape_cast %359 : vector<16x128xf32> to vector<1x16x128xf32>
    %373 = vector.shape_cast %365 : vector<16x128xf32> to vector<1x16x128xf32>
    %374 = tpu.concatenate %366, %367, %368, %369, %370, %371, %372, %373 in 0 : vector<1x16x128xf32>, vector<1x16x128xf32>, vector<1x16x128xf32>, vector<1x16x128xf32>, vector<1x16x128xf32>, vector<1x16x128xf32>, vector<1x16x128xf32>, vector<1x16x128xf32> -> vector<8x16x128xf32>
    %375 = arith.mulf %374, %305 : vector<8x16x128xf32>
    %cst_72 = arith.constant dense<0.000000e+00> : vector<8x128xf32>
    %376 = vector.multi_reduction <add>, %375, %cst_72 [1] : vector<8x16x128xf32> to vector<8x128xf32>
    %377 = vector.extract_strided_slice %376 {offsets = [0, 0], sizes = [8, 64], strides = [1, 1]} : vector<8x128xf32> to vector<8x64xf32>
    %378 = vector.extract_strided_slice %376 {offsets = [0, 64], sizes = [8, 64], strides = [1, 1]} : vector<8x128xf32> to vector<8x64xf32>
    %379 = tpu.concatenate %377, %378 in 0 : vector<8x64xf32>, vector<8x64xf32> -> vector<16x64xf32>
    %c1_73 = arith.constant 1 : index
    %c0_74 = arith.constant 0 : index
    %c0_75 = arith.constant 0 : index
    %380 = vector.load %arg8[%c1_73, %c0_74, %c0_75] : memref<2x1x64xf32, #tpu.memory_space<vmem>>, vector<1x1x64xf32>
    %381 = vector.shape_cast %380 : vector<1x1x64xf32> to vector<1x64xf32>
    %382 = vector.broadcast %381 : vector<1x64xf32> to vector<16x64xf32>
    %383 = arith.mulf %382, %262 : vector<16x64xf32>
    %384 = arith.addf %379, %383 : vector<16x64xf32>
    %385 = arith.negf %218 : vector<16x64xf32>
    %386 = math.exp %385 : vector<16x64xf32>
    %cst_76 = arith.constant 1.000000e+00 : f32
    %387 = vector.broadcast %cst_76 : f32 to vector<16x64xf32>
    %388 = arith.addf %387, %386 : vector<16x64xf32>
    %389 = arith.divf %387, %388 : vector<16x64xf32>
    %390 = arith.mulf %218, %389 : vector<16x64xf32>
    %391 = arith.mulf %384, %390 : vector<16x64xf32>
    %c1_77 = arith.constant 1 : index
    %c0_78 = arith.constant 0 : index
    %c0_79 = arith.constant 0 : index
    %392 = vector.load %arg9[%c1_77, %c0_78, %c0_79] : memref<2x64x32xf32, #tpu.memory_space<vmem>>, vector<1x64x32xf32>
    %393 = vector.shape_cast %392 : vector<1x64x32xf32> to vector<64x32xf32>
    %cst_80 = arith.constant dense<0.000000e+00> : vector<16x32xf32>
    %394 = tpu.matmul %391, %393, %cst_80 {dimension_numbers = #tpu.dot_dimension_numbers<[1], [0], [0], [1], [0, 0, 1, 1], [], []>} : vector<16x64xf32>, vector<64x32xf32>, vector<16x32xf32> -> vector<16x32xf32>
    %395 = arith.addf %213, %394 : vector<16x32xf32>
    %cst_81 = arith.constant dense<0.000000e+00> : vector<16xf32>
    %396 = vector.multi_reduction <add>, %395, %cst_81 [1] : vector<16x32xf32> to vector<16xf32>
    %397 = vector.shape_cast %396 : vector<16xf32> to vector<16x1xf32>
    %cst_82 = arith.constant 3.200000e+01 : f32
    %398 = vector.broadcast %cst_82 : f32 to vector<16x1xf32>
    %399 = arith.divf %397, %398 : vector<16x1xf32>
    %400 = vector.broadcast %399 : vector<16x1xf32> to vector<16x32xf32>
    %401 = arith.subf %395, %400 : vector<16x32xf32>
    %402 = arith.mulf %401, %401 : vector<16x32xf32>
    %cst_83 = arith.constant dense<0.000000e+00> : vector<16xf32>
    %403 = vector.multi_reduction <add>, %402, %cst_83 [1] : vector<16x32xf32> to vector<16xf32>
    %404 = vector.shape_cast %403 : vector<16xf32> to vector<16x1xf32>
    %cst_84 = arith.constant 3.200000e+01 : f32
    %405 = vector.broadcast %cst_84 : f32 to vector<16x1xf32>
    %406 = arith.divf %404, %405 : vector<16x1xf32>
    %cst_85 = arith.constant 9.99999974E-6 : f32
    %407 = vector.broadcast %cst_85 : f32 to vector<16x1xf32>
    %408 = arith.addf %406, %407 : vector<16x1xf32>
    %409 = math.rsqrt %408 : vector<16x1xf32>
    %410 = vector.broadcast %409 : vector<16x1xf32> to vector<16x32xf32>
    %411 = arith.mulf %401, %410 : vector<16x32xf32>
    %c1_86 = arith.constant 1 : index
    %c0_87 = arith.constant 0 : index
    %c0_88 = arith.constant 0 : index
    %412 = vector.load %arg10[%c1_86, %c0_87, %c0_88] : memref<2x1x32xf32, #tpu.memory_space<vmem>>, vector<1x1x32xf32>
    %413 = vector.shape_cast %412 : vector<1x1x32xf32> to vector<1x32xf32>
    %414 = vector.broadcast %413 : vector<1x32xf32> to vector<16x32xf32>
    %415 = arith.mulf %411, %414 : vector<16x32xf32>
    %c1_89 = arith.constant 1 : index
    %c0_90 = arith.constant 0 : index
    %c0_91 = arith.constant 0 : index
    %416 = vector.load %arg11[%c1_89, %c0_90, %c0_91] : memref<2x1x32xf32, #tpu.memory_space<vmem>>, vector<1x1x32xf32>
    %417 = vector.shape_cast %416 : vector<1x1x32xf32> to vector<1x32xf32>
    %418 = vector.broadcast %417 : vector<1x32xf32> to vector<16x32xf32>
    %419 = arith.addf %415, %418 : vector<16x32xf32>
    %c0_92 = arith.constant 0 : index
    %c0_93 = arith.constant 0 : index
    %420 = vector.load %arg12[%c0_92, %c0_93] : memref<32x16xf32, #tpu.memory_space<vmem>>, vector<32x16xf32>
    %cst_94 = arith.constant dense<0.000000e+00> : vector<16x16xf32>
    %421 = tpu.matmul %419, %420, %cst_94 {dimension_numbers = #tpu.dot_dimension_numbers<[1], [0], [0], [1], [0, 0, 1, 1], [], []>} : vector<16x32xf32>, vector<32x16xf32>, vector<16x16xf32> -> vector<16x16xf32>
    %c0_95 = arith.constant 0 : index
    %c0_96 = arith.constant 0 : index
    %422 = vector.load %arg13[%c0_95, %c0_96] : memref<1x16xf32, #tpu.memory_space<vmem>>, vector<1x16xf32>
    %423 = vector.broadcast %422 : vector<1x16xf32> to vector<16x16xf32>
    %424 = arith.addf %421, %423 : vector<16x16xf32>
    %425 = vector.shape_cast %424 : vector<16x16xf32> to vector<2x8x16xf32>
    %c0_97 = arith.constant 0 : index
    %c0_98 = arith.constant 0 : index
    %c0_99 = arith.constant 0 : index
    %426 = vector.load %arg14[%c0_97, %c0_98, %c0_99] : memref<2x8x16xf32, #tpu.memory_space<vmem>>, vector<2x8x16xf32>
    tpu.vector_store %arg14[%c0_97, %c0_98, %c0_99], %425 {strides = array<i32>} : memref<2x8x16xf32, #tpu.memory_space<vmem>>, vector<2x8x16xf32>,
    return
  }
}

</mosaic_0001>

<bundles_post_ra>
// kernel: model_forward.1
= control target key start
LH: loop header
LB: loop body
LE: loop exit
PB: predicated region body
PF: predicated region fallthrough
CT: control target
= control target key end

     0   :  { %19 = vsyncpa [#allocation3], 0  ;;  %s4520_s0 = inlined_call_operand.vmem [shape: s32[16,1], index: 0, kind: input, shape index: {}]   ;;  %s4521_s1 = inlined_call_operand.vmem [shape: f32[32,32], index: 1, kind: input, shape index: {}]   ;;  %s4522_s2 = inlined_call_operand.vmem [shape: f32[2,32,128], index: 2, kind: input, shape index: {}]   ;;  %s4523_s3 = inlined_call_operand.vmem [shape: f32[2,4,64], index: 3, kind: input, shape index: {}]   ;;  %s4524_s4 = inlined_call_operand.vmem [shape: f32[2,1,64], index: 4, kind: input, shape index: {}]   ;;  %s4525_s5 = inlined_call_operand.vmem [shape: f32[2,64,96], index: 5, kind: input, shape index: {}]   ;;  %s4526_s6 = inlined_call_operand.vmem [shape: f32[2,1,64], index: 6, kind: input, shape index: {}]   ;;  %s4527_s7 = inlined_call_operand.hbm [shape: f32[2,16,128], index: 7, kind: input, shape index: {}]   ;;  %s4528_s8 = inlined_call_operand.vmem [shape: f32[2,1,64], index: 8, kind: input, shape index: {}]   ;;  %s4529_s9 = inlined_call_operand.vmem [shape: f32[2,64,32], index: 9, kind: input, shape index: {}]   ;;  %s4530_s10 = inlined_call_operand.hbm [shape: f32[2,1,32], index: 10, kind: input, shape index: {}]   ;;  %s4531_s11 = inlined_call_operand.hbm [shape: f32[2,1,32], index: 11, kind: input, shape index: {}]   ;;  %s4532_s12 = inlined_call_operand.vmem [shape: f32[32,16], index: 12, kind: input, shape index: {}]   ;;  %s4533_s13 = inlined_call_operand.vmem [shape: f32[1,16], index: 13, kind: input, shape index: {}]   ;;  %s4534_s14 = inlined_call_operand.hbm [shape: f32[2,8,16], index: 14, kind: output, shape index: {}]  }
   0x1   :  { %20 = vsyncpa [#allocation6], 0 }
   0x2   :  { %21 = vsyncpa [#allocation4], 0  ;;  %s3335_s29 = smov [#allocation5]   ;;  %s3241_s17 = scalar_lea.hbm %s4530_s10, 32 }
   0x3   :  { %s57_s30 = sshll.u32 %s3335_s29, 4  ;;  %p3242_p0 = scmp.ne.s32.totalorder %s4530_s10, %s3241_s17  ;;  %s58_s30 = int_to_ptr.vmem [resolvable:$true] %s57_s30 }
   0x4   :  { %p3245_p1 = scmp.lt.u32.totalorder %s3241_s17, %s4530_s10 }
   0x6   :  { %p3247_p2 = pnand %p3245_p1, %p3242_p0 }
   0x8   :  { %3250 = shalt.err (!%p3247_p2)
}
   0x9   :  { %s3251_s22 = scalar_lea.vmem %s58_s30, 32  ;;  %p3256_p4 = scmp.lt.s32.totalorder %s58_s30, %s58_s30 }
   0xa   :  { %p3252_p3 = scmp.ne.s32.totalorder %s58_s30, %s3251_s22  ;;  %p3257_p5 = scmp.lt.s32.totalorder %s3251_s22, %s3251_s22 }
   0xc   :  { %p3258_p6 = por %p3257_p5, %p3256_p4 }
   0xe   :  { %p3259_p7 = pnand %p3258_p6, %p3252_p3 }
  0x10   :  { %3262 = shalt.err (!%p3259_p7)
}
  0x11   :  { %s3336_s23 = smov 16   ;;  %s3337_s24 = smov 1  }
  0x12   :  { %63 = dma.hbm_to_vmem [thread:$0]  %s4530_s10, 32, %s58_s30, [#allocation6], %s3336_s23, %s3336_s23, %s3337_s24  }
  0x13   :  { %s3338_s27 = smov [#allocation2]   ;;  %s3263_s16 = scalar_lea.hbm %s4527_s7, 512 }
  0x14   :  { %s41_s28 = sshll.u32 %s3338_s27, 4  ;;  %p3264_p8 = scmp.ne.s32.totalorder %s4527_s7, %s3263_s16  ;;  %s42_s28 = int_to_ptr.vmem [resolvable:$true] %s41_s28 }
  0x15   :  { %p3267_p9 = scmp.lt.u32.totalorder %s3263_s16, %s4527_s7 }
  0x17   :  { %p3269_p10 = pnand %p3267_p9, %p3264_p8 }
  0x19   :  { %3272 = shalt.err (!%p3269_p10)
}
  0x1a   :  { %s3273_s21 = scalar_lea.vmem %s42_s28, 512  ;;  %p3278_p12 = scmp.lt.s32.totalorder %s42_s28, %s42_s28 }
  0x1b   :  { %p3274_p11 = scmp.ne.s32.totalorder %s42_s28, %s3273_s21  ;;  %p3279_p13 = scmp.lt.s32.totalorder %s3273_s21, %s3273_s21 }
  0x1d   :  { %p3280_p0 = por %p3279_p13, %p3278_p12 }
  0x1f   :  { %p3281_p1 = pnand %p3280_p0, %p3274_p11 }
  0x21   :  { %3284 = shalt.err (!%p3281_p1)
}
  0x22   :  { %s3339_s10 = smov 128   ;;  %s3340_s30 = smov 8  }
  0x23   :  { %47 = dma.hbm_to_vmem [thread:$0]  %s4527_s7, 512, %s42_s28, [#allocation3], %s3339_s10, %s3339_s10, %s3340_s30  }
  0x24   :  { %s3341_s26 = smov [#allocation7]   ;;  %s3285_s16 = scalar_lea.hbm %s4531_s11, 32 }
  0x25   :  { %s69_s27 = sshll.u32 %s3341_s26, 4  ;;  %p3286_p2 = scmp.ne.s32.totalorder %s4531_s11, %s3285_s16  ;;  %s70_s27 = int_to_ptr.vmem [resolvable:$true] %s69_s27 }
  0x26   :  { %p3289_p3 = scmp.lt.u32.totalorder %s3285_s16, %s4531_s11 }
  0x28   :  { %p3291_p4 = pnand %p3289_p3, %p3286_p2 }
  0x2a   :  { %3294 = shalt.err (!%p3291_p4)
}
  0x2b   :  { %s3295_s21 = scalar_lea.vmem %s70_s27, 32  ;;  %p3300_p6 = scmp.lt.s32.totalorder %s70_s27, %s70_s27 }
  0x2c   :  { %p3296_p5 = scmp.ne.s32.totalorder %s70_s27, %s3295_s21  ;;  %p3301_p7 = scmp.lt.s32.totalorder %s3295_s21, %s3295_s21 }
  0x2e   :  { %p3302_p8 = por %p3301_p7, %p3300_p6 }
  0x30   :  { %p3303_p9 = pnand %p3302_p8, %p3296_p5 }
  0x32   :  { %3306 = shalt.err (!%p3303_p9)
}
  0x33   :  { %75 = dma.hbm_to_vmem [thread:$0]  %s4531_s11, 32, %s70_s27, [#allocation6], %s3336_s23, %s3336_s23, %s3337_s24  }
  0x34   :  { %3329 = dma.done.wait [#allocation3], 512  }
  0x35   :  { %3330 = vsyncadd [#allocation3], 4294966784 }
  0x36   :  { %3331 = dma.done.wait [#allocation6], 64  }
  0x37   :  { %3332 = vsyncadd [#allocation6], 4294967232  ;;  %v3342_v0 = vmov 0   ;;  %v89_v1 = vld [vmem:[%s4520_s0] sm:$0xff]  ;;  %v106_v3 = vld [vmem:[%s4521_s1 + $0x8] sm:$0xff]  ;;  %v91_v15 = vlaneseq  ;;  %vm109_vm0 = vcmask 261120  }
  0x38   :  { %3120 = vset.pattern.permute.xlu0 %v3342_v0  ;;  %v105_v2 = vld [vmem:[%s4521_s1] sm:$0xff]  ;;  %v107_v4 = vld [vmem:[%s4521_s1 + $0x10] sm:$0xff]  ;;  %v108_v5 = vld [vmem:[%s4521_s1 + $0x18] sm:$0xff]  ;;  %v3343_v18 = vmov 0.0   ;;  %vm283_vm3 = vcmask 1042432   ;;  %vm313_vm4 = vcmask 1046528  }
  0x39   :  { %94 = vperm.xlu0 %3120, %v89_v1   ;;  %v90_v6 = vld [vmem:[%s4520_s0 + $0x8] sm:$0xff]  ;;  %v3012_v7 = vpack.c.bf16 %v106_v3, %v105_v2  ;;  %v3016_v8 = vpack.c.bf16 %v108_v5, %v107_v4  ;;  %v191_v9 = vld [vmem:[%s4522_s2] sm:$0xff]  ;;  %v193_v11 = vld [vmem:[%s4522_s2 + $0x10] sm:$0xff]  ;;  %v92_v16 = vand.u32 127, %v91_v15  ;;  %v3531_v36 = vshrl.u32 %v91_v15, 7  ;;  %s3344_s15 = smov 64  }
  0x3a   :  { %v192_v10 = vld [vmem:[%s4522_s2 + $0x8] sm:$0xff]  ;;  %v194_v13 = vld [vmem:[%s4522_s2 + $0x18] sm:$0xff]  ;;  %v384_v24 = vld [vmem:[%s4525_s5] sm:$0xff]  ;;  %vm336_vm5 = vcmask 1045504   ;;  %vm359_vm6 = vcmask 1044480   ;;  %vm392_vm7 = vcmask 523264  }
  0x3b   :  { %3013 = vmatprep.subr.bf16.mxu0 %v3012_v7  ;;  %v3020_v12 = vpack.c.bf16 %v192_v10, %v191_v9  ;;  %v3024_v14 = vpack.c.bf16 %v194_v13, %v193_v11  ;;  %v385_v25 = vld [vmem:[%s4525_s5 + $0x8] sm:$0xff]  ;;  %v386_v27 = vld [vmem:[%s4525_s5 + $0x10] sm:$0xff]  ;;  %v387_v28 = vld [vmem:[%s4525_s5 + $0x18] sm:$0xff]  ;;  %v3534_v37 = vsub.s32 1, %v3531_v36  ;;  %v3540_v39 = vsub.s32 2, %v3531_v36 }
  0x3c   :  { %3015 = vmatpush3.bf16.msra.mxu0 %v3012_v7  ;;  %v3028_v26 = vpack.c.bf16 %v385_v25, %v384_v24  ;;  %v388_v29 = vld [vmem:[%s4525_s5 + $0x20] sm:$0xff]  ;;  %v3032_v30 = vpack.c.bf16 %v387_v28, %v386_v27  ;;  %v389_v31 = vld [vmem:[%s4525_s5 + $0x28] sm:$0xff]  ;;  %v390_v33 = vld [vmem:[%s4525_s5 + $0x30] sm:$0xff]  ;;  %v3543_v40 = vsub.s32 3, %v3531_v36  ;;  %v3546_v41 = vsub.s32 0, %v3531_v36 }
  0x3d   :  { %97 = vperm.xlu0 %3120, %v90_v6   ;;  %3017 = vmatprep.subr.bf16.mxu0 %v3016_v8  ;;  %v3036_v32 = vpack.c.bf16 %v389_v31, %v388_v29  ;;  %v391_v34 = vld [vmem:[%s4525_s5 + $0x38] sm:$0xff]  ;;  %4557 = vst [vmem:[#allocation14_spill] sm:$0xff] %v3534_v37  ;;  %v276_v38 = vld [vmem:[%s4523_s3] sm:$0xf]  ;;  %4558 = vst [vmem:[#allocation15_spill] sm:$0xff] %v3540_v39  ;;  %vm1235_vm10 = vcmask 1041409  }
  0x3e   :  { %3021 = vmatprep.subr.bf16.mxu1 %v3020_v12  ;;  %v3040_v35 = vpack.c.bf16 %v391_v34, %v390_v33  ;;  %4559 = vst [vmem:[#allocation16_spill] sm:$0xff] %v3543_v40  ;;  %v304_v42 = vrot.slane %v276_v38, %v3534_v37  ;;  %v327_v44 = vrot.slane %v276_v38, %v3540_v39  ;;  %v2773_v1 = vld [vmem:[%s4524_s4] ss:$0 sm:$0xff]  ;;  %vm1237_vm11 = vcmask 1042434  }
  0x3f   :  { %3023 = vmatpush3.bf16.msra.mxu1 %v3020_v12  ;;  %v350_v46 = vrot.slane %v276_v38, %v3543_v40  ;;  %v296_v48 = vrot.slane %v276_v38, %v3546_v41  ;;  %vm1239_vm12 = vcmask 1043459   ;;  %vm1241_vm13 = vcmask 1044484  }
  0x40   :  { %3019 = vmatpush3.bf16.msra.mxu0 %v3016_v8  ;;  %3025 = vmatprep.subr.bf16.mxu1 %v3024_v14  ;;  %vm1243_vm14 = vcmask 1045509   ;;  %vm1245_vm15 = vcmask 1046534  }
  0x41   :  { %3029 = vmatprep.subr.bf16.mxu0 %v3028_v26 }
  0x43   :  { %3027 = vmatpush3.bf16.msra.mxu1 %v3024_v14 }
  0xb8   :  { %v95_v17 = vpop.permute.xlu0 %94 }
  0xb9   :  { %vm99_vm1 = vcmp.eq.s32.totalorder %v95_v17, %v92_v16 }
  0xba   :  { %v2767_v19 = vsel %vm99_vm1, 1.0, %v3343_v18  ;;  %vm1247_vm1 = vcmask 1047559  }
  0xbb   :  { %2900 = vmatprep.mubr.msk.f32.mxu0 %vm109_vm0, %v2767_v19 }
  0xbc   :  { %v98_v20 = vpop.permute.xlu0 %97 }
  0xbd   :  { %vm100_vm2 = vcmp.eq.s32.totalorder %v98_v20, %v92_v16 }
  0xbe   :  { %v2768_v21 = vsel %vm100_vm2, 1.0, %v3343_v18 }
  0xbf   :  { %2901 = vmatmul.mubr.msk.f32.vlgmr.msra.gmra.mrb[0].mxu0 %vm109_vm0, %v2768_v21 }
  0xc0   :  { %3031 = vmatpush3.bf16.msra.mxu0 %v3028_v26 }
  0xc1   :  { %3033 = vmatprep.subr.bf16.mxu0 %v3032_v30 }
  0xc4   :  { %3035 = vmatpush3.bf16.msra.mxu0 %v3032_v30 }
  0xc5   :  { %3037 = vmatprep.subr.bf16.mxu0 %v3036_v32 }
  0xc8   :  { %3039 = vmatpush3.bf16.msra.mxu0 %v3036_v32 }
  0xc9   :  { %3041 = vmatprep.subr.bf16.mxu0 %v3040_v35 }
  0xcc   :  { %3043 = vmatpush3.bf16.msra.mxu0 %v3040_v35 }
 0x192   :  { %v3499_v22 = vpop.f32.mrb[0].mxu0 }
 0x193   :  { %4555 = vst [vmem:[#allocation12_spill] sm:$0xff] %v3499_v22  ;;  %v3501_v23 = vpop.f32.mrb[1].mxu0 }
 0x194   :  { %4556 = vst [vmem:[#allocation13_spill] sm:$0xff] %v3501_v23  ;;  %2911 = vmatprep.mubr.msk.f32.mxu1 %vm109_vm0, %v3501_v23 }
 0x195   :  { %2912 = vmatmul.mubr.msk.f32.vlgmr.msra.gmra.mrb[0].mxu1 %vm109_vm0, %v3499_v22 }
 0x268   :  { %v3549_v43 = vpop.f32.mrb[0].mxu1 }
 0x269   :  { %4560 = vst [vmem:[#allocation17_spill] sm:$0xff] %v3549_v43  ;;  %v280_v45 = vrot.slane %v3549_v43, 5  ;;  %v3554_v47 = vpop.f32.mrb[1].mxu1 }
 0x26a   :  { %v279_v49 = vrot.slane %v3554_v47, 5 }
 0x26b   :  { %v285_v50 = vsel %vm283_vm3, 0.0, %v280_v45  ;;  %v308_v51 = vmul.f32 %v304_v42, %v280_v45  ;;  %v331_v54 = vmul.f32 %v327_v44, %v280_v45  ;;  %v354_v56 = vmul.f32 %v350_v46, %v280_v45 }
 0x26c   :  { %v307_v52 = vmul.f32 %v304_v42, %v285_v50  ;;  %v330_v53 = vmul.f32 %v327_v44, %v285_v50  ;;  %v298_v57 = vmul.f32 %v296_v48, %v285_v50  ;;  %v353_v59 = vmul.f32 %v350_v46, %v285_v50 }
 0x26d   :  { %v318_v55 = vrot.slane %v308_v51, 1  ;;  %v284_v60 = vsel %vm283_vm3, 0.0, %v279_v49  ;;  %v306_v63 = vmul.f32 %v304_v42, %v279_v49  ;;  %v341_v3 = vrot.slane %v331_v54, 2  ;;  %v2778_v51 = vld [vmem:[%s4526_s6] ss:$0 sm:$0xff] }
 0x26e   :  { %v317_v58 = vrot.slane %v307_v52, 1  ;;  %v297_v61 = vmul.f32 %v296_v48, %v284_v60  ;;  %v305_v62 = vmul.f32 %v304_v42, %v284_v60  ;;  %v328_v0 = vmul.f32 %v327_v44, %v284_v60 }
 0x26f   :  { %v340_v2 = vrot.slane %v330_v53, 2  ;;  %v329_v4 = vmul.f32 %v327_v44, %v279_v49  ;;  %v352_v5 = vmul.f32 %v350_v46, %v279_v49  ;;  %v315_v8 = vrot.slane %v306_v63, 1 }
 0x270   :  { %v319_v6 = vsel %vm313_vm4, %v317_v58, %v318_v55  ;;  %v314_v7 = vrot.slane %v305_v62, 1  ;;  %v337_v9 = vrot.slane %v328_v0, 2  ;;  %v364_v10 = vrot.slane %v354_v56, 3 }
 0x271   :  { %v338_v11 = vrot.slane %v329_v4, 2  ;;  %v299_v12 = vadd.f32 %v2773_v1, %v297_v61  ;;  %v300_v13 = vadd.f32 %v2773_v1, %v298_v57  ;;  %v363_v14 = vrot.slane %v353_v59, 3 }
 0x272   :  { %v361_v15 = vrot.slane %v352_v5, 3  ;;  %v316_v16 = vsel %vm313_vm4, %v314_v7, %v315_v8  ;;  %v351_v17 = vmul.f32 %v350_v46, %v284_v60  ;;  %v342_v20 = vsel %vm336_vm5, %v340_v2, %v341_v3 }
 0x273   :  { %v322_v18 = vadd.f32 %v316_v16, %v299_v12  ;;  %v323_v19 = vadd.f32 %v319_v6, %v300_v13  ;;  %v339_v21 = vsel %vm336_vm5, %v337_v9, %v338_v11  ;;  %v365_v28 = vsel %vm359_vm6, %v363_v14, %v364_v10 }
 0x274   :  { %v360_v24 = vrot.slane %v351_v17, 3  ;;  %v3602_v56 = vsub.s32 4, %v3531_v36  ;;  %v3611_v58 = vsub.s32 5, %v3531_v36  ;;  %v3620_v60 = vsub.s32 6, %v3531_v36 }
 0x275   :  { %v345_v25 = vadd.f32 %v339_v21, %v322_v18  ;;  %v346_v26 = vadd.f32 %v342_v20, %v323_v19  ;;  %v3647_v20 = vsub.s32 7, %v3531_v36 }
 0x276   :  { %v362_v27 = vsel %vm359_vm6, %v360_v24, %v361_v15  ;;  %4563 = vst [vmem:[#allocation20_spill] sm:$0xff] %v3602_v56  ;;  %4564 = vst [vmem:[#allocation21_spill] sm:$0xff] %v3611_v58 }
 0x277   :  { %v368_v29 = vadd.f32 %v362_v27, %v345_v25  ;;  %v369_v30 = vadd.f32 %v365_v28, %v346_v26  ;;  %4565 = vst [vmem:[#allocation22_spill] sm:$0xff] %v3620_v60  ;;  %4566 = vst [vmem:[#allocation23_spill] sm:$0xff] %v3647_v20  ;;  %v2780_v26 = vmul.f32 -1.442695, %v3554_v47 }
 0x279   :  { %v2774_v31 = vmul.f32 -1.442695, %v368_v29  ;;  %v2775_v32 = vmul.f32 -1.442695, %v369_v30 }
 0x27b   :  { %3121 = vpow2.f32 %v2774_v31 }
 0x27c   :  { %3123 = vpow2.f32 %v2775_v32 }
 0x285   :  { %v3122_v33 = vpop.eup %3121 }
 0x286   :  { %v3124_v34 = vpop.eup %3123  ;;  %v376_v35 = vadd.f32 1.0, %v3122_v33 }
 0x287   :  { %v377_v38 = vadd.f32 1.0, %v3124_v34 }
 0x288   :  { %3125 = vrcp.f32 %v376_v35 }
 0x289   :  { %3127 = vrcp.f32 %v377_v38 }
 0x292   :  { %v3126_v42 = vpop.eup %3125 }
 0x293   :  { %v3128_v44 = vpop.eup %3127  ;;  %v3569_v45 = vmul.f32 %v3126_v42, %v368_v29 }
 0x294   :  { %v3571_v46 = vmul.f32 %v3128_v44, %v369_v30 }
 0x295   :  { %4561 = vst [vmem:[#allocation18_spill] sm:$0xff] %v3569_v45  ;;  %2930 = vmatprep.mubr.msk.f32.mxu0 %vm392_vm7, %v3569_v45 }
 0x296   :  { %4562 = vst [vmem:[#allocation19_spill] sm:$0xff] %v3571_v46  ;;  %2931 = vmatmul.mubr.msk.f32.vlgmr.msra.gmra.mrb[2].mxu0 %vm392_vm7, %v3571_v46 }
 0x369   :  { %v3577_v48 = vpop.f32.mrb[2].mxu0 }
 0x36a   :  { %v3579_v49 = vpop.f32.mrb[3].mxu0  ;;  %v624_v50 = vrot.slane %v3577_v48, %v3546_v41  ;;  %v636_v52 = vrot.slane %v3577_v48, %v3534_v37  ;;  %v3593_v54 = vrot.slane %v3577_v48, %v3540_v39  ;;  %v3599_v55 = vrot.slane %v3577_v48, %v3543_v40 }
 0x36b   :  { %v3589_v53 = vadd.f32 %v2778_v51, %v3579_v49  ;;  %v3608_v57 = vrot.slane %v3577_v48, %v3602_v56  ;;  %v3617_v59 = vrot.slane %v3577_v48, %v3611_v58  ;;  %v482_v61 = vadd.f32 %v3577_v48, %v2778_v51 }
 0x36c   :  { %631 = vbcast.lane.b32.xlu1 %v624_v50, 328  ;;  %627 = vbcast.lane.b32.xlu0 %v624_v50, 320  ;;  %v3627_v62 = vrot.slane %v3577_v48, %v3620_v60  ;;  %v528_v2 = vrot.slane %v3579_v49, %v3546_v41  ;;  %v540_v3 = vrot.slane %v3579_v49, %v3534_v37 }
 0x36d   :  { %v486_v63 = vand.u32 2147483647, %v482_v61  ;;  %v552_v4 = vrot.slane %v3579_v49, %v3540_v39  ;;  %v564_v5 = vrot.slane %v3579_v49, %v3543_v40  ;;  %v576_v7 = vrot.slane %v3579_v49, %v3602_v56 }
 0x36e   :  { %v588_v9 = vrot.slane %v3579_v49, %v3611_v58  ;;  %v600_v10 = vrot.slane %v3579_v49, %v3620_v60  ;;  %v484_v18 = vmax.f32 %v482_v61, 0.0  ;;  %v612_v21 = vrot.slane %v3579_v49, %v3647_v20 }
 0x36f   :  { %v488_v0 = vsub.f32 0.0, %v486_v63  ;;  %v708_v24 = vrot.slane %v3577_v48, %v3647_v20  ;;  %v1290_v63 = vld [vmem:[%s4529_s9 + $0x10] sm:$0xff]  ;;  %v483_v20 = vmax.f32 %v3589_v53, 0.0 }
 0x370   :  { %643 = vbcast.lane.b32.xlu1 %v636_v52, 328  ;;  %639 = vbcast.lane.b32.xlu0 %v636_v52, 320 }
 0x371   :  { %v491_v1 = vmul.f32 1.442695, %v488_v0 }
 0x373   :  { %3129 = vpow2.f32 %v491_v1 }
 0x374   :  { %655 = vbcast.lane.b32.xlu1 %v3593_v54, 328  ;;  %651 = vbcast.lane.b32.xlu0 %v3593_v54, 320 }
 0x378   :  { %667 = vbcast.lane.b32.xlu1 %v3599_v55, 328  ;;  %663 = vbcast.lane.b32.xlu0 %v3599_v55, 320 }
 0x37c   :  { %679 = vbcast.lane.b32.xlu1 %v3608_v57, 328  ;;  %675 = vbcast.lane.b32.xlu0 %v3608_v57, 320 }
 0x37d   :  { %v3130_v6 = vpop.eup %3129 }
 0x37e   :  { %v502_v8 = vadd.f32 1.0, %v3130_v6  ;;  %v505_v11 = vmul.f32 -0.5, %v3130_v6  ;;  %v508_v14 = vand.u32 2147483647, %v3130_v6 }
 0x380   :  { %691 = vbcast.lane.b32.xlu1 %v3617_v59, 328  ;;  %687 = vbcast.lane.b32.xlu0 %v3617_v59, 320  ;;  %3131 = vlog2.f32 %v502_v8  ;;  %v506_v13 = vadd.f32 1.0, %v505_v11  ;;  %vm509_vm8 = vcmp.lt.f32.partialorder %v508_v14, 0.0004427343 }
 0x381   :  { %3133 = vpow2.f32 %v2780_v26 }
 0x382   :  { %v507_v16 = vmul.f32 %v3130_v6, %v506_v13  ;;  %v1293_v6 = vld [vmem:[%s4529_s9 + $0x28] sm:$0xff] }
 0x384   :  { %703 = vbcast.lane.b32.xlu1 %v3627_v62, 328  ;;  %699 = vbcast.lane.b32.xlu0 %v3627_v62, 320 }
 0x388   :  { %803 = vbcast.lane.b32.xlu1 %v624_v50, 344  ;;  %799 = vbcast.lane.b32.xlu0 %v624_v50, 336 }
 0x38a   :  { %v3132_v12 = vpop.eup %3131 }
 0x38b   :  { %v504_v15 = vmul.f32 0.6931472, %v3132_v12  ;;  %v3134_v27 = vpop.eup %3133 }
 0x38c   :  { %811 = vbcast.lane.b32.xlu1 %v636_v52, 344  ;;  %807 = vbcast.lane.b32.xlu0 %v636_v52, 336  ;;  %v1270_v30 = vadd.f32 1.0, %v3134_v27 }
 0x38d   :  { %v510_v17 = vsel %vm509_vm8, %v507_v16, %v504_v15 }
 0x38e   :  { %v512_v19 = vadd.f32 %v510_v17, %v484_v18  ;;  %3135 = vrcp.f32 %v1270_v30 }
 0x390   :  { %815 = vbcast.lane.b32.xlu0 %v3593_v54, 336  ;;  %535 = vbcast.lane.b32.xlu1 %v528_v2, 328  ;;  %v514_v25 = vmul.f32 %v512_v19, %v3571_v46 }
 0x394   :  { %547 = vbcast.lane.b32.xlu1 %v540_v3, 328  ;;  %531 = vbcast.lane.b32.xlu0 %v528_v2, 320 }
 0x398   :  { %559 = vbcast.lane.b32.xlu1 %v552_v4, 328  ;;  %543 = vbcast.lane.b32.xlu0 %v540_v3, 320  ;;  %v3136_v48 = vpop.eup %3135 }
 0x399   :  { %v1276_v49 = vmul.f32 %v3136_v48, %v3554_v47  ;;  %v1288_v47 = vld [vmem:[%s4529_s9] sm:$0xff] }
 0x39c   :  { %571 = vbcast.lane.b32.xlu1 %v564_v5, 328  ;;  %555 = vbcast.lane.b32.xlu0 %v552_v4, 320 }
 0x3a0   :  { %583 = vbcast.lane.b32.xlu1 %v576_v7, 328  ;;  %567 = vbcast.lane.b32.xlu0 %v564_v5, 320 }
 0x3a4   :  { %595 = vbcast.lane.b32.xlu1 %v588_v9, 328  ;;  %579 = vbcast.lane.b32.xlu0 %v576_v7, 320 }
 0x3a8   :  { %607 = vbcast.lane.b32.xlu1 %v600_v10, 328  ;;  %591 = vbcast.lane.b32.xlu0 %v588_v9, 320 }
 0x3ac   :  { %739 = vbcast.lane.b32.xlu1 %v528_v2, 344  ;;  %603 = vbcast.lane.b32.xlu0 %v600_v10, 320 }
 0x3b0   :  { %747 = vbcast.lane.b32.xlu1 %v540_v3, 344  ;;  %735 = vbcast.lane.b32.xlu0 %v528_v2, 336 }
 0x3b4   :  { %755 = vbcast.lane.b32.xlu1 %v552_v4, 344  ;;  %743 = vbcast.lane.b32.xlu0 %v540_v3, 336  ;;  %v1291_v3 = vld [vmem:[%s4529_s9 + $0x18] sm:$0xff] }
 0x3b8   :  { %516 = vrot.lane.b32.xlu1 %v512_v19, %s3344_s15  ;;  %751 = vbcast.lane.b32.xlu0 %v552_v4, 336  ;;  %v3048_v4 = vpack.c.bf16 %v1291_v3, %v1290_v63 }
 0x3bc   :  { %819 = vbcast.lane.b32.xlu1 %v3593_v54, 344  ;;  %615 = vbcast.lane.b32.xlu0 %v612_v21, 320 }
 0x3c0   :  { %619 = vbcast.lane.b32.xlu1 %v612_v21, 328  ;;  %711 = vbcast.lane.b32.xlu0 %v708_v24, 320 }
 0x3c4   :  { %715 = vbcast.lane.b32.xlu1 %v708_v24, 328  ;;  %759 = vbcast.lane.b32.xlu0 %v564_v5, 336 }
 0x3c8   :  { %521 = vrot.lane.b32.xlu1 %v514_v25, %s3344_s15  ;;  %823 = vbcast.lane.b32.xlu0 %v3599_v55, 336 }
 0x3cc   :  { %763 = vbcast.lane.b32.xlu1 %v564_v5, 344  ;;  %767 = vbcast.lane.b32.xlu0 %v576_v7, 336  ;;  %v1292_v5 = vld [vmem:[%s4529_s9 + $0x20] sm:$0xff] }
 0x3d0   :  { %827 = vbcast.lane.b32.xlu1 %v3599_v55, 344  ;;  %831 = vbcast.lane.b32.xlu0 %v3608_v57, 336  ;;  %v485_v55 = vand.u32 2147483647, %v3589_v53  ;;  %v2781_v53 = vmul.f32 -1.442695, %v3549_v43 }
 0x3d2   :  { %v487_v61 = vsub.f32 0.0, %v485_v55 }
 0x3d4   :  { %771 = vbcast.lane.b32.xlu1 %v576_v7, 344  ;;  %775 = vbcast.lane.b32.xlu0 %v588_v9, 336  ;;  %v489_v7 = vmul.f32 1.442695, %v487_v61  ;;  %v3345_v61 = vmov 1966171168  }
 0x3d6   :  { %3137 = vpow2.f32 %v489_v7 }
 0x3d8   :  { %835 = vbcast.lane.b32.xlu1 %v3608_v57, 344  ;;  %839 = vbcast.lane.b32.xlu0 %v3617_v59, 336 }
 0x3dc   :  { %779 = vbcast.lane.b32.xlu1 %v588_v9, 344  ;;  %783 = vbcast.lane.b32.xlu0 %v600_v10, 336 }
 0x3de   :  { %v3663_v28 = vpop.permute.xlu1 %631  ;;  %v3665_v29 = vpop.permute.xlu0 %627 }
 0x3e0   :  { %843 = vbcast.lane.b32.xlu1 %v3617_v59, 344  ;;  %847 = vbcast.lane.b32.xlu0 %v3627_v62, 336  ;;  %v3138_v15 = vpop.eup %3137 }
 0x3e1   :  { %v493_v18 = vadd.f32 1.0, %v3138_v15  ;;  %v496_v30 = vmul.f32 -0.5, %v3138_v15  ;;  %v499_v63 = vand.u32 2147483647, %v3138_v15 }
 0x3e2   :  { %v3669_v31 = vpop.permute.xlu1 %643  ;;  %v3671_v32 = vpop.permute.xlu0 %639 }
 0x3e3   :  { %3139 = vlog2.f32 %v493_v18  ;;  %vm500_vm9 = vcmp.lt.f32.partialorder %v499_v63, 0.0004427343 }
 0x3e4   :  { %787 = vbcast.lane.b32.xlu1 %v600_v10, 344  ;;  %791 = vbcast.lane.b32.xlu0 %v612_v21, 336  ;;  %v3052_v10 = vpack.c.bf16 %v1293_v6, %v1292_v5  ;;  %3141 = vpow2.f32 %v2781_v53 }
 0x3e6   :  { %v3673_v33 = vpop.permute.xlu1 %655  ;;  %v3675_v34 = vpop.permute.xlu0 %651 }
 0x3e8   :  { %851 = vbcast.lane.b32.xlu1 %v3627_v62, 344  ;;  %855 = vbcast.lane.b32.xlu0 %v708_v24, 336  ;;  %v1289_v62 = vld [vmem:[%s4529_s9 + $0x8] sm:$0xff] }
 0x3e9   :  { %v3044_v2 = vpack.c.bf16 %v1289_v62, %v1288_v47  ;;  %v880_v47 = vunpack.c.l.s4 %v3345_v61  ;;  %v497_v62 = vadd.f32 1.0, %v496_v30 }
 0x3ea   :  { %v3678_v35 = vpop.permute.xlu1 %667  ;;  %v3680_v38 = vpop.permute.xlu0 %663 }
 0x3eb   :  { %3045 = vmatprep.subr.bf16.mxu1 %v3044_v2  ;;  %v881_v5 = vunpack.c.0.s8 %v880_v47  ;;  %v498_v6 = vmul.f32 %v3138_v15, %v497_v62 }
 0x3ec   :  { %795 = vbcast.lane.b32.xlu1 %v612_v21, 344  ;;  %3047 = vmatpush3.bf16.msra.mxu1 %v3044_v2 }
 0x3ed   :  { %3049 = vmatprep.subr.bf16.mxu1 %v3048_v4  ;;  %v3140_v55 = vpop.eup %3139  ;;  %v3755_v60 = vsub.s32 %v881_v5, %v3531_v36 }
 0x3ee   :  { %v3682_v42 = vpop.permute.xlu1 %679  ;;  %v3684_v44 = vpop.permute.xlu0 %675 }
 0x3f0   :  { %859 = vbcast.lane.b32.xlu1 %v708_v24, 344  ;;  %3051 = vmatpush3.bf16.msra.mxu1 %v3048_v4  ;;  %v495_v4 = vmul.f32 0.6931472, %v3140_v55 }
 0x3f1   :  { %3053 = vmatprep.subr.bf16.mxu1 %v3052_v10 }
 0x3f2   :  { %v3687_v50 = vpop.permute.xlu1 %691  ;;  %v3689_v51 = vpop.permute.xlu0 %687  ;;  %v501_v18 = vsel %vm500_vm9, %v498_v6, %v495_v4 }
 0x3f3   :  { %v511_v30 = vadd.f32 %v501_v18, %v483_v20  ;;  %v3768_v20 = vld [vmem:[#allocation2] sm:$0xff]  ;;  %v3772_v18 = vld [vmem:[#allocation2 + $0x8] sm:$0xff] }
 0x3f4   :  { %1280 = vrot.lane.b32.xlu1 %v1276_v49, %s3344_s15  ;;  %3055 = vmatpush3.bf16.msra.mxu1 %v3052_v10 }
 0x3f6   :  { %v3692_v52 = vpop.permute.xlu1 %703  ;;  %v3694_v54 = vpop.permute.xlu0 %699 }
 0x3fa   :  { %v3697_v57 = vpop.permute.xlu1 %803  ;;  %v3699_v59 = vpop.permute.xlu0 %799 }
 0x3fe   :  { %v3710_v0 = vpop.permute.xlu1 %811  ;;  %v3712_v1 = vpop.permute.xlu0 %807 }
 0x402   :  { %v3723_v8 = vpop.permute.xlu0 %815  ;;  %v3725_v9 = vpop.permute.xlu1 %535 }
 0x406   :  { %v548_v11 = vpop.permute.xlu1 %547  ;;  %v3727_v12 = vpop.permute.xlu0 %531 }
 0x407   :  { %v3788_v37 = vsel %vm392_vm7, %v548_v11, %v3669_v31 }
 0x40a   :  { %v560_v13 = vpop.permute.xlu1 %559  ;;  %v544_v14 = vpop.permute.xlu0 %543 }
 0x40e   :  { %v572_v16 = vpop.permute.xlu1 %571  ;;  %v556_v17 = vpop.permute.xlu0 %555 }
 0x40f   :  { %v3806_v31 = vsel %vm392_vm7, %v572_v16, %v3678_v35 }
 0x412   :  { %v3729_v19 = vpop.permute.xlu1 %583  ;;  %v3731_v21 = vpop.permute.xlu0 %567 }
 0x416   :  { %v3733_v24 = vpop.permute.xlu1 %595  ;;  %v3735_v25 = vpop.permute.xlu0 %579 }
 0x41a   :  { %v3737_v26 = vpop.permute.xlu1 %607  ;;  %v3739_v27 = vpop.permute.xlu0 %591 }
 0x41e   :  { %v3741_v48 = vpop.permute.xlu1 %739  ;;  %v3743_v49 = vpop.permute.xlu0 %603 }
 0x422   :  { %v3745_v2 = vpop.permute.xlu1 %747  ;;  %v3747_v3 = vpop.permute.xlu0 %735 }
 0x426   :  { %v3749_v7 = vpop.permute.xlu1 %755  ;;  %v3751_v10 = vpop.permute.xlu0 %743 }
 0x42a   :  { %v517_v61 = vpop.permute.xlu1 %516  ;;  %v3757_v58 = vpop.permute.xlu0 %751 }
 0x42b   :  { %v519_v56 = vsel %vm392_vm7, %v511_v30, %v517_v61 }
 0x42c   :  { %v885_v55 = vrot.slane %v519_v56, %v3755_v60  ;;  %v878_v15 = vcombine.high %v519_v56, %v519_v56 }
 0x42e   :  { %v893_v47 = vcombine.high %v885_v55, %v885_v55  ;;  %v901_v62 = vrot.slane %v885_v55, %v3755_v60  ;;  %v3762_v63 = vpop.permute.xlu1 %819  ;;  %v3764_v4 = vpop.permute.xlu0 %615  ;;  %v892_v5 = vrot.slane %v878_v15, %v3755_v60  ;;  %v3784_v15 = vsel %vm392_vm7, %v3725_v9, %v3663_v28 }
 0x42f   :  { %v3802_v28 = vsel %vm392_vm7, %v544_v14, %v3671_v32  ;;  %v3821_v32 = vsel %vm392_vm7, %v3729_v19, %v3682_v42  ;;  %v3839_v42 = vsel %vm392_vm7, %v3735_v25, %v3684_v44  ;;  %v3869_v25 = vsel %vm392_vm7, %v3745_v2, %v3710_v0 }
 0x430   :  { %v915_v36 = vrot.slane %v893_v47, %v3755_v60  ;;  %v932_v6 = vrot.slane %v901_v62, %v3546_v41  ;;  %v923_v55 = vcombine.high %v901_v62, %v901_v62  ;;  %v513_v47 = vmul.f32 %v511_v30, %v3569_v45 }
 0x431   :  { %v894_v23 = vcombine.high %v892_v5, %v892_v5  ;;  %v3794_v62 = vsel %vm392_vm7, %v3727_v12, %v3665_v29  ;;  %v3798_v30 = vsel %vm392_vm7, %v560_v13, %v3673_v33  ;;  %v3814_v29 = vsel %vm392_vm7, %v556_v17, %v3675_v34 }
 0x432   :  { %v3774_v56 = vpop.permute.xlu1 %619  ;;  %v3776_v61 = vpop.permute.xlu0 %711  ;;  %v936_v40 = vrot.slane %v915_v36, %v3546_v41  ;;  %v969_v39 = vmul.f32 %v932_v6, %v3768_v20  ;;  %v970_v22 = vmul.f32 %v932_v6, %v3772_v18  ;;  %v925_v12 = vcombine.high %v915_v36, %v915_v36 }
 0x433   :  { %v940_v33 = vrot.slane %v923_v55, %v3546_v41  ;;  %v908_v35 = vrot.slane %v892_v5, %v3755_v60  ;;  %v3828_v34 = vsel %vm392_vm7, %v3731_v21, %v3680_v38  ;;  %v3833_v17 = vsel %vm392_vm7, %v3733_v24, %v3687_v50 }
 0x434   :  { %v971_v13 = vmul.f32 %v936_v40, %v3768_v20  ;;  %v972_v14 = vmul.f32 %v936_v40, %v3772_v18  ;;  %v985_v16 = vmul.f32 1.442695, %v969_v39  ;;  %v922_v53 = vrot.slane %v894_v23, %v3755_v60 }
 0x435   :  { %v987_v36 = vmul.f32 1.442695, %v970_v22  ;;  %v3844_v39 = vsel %vm392_vm7, %v3737_v26, %v3692_v52  ;;  %v3849_v40 = vsel %vm392_vm7, %v3739_v27, %v3689_v51  ;;  %v944_v22 = vrot.slane %v925_v12, %v3546_v41  ;;  %v3876_v27 = vpop.eup %3141 }
 0x436   :  { %v3808_v9 = vpop.permute.xlu1 %715  ;;  %v3810_v11 = vpop.permute.xlu0 %759  ;;  %3143 = vpow2.f32 %v985_v16  ;;  %v973_v23 = vmul.f32 %v940_v33, %v3768_v20  ;;  %v989_v44 = vmul.f32 1.442695, %v971_v13  ;;  %v3858_v52 = vsel %vm392_vm7, %v3741_v48, %v3697_v57  ;;  %4567 = vst [vmem:[#allocation24_spill] sm:$0xff] %v3876_v27 }
 0x437   :  { %3145 = vpow2.f32 %v987_v36  ;;  %v924_v19 = vcombine.high %v908_v35, %v908_v35  ;;  %v974_v21 = vmul.f32 %v940_v33, %v3772_v18  ;;  %v991_v51 = vmul.f32 1.442695, %v972_v14 }
 0x438   :  { %v3864_v24 = vsel %vm392_vm7, %v3743_v49, %v3694_v54  ;;  %v3874_v26 = vsel %vm392_vm7, %v3747_v3, %v3699_v59  ;;  %v926_v57 = vcombine.high %v922_v53, %v922_v53  ;;  %v3881_v48 = vsel %vm392_vm7, %v3751_v10, %v3712_v1 }
 0x439   :  { %v948_v54 = vrot.slane %v908_v35, %v3546_v41  ;;  %v952_v49 = vrot.slane %v922_v53, %v3546_v41  ;;  %v975_v59 = vmul.f32 %v944_v22, %v3768_v20  ;;  %3147 = vpow2.f32 %v989_v44 }
 0x43a   :  { %v522_v38 = vpop.permute.xlu1 %521  ;;  %v3851_v50 = vpop.permute.xlu0 %823  ;;  %v993_v3 = vmul.f32 1.442695, %v973_v23  ;;  %v956_v55 = vrot.slane %v924_v19, %v3546_v41  ;;  %v976_v1 = vmul.f32 %v944_v22, %v3772_v18  ;;  %3149 = vpow2.f32 %v991_v51 }
 0x43b   :  { %v524_v0 = vsel %vm392_vm7, %v513_v47, %v522_v38  ;;  %v995_v10 = vmul.f32 1.442695, %v974_v21  ;;  %v960_v12 = vrot.slane %v926_v57, %v3546_v41  ;;  %v3898_v47 = vsel %vm392_vm7, %v3757_v58, %v3723_v8 }
 0x43c   :  { %v1025_v6 = vrot.slane %v524_v0, %v3755_v60  ;;  %v977_v35 = vmul.f32 %v948_v54, %v3768_v20  ;;  %v978_v14 = vmul.f32 %v948_v54, %v3772_v18  ;;  %v979_v16 = vmul.f32 %v952_v49, %v3768_v20 }
 0x43d   :  { %v3907_v53 = vsel %vm392_vm7, %v3749_v7, %v3762_v63  ;;  %v980_v58 = vmul.f32 %v952_v49, %v3772_v18  ;;  %3151 = vpow2.f32 %v993_v3  ;;  %v997_v8 = vmul.f32 1.442695, %v975_v59 }
 0x43e   :  { %v3886_v2 = vpop.permute.xlu1 %763  ;;  %v3888_v5 = vpop.permute.xlu0 %767  ;;  %v1033_v33 = vcombine.high %v1025_v6, %v1025_v6  ;;  %v1041_v13 = vrot.slane %v1025_v6, %v3755_v60  ;;  %v981_v44 = vmul.f32 %v956_v55, %v3768_v20  ;;  %3153 = vpow2.f32 %v995_v10 }
 0x43f   :  { %v999_v19 = vmul.f32 1.442695, %v976_v1  ;;  %v982_v7 = vmul.f32 %v956_v55, %v3772_v18  ;;  %v983_v63 = vmul.f32 %v960_v12, %v3768_v20  ;;  %v984_v57 = vmul.f32 %v960_v12, %v3772_v18 }
 0x440   :  { %v1055_v22 = vrot.slane %v1033_v33, %v3755_v60  ;;  %v3144_v23 = vpop.eup %3143  ;;  %v1070_v21 = vrot.slane %v1041_v13, %v3546_v41  ;;  %v3923_v59 = vsel %vm392_vm7, %v3764_v4, %v3776_v61  ;;  %v1018_v3 = vcombine.high %v524_v0, %v524_v0 }
 0x441   :  { %v3146_v51 = vpop.eup %3145  ;;  %v1123_v54 = vmul.f32 0.0, %v3144_v23  ;;  %4568 = vst [vmem:[#allocation25_spill] sm:$0xff] %v3923_v59  ;;  %v1063_v6 = vcombine.high %v1041_v13, %v1041_v13  ;;  %3155 = vpow2.f32 %v997_v8  ;;  %v1001_v12 = vmul.f32 1.442695, %v977_v35 }
 0x442   :  { %v3909_v36 = vpop.permute.xlu1 %827  ;;  %v3911_v38 = vpop.permute.xlu0 %831  ;;  %v1124_v49 = vmul.f32 0.0, %v3146_v51  ;;  %v1074_v55 = vrot.slane %v1055_v22, %v3546_v41  ;;  %v1107_v20 = vmul.f32 %v1070_v21, %v3794_v62  ;;  %v1108_v18 = vmul.f32 %v1070_v21, %v3784_v15 }
 0x443   :  { %3157 = vpow2.f32 %v999_v19  ;;  %v1003_v33 = vmul.f32 1.442695, %v978_v14  ;;  %v1005_v23 = vmul.f32 1.442695, %v979_v16  ;;  %v3148_v51 = vpop.eup %3147  ;;  %v1007_v4 = vmul.f32 1.442695, %v980_v58 }
 0x444   :  { %v1009_v61 = vmul.f32 1.442695, %v981_v44  ;;  %v1125_v0 = vadd.f32 %v1123_v54, %v1107_v20  ;;  %v1126_v13 = vadd.f32 %v1124_v49, %v1108_v18  ;;  %v3150_v46 = vpop.eup %3149  ;;  %v1011_v43 = vmul.f32 1.442695, %v982_v7 }
 0x445   :  { %v1032_v45 = vrot.slane %v1018_v3, %v3755_v60  ;;  %v1065_v8 = vcombine.high %v1055_v22, %v1055_v22  ;;  %v1078_v27 = vrot.slane %v1063_v6, %v3546_v41  ;;  %v1109_v15 = vmul.f32 %v1074_v55, %v3802_v28 }
 0x446   :  { %v3925_v10 = vpop.permute.xlu1 %771  ;;  %v3927_v1 = vpop.permute.xlu0 %775  ;;  %v1110_v62 = vmul.f32 %v1074_v55, %v3788_v37  ;;  %v1127_v35 = vmul.f32 %v3148_v51, %v1125_v0  ;;  %v1128_v14 = vmul.f32 %v3150_v46, %v1126_v13  ;;  %3159 = vpow2.f32 %v1001_v12 }
 0x447   :  { %v1013_v16 = vmul.f32 1.442695, %v983_v63  ;;  %v1015_v58 = vmul.f32 1.442695, %v984_v57  ;;  %v3941_v44 = vsel %vm392_vm7, %v3774_v56, %v3808_v9  ;;  %v3152_v22 = vpop.eup %3151  ;;  %3161 = vpow2.f32 %v1003_v33 }
 0x448   :  { %v867_v28 = vsel %vm392_vm7, %v3810_v11, %v3851_v50  ;;  %v1129_v21 = vadd.f32 %v1127_v35, %v1109_v15  ;;  %v1130_v37 = vadd.f32 %v1128_v14, %v1110_v62  ;;  %v3154_v7 = vpop.eup %3153  ;;  %3163 = vpow2.f32 %v1005_v23 }
 0x449   :  { %v1034_v46 = vcombine.high %v1032_v45, %v1032_v45  ;;  %v1048_v63 = vrot.slane %v1032_v45, %v3755_v60  ;;  %v1082_v57 = vrot.slane %v1065_v8, %v3546_v41  ;;  %v1111_v56 = vmul.f32 %v1078_v27, %v3814_v29 }
 0x44a   :  { %v3934_v59 = vpop.permute.xlu1 %835  ;;  %v3943_v19 = vpop.permute.xlu0 %839  ;;  %v1131_v9 = vmul.f32 %v3152_v22, %v1129_v21  ;;  %v1112_v49 = vmul.f32 %v1078_v27, %v3798_v30  ;;  %v1132_v3 = vmul.f32 %v3154_v7, %v1130_v37  ;;  %3165 = vpow2.f32 %v1007_v4 }
 0x44b   :  { %v1155_v11 = vmul.f32 %v1125_v0, %v3874_v26  ;;  %v1156_v50 = vmul.f32 %v1126_v13, %v3858_v52  ;;  %v868_v6 = vsel %vm392_vm7, %v3886_v2, %v3909_v36  ;;  %v3156_v45 = vpop.eup %3155  ;;  %v1157_v20 = vmul.f32 %v1129_v21, %v3881_v48 }
 0x44c   :  { %v1133_v55 = vadd.f32 %v1131_v9, %v1111_v56  ;;  %v1134_v18 = vadd.f32 %v1132_v3, %v1112_v49  ;;  %v1158_v29 = vmul.f32 %v1130_v37, %v3869_v25  ;;  %3167 = vpow2.f32 %v1009_v61 }
 0x44d   :  { %v3158_v12 = vpop.eup %3157  ;;  %v1062_v30 = vrot.slane %v1034_v46, %v3755_v60  ;;  %v1113_v27 = vmul.f32 %v1082_v57, %v3828_v34  ;;  %v1086_v26 = vrot.slane %v1048_v63, %v3546_v41  ;;  %v1114_v36 = vmul.f32 %v1082_v57, %v3806_v31 }
 0x44e   :  { %v3950_v54 = vpop.permute.xlu1 %779  ;;  %v3964_v52 = vpop.permute.xlu0 %783  ;;  %v1135_v23 = vmul.f32 %v3156_v45, %v1133_v55  ;;  %v1159_v2 = vmul.f32 %v1133_v55, %v3898_v47  ;;  %v1136_v48 = vmul.f32 %v3158_v12, %v1134_v18  ;;  %3169 = vpow2.f32 %v1011_v43 }
 0x44f   :  { %v1064_v51 = vcombine.high %v1048_v63, %v1048_v63  ;;  %v1171_v25 = vadd.f32 %v1156_v50, %v1155_v11  ;;  %v1160_v4 = vmul.f32 %v1134_v18, %v3907_v53  ;;  %3171 = vpow2.f32 %v1013_v16 }
 0x450   :  { %v1137_v61 = vadd.f32 %v1135_v23, %v1113_v27  ;;  %v1138_v0 = vadd.f32 %v1136_v48, %v1114_v36  ;;  %v1178_v34 = vadd.f32 %v1158_v29, %v1157_v20  ;;  %v3160_v13 = vpop.eup %3159  ;;  %3173 = vpow2.f32 %v1015_v58 }
 0x451   :  { %v869_v8 = vsel %vm392_vm7, %v3888_v5, %v3911_v38  ;;  %v1115_v47 = vmul.f32 %v1086_v26, %v3839_v42  ;;  %v1090_v31 = vrot.slane %v1062_v30, %v3546_v41  ;;  %v3162_v43 = vpop.eup %3161  ;;  %v1185_v14 = vadd.f32 %v1160_v4, %v1159_v2 }
 0x452   :  { %v844_v33 = vpop.permute.xlu1 %843  ;;  %v1161_v62 = vmul.f32 %v1137_v61, %v867_v28  ;;  %v1162_v35 = vmul.f32 %v1138_v0, %v868_v6  ;;  %v1139_v53 = vmul.f32 %v3160_v13, %v1137_v61  ;;  %v3164_v16 = vpop.eup %3163  ;;  %v1172_v22 = vrot.slane %v1171_v25, 4 }
 0x453   :  { %v1116_v21 = vmul.f32 %v1086_v26, %v3821_v32  ;;  %v1140_v37 = vmul.f32 %v3162_v43, %v1138_v0  ;;  %v848_v58 = vpop.permute.xlu0 %847  ;;  %v1094_v7 = vrot.slane %v1064_v51, %v3546_v41  ;;  %v1179_v46 = vrot.slane %v1178_v34, 4 }
 0x454   :  { %v1192_v5 = vadd.f32 %v1162_v35, %v1161_v62  ;;  %v1141_v38 = vadd.f32 %v1139_v53, %v1115_v47  ;;  %v1066_v42 = vcombine.high %v1062_v30, %v1062_v30  ;;  %v3166_v63 = vpop.eup %3165  ;;  %v870_v28 = vsel %vm392_vm7, %v3925_v10, %v3934_v59 }
 0x455   :  { %v1142_v57 = vadd.f32 %v1140_v37, %v1116_v21  ;;  %v871_v56 = vsel %vm392_vm7, %v3927_v1, %v3943_v19  ;;  %v1117_v32 = vmul.f32 %v1090_v31, %v3849_v40  ;;  %v1186_v49 = vrot.slane %v1185_v14, 4 }
 0x456   :  { %v788_v15 = vpop.permute.xlu1 %787  ;;  %v1193_v3 = vrot.slane %v1192_v5, 4  ;;  %v1163_v11 = vmul.f32 %v1141_v38, %v869_v8  ;;  %v1143_v50 = vmul.f32 %v3164_v16, %v1141_v38  ;;  %v3168_v6 = vpop.eup %3167  ;;  %v1173_v45 = vadd.f32 %v1172_v22, %v1171_v25 }
 0x457   :  { %v1164_v55 = vmul.f32 %v1142_v57, %v870_v28  ;;  %v1118_v20 = vmul.f32 %v1090_v31, %v3833_v17  ;;  %v1144_v18 = vmul.f32 %v3166_v63, %v1142_v57  ;;  %v1180_v29 = vadd.f32 %v1179_v46, %v1178_v34  ;;  %v792_v27 = vpop.permute.xlu0 %791 }
 0x458   :  { %v1145_v59 = vadd.f32 %v1143_v50, %v1117_v32  ;;  %v1119_v10 = vmul.f32 %v1094_v7, %v3864_v24  ;;  %v1098_v12 = vrot.slane %v1066_v42, %v3546_v41  ;;  %v3170_v1 = vpop.eup %3169  ;;  %v872_v40 = vsel %vm392_vm7, %v3950_v54, %v844_v33  ;;  %v4569_v33 = vld [vmem:[#allocation25_spill] sm:$0xff]  ;;  %v4570_v50 = vld [vmem:[#allocation24_spill] sm:$0xff] }
 0x459   :  { %v1199_v19 = vadd.f32 %v1164_v55, %v1163_v11  ;;  %v1146_v30 = vadd.f32 %v1144_v18, %v1118_v20  ;;  %v1120_v26 = vmul.f32 %v1094_v7, %v3844_v39  ;;  %v3172_v2 = vpop.eup %3171  ;;  %v1187_v36 = vadd.f32 %v1186_v49, %v1185_v14 }
 0x45a   :  { %v852_v9 = vpop.permute.xlu1 %851  ;;  %v1194_v17 = vadd.f32 %v1193_v3, %v1192_v5  ;;  %v1165_v48 = vmul.f32 %v1145_v59, %v871_v56  ;;  %v1147_v51 = vmul.f32 %v3168_v6, %v1145_v59  ;;  %v3174_v25 = vpop.eup %3173  ;;  %v1174_v4 = vrot.slane %v1173_v45, 2 }
 0x45b   :  { %v1200_v24 = vrot.slane %v1199_v19, 4  ;;  %v1166_v61 = vmul.f32 %v1146_v30, %v872_v40  ;;  %v1148_v0 = vmul.f32 %v3170_v1, %v1146_v30  ;;  %v1181_v34 = vrot.slane %v1180_v29, 2  ;;  %v856_v37 = vpop.permute.xlu0 %855  ;;  %v1295_v40 = vld [vmem:[%s4529_s9 + $0x38] sm:$0xff] }
 0x45c   :  { %v873_v13 = vsel %vm392_vm7, %v3964_v52, %v848_v58  ;;  %v1149_v54 = vadd.f32 %v1147_v51, %v1119_v10  ;;  %v1121_v8 = vmul.f32 %v1098_v12, %v4569_v33  ;;  %v874_v31 = vsel %vm392_vm7, %v788_v15, %v852_v9  ;;  %v2779_v33 = vld [vmem:[%s4528_s8] ss:$0 sm:$0xff] }
 0x45d   :  { %v1201_v47 = vadd.f32 %v1200_v24, %v1199_v19  ;;  %v1206_v39 = vadd.f32 %v1166_v61, %v1165_v48  ;;  %v1150_v43 = vadd.f32 %v1148_v0, %v1120_v26  ;;  %v1188_v35 = vrot.slane %v1187_v36, 2  ;;  %v1294_v19 = vld [vmem:[%s4529_s9 + $0x30] sm:$0xff] }
 0x45e   :  { %v796_v23 = vpop.permute.xlu1 %795  ;;  %v1195_v14 = vrot.slane %v1194_v17, 2  ;;  %v1167_v53 = vmul.f32 %v1149_v54, %v873_v13  ;;  %v1151_v16 = vmul.f32 %v3172_v2, %v1149_v54  ;;  %v1122_v7 = vmul.f32 %v1098_v12, %v3941_v44 }
 0x45f   :  { %v1207_v22 = vrot.slane %v1206_v39, 4  ;;  %v1168_v21 = vmul.f32 %v1150_v43, %v874_v31  ;;  %v1152_v46 = vmul.f32 %v3174_v25, %v1150_v43  ;;  %v1202_v52 = vrot.slane %v1201_v47, 2 }
 0x460   :  { %v1153_v58 = vadd.f32 %v1151_v16, %v1121_v8  ;;  %v1182_v38 = vadd.f32 %v1181_v34, %v1180_v29  ;;  %v1175_v28 = vadd.f32 %v1174_v4, %v1173_v45  ;;  %v1189_v57 = vadd.f32 %v1188_v35, %v1187_v36  ;;  %v4571_v35 = vld [vmem:[#allocation18_spill] sm:$0xff] }
 0x461   :  { %v1208_v42 = vadd.f32 %v1207_v22, %v1206_v39  ;;  %v1213_v63 = vadd.f32 %v1168_v21, %v1167_v53  ;;  %v1154_v15 = vadd.f32 %v1152_v46, %v1122_v7  ;;  %v1196_v56 = vadd.f32 %v1195_v14, %v1194_v17 }
 0x462   :  { %v860_v62 = vpop.permute.xlu1 %859  ;;  %v875_v32 = vsel %vm392_vm7, %v792_v27, %v856_v37  ;;  %v1271_v44 = vadd.f32 1.0, %v4570_v50  ;;  %v1203_v6 = vadd.f32 %v1202_v52, %v1201_v47  ;;  %v1183_v55 = vrot.slane %v1182_v38, 1  ;;  %v4572_v37 = vld [vmem:[#allocation17_spill] sm:$0xff] }
 0x463   :  { %v876_v5 = vsel %vm392_vm7, %v796_v23, %v860_v62  ;;  %v1209_v9 = vrot.slane %v1208_v42, 2  ;;  %v1214_v49 = vrot.slane %v1213_v63, 4  ;;  %v1169_v3 = vmul.f32 %v1153_v58, %v875_v32  ;;  %v4573_v58 = vld [vmem:[#allocation19_spill] sm:$0xff]  ;;  %v4575_v32 = vld [vmem:[#allocation13_spill] sm:$0xff] }
 0x464   :  { %v1170_v11 = vmul.f32 %v1154_v15, %v876_v5  ;;  %v1190_v29 = vrot.slane %v1189_v57, 1  ;;  %v1176_v10 = vrot.slane %v1175_v28, 1  ;;  %v1197_v12 = vrot.slane %v1196_v56, 1 }
 0x465   :  { %v1210_v20 = vadd.f32 %v1209_v9, %v1208_v42  ;;  %v1215_v18 = vadd.f32 %v1214_v49, %v1213_v63  ;;  %3175 = vrcp.f32 %v1271_v44  ;;  %v1204_v30 = vrot.slane %v1203_v6, 1 }
 0x466   :  { %v1220_v59 = vadd.f32 %v1170_v11, %v1169_v3  ;;  %v3056_v27 = vpack.c.bf16 %v1295_v40, %v1294_v19  ;;  %v1184_v36 = vadd.f32 %v1183_v55, %v1182_v38  ;;  %v1191_v17 = vadd.f32 %v1190_v29, %v1189_v57  ;;  %v1281_v21 = vpop.permute.xlu1 %1280  ;;  %v2789_v40 = vld [vmem:[%s4522_s2 + $0x38] sm:$0xff] }
 0x467   :  { %v1216_v1 = vrot.slane %v1215_v18, 2  ;;  %v1211_v26 = vrot.slane %v1210_v20, 1  ;;  %v1177_v48 = vadd.f32 %v1176_v10, %v1175_v28  ;;  %v1198_v51 = vadd.f32 %v1197_v12, %v1196_v56  ;;  %v4574_v28 = vld [vmem:[#allocation12_spill] sm:$0xff]  ;;  %v2786_v12 = vld [vmem:[%s4522_s2 + $0x20] sm:$0xff] }
 0x468   :  { %v1221_v45 = vrot.slane %v1220_v59, 4  ;;  %3057 = vmatprep.subr.bf16.mxu1 %v3056_v27  ;;  %v1205_v24 = vadd.f32 %v1204_v30, %v1203_v6  ;;  %v1260_v14 = vmul.f32 %v2779_v33, %v4571_v35  ;;  %v1261_v5 = vmul.f32 %v2779_v33, %v4573_v58  ;;  %v2797_v33 = vld [vmem:[%s4525_s5 + $0x40] sm:$0xff]  ;;  %v2802_v35 = vld [vmem:[%s4525_s5 + $0x68] sm:$0xff] }
 0x469   :  { %v1217_v23 = vadd.f32 %v1216_v1, %v1215_v18  ;;  %3059 = vmatpush3.bf16.msra.mxu1 %v3056_v27  ;;  %v1212_v61 = vadd.f32 %v1211_v26, %v1210_v20  ;;  %v1236_v34 = vsel %vm1235_vm10, %v1184_v36, %v1177_v48  ;;  %v2787_v1 = vld [vmem:[%s4522_s2 + $0x28] sm:$0xff] }
 0x46a   :  { %v1222_v2 = vadd.f32 %v1221_v45, %v1220_v59  ;;  %v1238_v54 = vsel %vm1237_vm11, %v1191_v17, %v1236_v34  ;;  %v2788_v45 = vld [vmem:[%s4522_s2 + $0x30] sm:$0xff]  ;;  %v3060_v19 = vpack.c.bf16 %v2787_v1, %v2786_v12  ;;  %s3346_s2 = smov [#allocation8]  }
 0x46b   :  { %v1218_v25 = vrot.slane %v1217_v23, 1  ;;  %v1240_v47 = vsel %vm1239_vm12, %v1198_v51, %v1238_v54  ;;  %v3064_v30 = vpack.c.bf16 %v2789_v40, %v2788_v45  ;;  %v2784_v51 = vld [vmem:[#allocation5] ss:$0 sm:$0xff]  ;;  %s2754_s20 = sshll.u32 %s3346_s2, 4  ;;  %s2755_s20 = int_to_ptr.vmem [resolvable:$true] %s2754_s20 }
 0x46c   :  { %v1223_v4 = vrot.slane %v1222_v2, 2  ;;  %v1242_v39 = vsel %vm1241_vm13, %v1205_v24, %v1240_v47  ;;  %3061 = vmatprep.subr.bf16.mxu0 %v3060_v19  ;;  %v2799_v47 = vld [vmem:[%s4525_s5 + $0x50] sm:$0xff]  ;;  %s3307_s21 = scalar_lea.vmem %s2755_s20, 256  ;;  %p3312_p11 = scmp.lt.s32.totalorder %s2755_s20, %s2755_s20 }
 0x46d   :  { %v1219_v13 = vadd.f32 %v1218_v25, %v1217_v23  ;;  %v1244_v43 = vsel %vm1243_vm14, %v1212_v61, %v1242_v39  ;;  %3063 = vmatpush3.bf16.msra.mxu0 %v3060_v19  ;;  %p3308_p10 = scmp.ne.s32.totalorder %s2755_s20, %s3307_s21  ;;  %p3313_p12 = scmp.lt.s32.totalorder %s3307_s21, %s3307_s21 }
 0x46e   :  { %v1224_v0 = vadd.f32 %v1223_v4, %v1222_v2  ;;  %3065 = vmatprep.subr.bf16.mxu0 %v3064_v30 }
 0x46f   :  { %v3176_v62 = vpop.eup %3175  ;;  %v1246_v53 = vsel %vm1245_vm15, %v1219_v13, %v1244_v43  ;;  %p3314_p13 = por %p3313_p12, %p3312_p11 }
 0x470   :  { %v1225_v8 = vrot.slane %v1224_v0, 1  ;;  %v1277_v7 = vmul.f32 %v3176_v62, %v4572_v37  ;;  %v2801_v62 = vld [vmem:[%s4525_s5 + $0x60] sm:$0xff] }
 0x471   :  { %3067 = vmatpush3.bf16.msra.mxu0 %v3064_v30  ;;  %v4577_v37 = vld [vmem:[#allocation14_spill] sm:$0xff]  ;;  %p3315_p0 = pnand %p3314_p13, %p3308_p10 }
 0x472   :  { %v1226_v31 = vadd.f32 %v1225_v8, %v1224_v0  ;;  %v2785_v0 = vld [vmem:[#allocation7] ss:$0 sm:$0xff]  ;;  %v2798_v8 = vld [vmem:[%s4525_s5 + $0x48] sm:$0xff] }
 0x473   :  { %v3068_v39 = vpack.c.bf16 %v2798_v8, %v2797_v33 }
 0x474   :  { %v1248_v16 = vsel %vm1247_vm1, %v1226_v31, %v1246_v53  ;;  %v2800_v31 = vld [vmem:[%s4525_s5 + $0x58] sm:$0xff]  ;;  %v2803_v53 = vld [vmem:[%s4525_s5 + $0x70] sm:$0xff] }
 0x475   :  { %v1262_v22 = vadd.f32 %v1260_v14, %v1248_v16  ;;  %1250 = vrot.lane.b32.xlu0 %v1248_v16, %s3344_s15  ;;  %v3072_v43 = vpack.c.bf16 %v2800_v31, %v2799_v47  ;;  %3069 = vmatprep.subr.bf16.mxu1 %v3068_v39  ;;  %v3076_v14 = vpack.c.bf16 %v2802_v35, %v2801_v62  ;;  %v2804_v16 = vld [vmem:[%s4525_s5 + $0x78] sm:$0xff] }
 0x477   :  { %v1286_v46 = vmul.f32 %v1281_v21, %v1262_v22  ;;  %v3080_v22 = vpack.c.bf16 %v2804_v16, %v2803_v53  ;;  %v2792_v21 = vld [vmem:[%s4523_s3 + $0x4] sm:$0xf] }
 0x479   :  { %1282 = vrot.lane.b32.xlu0 %v1277_v7, %s3344_s15  ;;  %2949 = vmatprep.mubr.msk.f32.mxu1 %vm392_vm7, %v1286_v46  ;;  %v1539_v7 = vrot.slane %v2792_v21, %v4577_v37 }
 0x4e7   :  { %v1251_v52 = vpop.permute.xlu0 %1250 }
 0x4e8   :  { %v1263_v38 = vadd.f32 %v1261_v5, %v1251_v52  ;;  %v4578_v52 = vld [vmem:[#allocation15_spill] sm:$0xff] }
 0x4e9   :  { %v1561_v58 = vrot.slane %v2792_v21, %v4578_v52 }
 0x4eb   :  { %v1283_v42 = vpop.permute.xlu0 %1282 }
 0x4ec   :  { %v1287_v63 = vmul.f32 %v1283_v42, %v1263_v38  ;;  %v4579_v38 = vld [vmem:[#allocation16_spill] sm:$0xff] }
 0x4ed   :  { %v1583_v42 = vrot.slane %v2792_v21, %v4579_v38 }
 0x4ee   :  { %2950 = vmatmul.mubr.msk.f32.vlgmr.msra.gmra.mrb[2].mxu1 %vm392_vm7, %v1287_v63 }
 0x4ef   :  { %3071 = vmatpush3.bf16.msra.mxu1 %v3068_v39 }
 0x4f0   :  { %3073 = vmatprep.subr.bf16.mxu1 %v3072_v43 }
 0x4f3   :  { %3075 = vmatpush3.bf16.msra.mxu1 %v3072_v43 }
 0x4f4   :  { %3077 = vmatprep.subr.bf16.mxu1 %v3076_v14 }
 0x4f7   :  { %3079 = vmatpush3.bf16.msra.mxu1 %v3076_v14 }
 0x4f8   :  { %3081 = vmatprep.subr.bf16.mxu1 %v3080_v22 }
 0x4fb   :  { %3083 = vmatpush3.bf16.msra.mxu1 %v3080_v22 }
 0x5c1   :  { %v2951_v15 = vpop.f32.mrb[2].mxu1 }
 0x5c2   :  { %v1378_v57 = vadd.f32 %v2951_v15, %v4574_v28  ;;  %v1368_v56 = vpop.f32.mrb[3].mxu1  ;;  %v1531_v15 = vrot.slane %v2792_v21, %v3546_v41 }
 0x5c3   :  { %v1377_v9 = vadd.f32 %v1368_v56, %v4575_v32 }
 0x5c4   :  { %v1382_v49 = vsel %vm109_vm0, %v1378_v57, 0.0 }
 0x5c5   :  { %1383 = vadd.xlane.f32.xlu0 %v1382_v49  ;;  %v1379_v3 = vsel %vm109_vm0, %v1377_v9, 0.0 }
 0x5c6   :  { %1380 = vadd.xlane.f32.xlu1 %v1379_v3 }
 0x652   :  { %v1384_v11 = vpop.xlane.xlu0 %1383 }
 0x653   :  { %v1387_v50 = vmul.f32 0.03125, %v1384_v11  ;;  %v1381_v44 = vpop.xlane.xlu1 %1380 }
 0x654   :  { %v1386_v6 = vmul.f32 0.03125, %v1381_v44 }
 0x655   :  { %v1389_v55 = vsub.f32 %v1378_v57, %v1387_v50 }
 0x656   :  { %v1388_v20 = vsub.f32 %v1377_v9, %v1386_v6 }
 0x657   :  { %v1391_v18 = vmul.f32 %v1389_v55, %v1389_v55 }
 0x658   :  { %v1390_v59 = vmul.f32 %v1388_v20, %v1388_v20 }
 0x659   :  { %v1395_v29 = vsel %vm109_vm0, %v1391_v18, 0.0 }
 0x65a   :  { %1396 = vadd.xlane.f32.xlu1 %v1395_v29  ;;  %v1392_v10 = vsel %vm109_vm0, %v1390_v59, 0.0 }
 0x65b   :  { %1393 = vadd.xlane.f32.xlu0 %v1392_v10  ;;  %v2794_v10 = vld [vmem:[%s4524_s4 + $0x1] ss:$0 sm:$0xff] }
 0x6e7   :  { %v1397_v27 = vpop.xlane.xlu1 %1396 }
 0x6e8   :  { %v1399_v26 = vmul.f32 0.03125, %v1397_v27  ;;  %v1394_v23 = vpop.xlane.xlu0 %1393 }
 0x6e9   :  { %v1398_v2 = vmul.f32 0.03125, %v1394_v23 }
 0x6ea   :  { %v1401_v36 = vadd.f32 1e-05, %v1399_v26 }
 0x6eb   :  { %v1400_v17 = vadd.f32 1e-05, %v1398_v2 }
 0x6ec   :  { %3177 = vrsqrt.f32 %v1401_v36 }
 0x6ed   :  { %3179 = vrsqrt.f32 %v1400_v17 }
 0x6f6   :  { %v3178_v48 = vpop.eup %3177 }
 0x6f7   :  { %v3180_v25 = vpop.eup %3179  ;;  %v1405_v4 = vmul.f32 %v3178_v48, %v1389_v55 }
 0x6f8   :  { %v1404_v24 = vmul.f32 %v3180_v25, %v1388_v20 }
 0x6f9   :  { %v1414_v61 = vmul.f32 %v2784_v51, %v1405_v4 }
 0x6fa   :  { %v1413_v34 = vmul.f32 %v2784_v51, %v1404_v24 }
 0x6fb   :  { %v4040_v54 = vadd.f32 %v2785_v0, %v1414_v61 }
 0x6fc   :  { %v4038_v13 = vadd.f32 %v2785_v0, %v1413_v34 }
 0x6fe   :  { %4576 = vst [vmem:[#allocation25_spill] sm:$0xff] %v4038_v13  ;;  %2960 = vmatprep.mubr.msk.f32.mxu0 %vm109_vm0, %v4038_v13 }
 0x6ff   :  { %2961 = vmatmul.mubr.msk.f32.vlgmr.msra.gmra.mrb[4].mxu0 %vm109_vm0, %v4040_v54 }
 0x7d2   :  { %v4074_v46 = vpop.f32.mrb[4].mxu0 }
 0x7d3   :  { %v1515_v5 = vrot.slane %v4074_v46, 5  ;;  %v4079_v63 = vpop.f32.mrb[5].mxu0 }
 0x7d4   :  { %v1514_v28 = vrot.slane %v4079_v63, 5 }
 0x7d5   :  { %v1519_v57 = vsel %vm283_vm3, 0.0, %v1515_v5  ;;  %v1543_v56 = vmul.f32 %v1539_v7, %v1515_v5  ;;  %v1565_v49 = vmul.f32 %v1561_v58, %v1515_v5  ;;  %v1587_v11 = vmul.f32 %v1583_v42, %v1515_v5 }
 0x7d6   :  { %v1542_v32 = vmul.f32 %v1539_v7, %v1519_v57  ;;  %v1564_v9 = vmul.f32 %v1561_v58, %v1519_v57  ;;  %v1533_v50 = vmul.f32 %v1531_v15, %v1519_v57  ;;  %v1586_v6 = vmul.f32 %v1583_v42, %v1519_v57 }
 0x7d7   :  { %v1552_v3 = vrot.slane %v1543_v56, 1  ;;  %v1518_v55 = vsel %vm283_vm3, 0.0, %v1514_v28  ;;  %v1541_v59 = vmul.f32 %v1539_v7, %v1514_v28  ;;  %v1574_v1 = vrot.slane %v1565_v49, 2  ;;  %v2808_v56 = vld [vmem:[%s4526_s6 + $0x1] ss:$0 sm:$0xff] }
 0x7d8   :  { %v1551_v44 = vrot.slane %v1542_v32, 1  ;;  %v1532_v20 = vmul.f32 %v1531_v15, %v1518_v55  ;;  %v1540_v18 = vmul.f32 %v1539_v7, %v1518_v55  ;;  %v1562_v29 = vmul.f32 %v1561_v58, %v1518_v55 }
 0x7d9   :  { %v1573_v12 = vrot.slane %v1564_v9, 2  ;;  %v1563_v45 = vmul.f32 %v1561_v58, %v1514_v28  ;;  %v1585_v19 = vmul.f32 %v1583_v42, %v1514_v28  ;;  %v1549_v27 = vrot.slane %v1541_v59, 1 }
 0x7da   :  { %v1553_v40 = vsel %vm313_vm4, %v1551_v44, %v1552_v3  ;;  %v1548_v30 = vrot.slane %v1540_v18, 1  ;;  %v1570_v26 = vrot.slane %v1562_v29, 2  ;;  %v1596_v23 = vrot.slane %v1587_v11, 3  ;;  %v4580_v11 = vld [vmem:[#allocation20_spill] sm:$0xff]  ;;  %v4582_v18 = vld [vmem:[#allocation22_spill] sm:$0xff] }
 0x7db   :  { %v1571_v2 = vrot.slane %v1563_v45, 2  ;;  %v1534_v36 = vadd.f32 %v2794_v10, %v1532_v20  ;;  %v1535_v17 = vadd.f32 %v2794_v10, %v1533_v50  ;;  %v1595_v48 = vrot.slane %v1586_v6, 3  ;;  %v4581_v6 = vld [vmem:[#allocation21_spill] sm:$0xff] }
 0x7dc   :  { %v1593_v51 = vrot.slane %v1585_v19, 3  ;;  %v1550_v25 = vsel %vm313_vm4, %v1548_v30, %v1549_v27  ;;  %v1584_v4 = vmul.f32 %v1583_v42, %v1518_v55  ;;  %v1575_v0 = vsel %vm336_vm5, %v1573_v12, %v1574_v1 }
 0x7dd   :  { %v1556_v24 = vadd.f32 %v1550_v25, %v1534_v36  ;;  %v1557_v61 = vadd.f32 %v1553_v40, %v1535_v17  ;;  %v1572_v34 = vsel %vm336_vm5, %v1570_v26, %v1571_v2  ;;  %v1597_v31 = vsel %vm359_vm6, %v1595_v48, %v1596_v23 }
 0x7de   :  { %v1592_v33 = vrot.slane %v1584_v4, 3  ;;  %v4583_v4 = vld [vmem:[#allocation23_spill] sm:$0xff]  ;;  %vm2746_vm4 = vcmask 130048  }
 0x7df   :  { %v1578_v8 = vadd.f32 %v1572_v34, %v1556_v24  ;;  %v1579_v47 = vadd.f32 %v1575_v0, %v1557_v61  ;;  %v2811_v34 = vmul.f32 -1.442695, %v4079_v63 }
 0x7e0   :  { %v1594_v39 = vsel %vm359_vm6, %v1592_v33, %v1593_v51 }
 0x7e1   :  { %v1600_v43 = vadd.f32 %v1594_v39, %v1578_v8  ;;  %v1601_v62 = vadd.f32 %v1597_v31, %v1579_v47 }
 0x7e3   :  { %v2795_v35 = vmul.f32 -1.442695, %v1600_v43  ;;  %v2796_v14 = vmul.f32 -1.442695, %v1601_v62 }
 0x7e5   :  { %3181 = vpow2.f32 %v2795_v35 }
 0x7e6   :  { %3183 = vpow2.f32 %v2796_v14 }
 0x7ef   :  { %v3182_v53 = vpop.eup %3181 }
 0x7f0   :  { %v3184_v16 = vpop.eup %3183  ;;  %v1608_v22 = vadd.f32 1.0, %v3182_v53 }
 0x7f1   :  { %v1609_v21 = vadd.f32 1.0, %v3184_v16 }
 0x7f2   :  { %3185 = vrcp.f32 %v1608_v22 }
 0x7f3   :  { %3187 = vrcp.f32 %v1609_v21 }
 0x7fc   :  { %v3186_v7 = vpop.eup %3185 }
 0x7fd   :  { %v3188_v58 = vpop.eup %3187  ;;  %v4094_v5 = vmul.f32 %v3186_v7, %v1600_v43 }
 0x7fe   :  { %v4096_v42 = vmul.f32 %v3188_v58, %v1601_v62 }
 0x7ff   :  { %2979 = vmatprep.mubr.msk.f32.mxu1 %vm392_vm7, %v4094_v5 }
 0x800   :  { %2980 = vmatmul.mubr.msk.f32.vlgmr.msra.gmra.mrb[4].mxu1 %vm392_vm7, %v4096_v42 }
 0x8d3   :  { %v4102_v15 = vpop.f32.mrb[4].mxu1 }
 0x8d4   :  { %v4104_v28 = vpop.f32.mrb[5].mxu1  ;;  %v1857_v57 = vrot.slane %v4102_v15, %v3546_v41  ;;  %v1869_v32 = vrot.slane %v4102_v15, %v4577_v37  ;;  %v4118_v49 = vrot.slane %v4102_v15, %v4578_v52  ;;  %v4124_v3 = vrot.slane %v4102_v15, %v4579_v38 }
 0x8d5   :  { %v4114_v9 = vadd.f32 %v2808_v56, %v4104_v28  ;;  %v4130_v50 = vrot.slane %v4102_v15, %v4580_v11  ;;  %v1715_v44 = vadd.f32 %v4102_v15, %v2808_v56  ;;  %v4137_v55 = vrot.slane %v4102_v15, %v4581_v6 }
 0x8d6   :  { %1864 = vbcast.lane.b32.xlu0 %v1857_v57, 328  ;;  %1860 = vbcast.lane.b32.xlu1 %v1857_v57, 320  ;;  %v4143_v59 = vrot.slane %v4102_v15, %v4582_v18  ;;  %v1761_v12 = vrot.slane %v4104_v28, %v3546_v41  ;;  %v1773_v1 = vrot.slane %v4104_v28, %v4577_v37 }
 0x8d7   :  { %v1719_v20 = vand.u32 2147483647, %v1715_v44  ;;  %v1785_v45 = vrot.slane %v4104_v28, %v4578_v52  ;;  %v1797_v40 = vrot.slane %v4104_v28, %v4579_v38  ;;  %v1809_v27 = vrot.slane %v4104_v28, %v4580_v11  ;;  %v2814_v11 = vld [vmem:[%s4529_s9 + $0x48] sm:$0xff] }
 0x8d8   :  { %v1821_v37 = vrot.slane %v4104_v28, %v4581_v6  ;;  %v1833_v26 = vrot.slane %v4104_v28, %v4582_v18  ;;  %v1717_v51 = vmax.f32 %v1715_v44, 0.0  ;;  %v1845_v24 = vrot.slane %v4104_v28, %v4583_v4  ;;  %v2816_v6 = vld [vmem:[%s4529_s9 + $0x58] sm:$0xff]  ;;  %v2817_v18 = vld [vmem:[%s4529_s9 + $0x60] sm:$0xff] }
 0x8d9   :  { %v1721_v29 = vsub.f32 0.0, %v1719_v20  ;;  %v1941_v61 = vrot.slane %v4102_v15, %v4583_v4  ;;  %v1718_v28 = vand.u32 2147483647, %v4114_v9 }
 0x8da   :  { %1876 = vbcast.lane.b32.xlu0 %v1869_v32, 328  ;;  %1872 = vbcast.lane.b32.xlu1 %v1869_v32, 320 }
 0x8db   :  { %v1724_v10 = vmul.f32 1.442695, %v1721_v29 }
 0x8dd   :  { %3189 = vpow2.f32 %v1724_v10 }
 0x8de   :  { %1888 = vbcast.lane.b32.xlu0 %v4118_v49, 328  ;;  %1884 = vbcast.lane.b32.xlu1 %v4118_v49, 320 }
 0x8e2   :  { %1900 = vbcast.lane.b32.xlu0 %v4124_v3, 328  ;;  %1896 = vbcast.lane.b32.xlu1 %v4124_v3, 320 }
 0x8e6   :  { %1912 = vbcast.lane.b32.xlu0 %v4130_v50, 328  ;;  %1908 = vbcast.lane.b32.xlu1 %v4130_v50, 320 }
 0x8e7   :  { %v3190_v19 = vpop.eup %3189 }
 0x8e8   :  { %v1735_v30 = vadd.f32 1.0, %v3190_v19  ;;  %v1738_v52 = vmul.f32 -0.5, %v3190_v19  ;;  %v1741_v2 = vand.u32 2147483647, %v3190_v19 }
 0x8ea   :  { %1924 = vbcast.lane.b32.xlu0 %v4137_v55, 328  ;;  %1920 = vbcast.lane.b32.xlu1 %v4137_v55, 320  ;;  %3191 = vlog2.f32 %v1735_v30  ;;  %v1739_v38 = vadd.f32 1.0, %v1738_v52  ;;  %vm1742_vm2 = vcmp.lt.f32.partialorder %v1741_v2, 0.0004427343 }
 0x8eb   :  { %3193 = vpow2.f32 %v2811_v34 }
 0x8ec   :  { %v1740_v17 = vmul.f32 %v3190_v19, %v1739_v38 }
 0x8ee   :  { %1936 = vbcast.lane.b32.xlu0 %v4143_v59, 328  ;;  %1932 = vbcast.lane.b32.xlu1 %v4143_v59, 320 }
 0x8f2   :  { %2036 = vbcast.lane.b32.xlu0 %v1857_v57, 344  ;;  %2032 = vbcast.lane.b32.xlu1 %v1857_v57, 336 }
 0x8f4   :  { %v3192_v23 = vpop.eup %3191 }
 0x8f5   :  { %v1737_v36 = vmul.f32 0.6931472, %v3192_v23  ;;  %v3194_v33 = vpop.eup %3193 }
 0x8f6   :  { %2044 = vbcast.lane.b32.xlu0 %v1869_v32, 344  ;;  %2040 = vbcast.lane.b32.xlu1 %v1869_v32, 336  ;;  %v2498_v8 = vadd.f32 1.0, %v3194_v33  ;;  %v1720_v32 = vsub.f32 0.0, %v1718_v28 }
 0x8f7   :  { %v1743_v48 = vsel %vm1742_vm2, %v1740_v17, %v1737_v36 }
 0x8f8   :  { %v1745_v25 = vadd.f32 %v1743_v48, %v1717_v51  ;;  %3195 = vrcp.f32 %v2498_v8 }
 0x8fa   :  { %1768 = vbcast.lane.b32.xlu0 %v1761_v12, 328  ;;  %1764 = vbcast.lane.b32.xlu1 %v1761_v12, 320  ;;  %v1747_v0 = vmul.f32 %v1745_v25, %v4096_v42 }
 0x8fe   :  { %1780 = vbcast.lane.b32.xlu0 %v1773_v1, 328  ;;  %1776 = vbcast.lane.b32.xlu1 %v1773_v1, 320 }
 0x902   :  { %1792 = vbcast.lane.b32.xlu0 %v1785_v45, 328  ;;  %1788 = vbcast.lane.b32.xlu1 %v1785_v45, 320  ;;  %v3196_v16 = vpop.eup %3195 }
 0x903   :  { %v2504_v22 = vmul.f32 %v3196_v16, %v4079_v63 }
 0x906   :  { %1804 = vbcast.lane.b32.xlu0 %v1797_v40, 328  ;;  %1800 = vbcast.lane.b32.xlu1 %v1797_v40, 320 }
 0x90a   :  { %1816 = vbcast.lane.b32.xlu0 %v1809_v27, 328  ;;  %1812 = vbcast.lane.b32.xlu1 %v1809_v27, 320 }
 0x90e   :  { %1828 = vbcast.lane.b32.xlu0 %v1821_v37, 328  ;;  %1824 = vbcast.lane.b32.xlu1 %v1821_v37, 320 }
 0x912   :  { %1840 = vbcast.lane.b32.xlu0 %v1833_v26, 328  ;;  %1836 = vbcast.lane.b32.xlu1 %v1833_v26, 320 }
 0x916   :  { %1972 = vbcast.lane.b32.xlu0 %v1761_v12, 344  ;;  %1968 = vbcast.lane.b32.xlu1 %v1761_v12, 336 }
 0x91a   :  { %1980 = vbcast.lane.b32.xlu0 %v1773_v1, 344  ;;  %1976 = vbcast.lane.b32.xlu1 %v1773_v1, 336 }
 0x91e   :  { %1749 = vrot.lane.b32.xlu0 %v1745_v25, %s3344_s15  ;;  %1984 = vbcast.lane.b32.xlu1 %v1785_v45, 336 }
 0x922   :  { %1988 = vbcast.lane.b32.xlu0 %v1785_v45, 344  ;;  %2048 = vbcast.lane.b32.xlu1 %v4118_v49, 336 }
 0x926   :  { %2052 = vbcast.lane.b32.xlu0 %v4118_v49, 344  ;;  %1848 = vbcast.lane.b32.xlu1 %v1845_v24, 320 }
 0x92a   :  { %1852 = vbcast.lane.b32.xlu0 %v1845_v24, 328  ;;  %1944 = vbcast.lane.b32.xlu1 %v1941_v61, 320 }
 0x92e   :  { %1948 = vbcast.lane.b32.xlu0 %v1941_v61, 328  ;;  %1754 = vrot.lane.b32.xlu1 %v1747_v0, %s3344_s15 }
 0x932   :  { %1996 = vbcast.lane.b32.xlu0 %v1797_v40, 344  ;;  %1992 = vbcast.lane.b32.xlu1 %v1797_v40, 336 }
 0x936   :  { %2060 = vbcast.lane.b32.xlu0 %v4124_v3, 344  ;;  %2056 = vbcast.lane.b32.xlu1 %v4124_v3, 336  ;;  %v2813_v3 = vld [vmem:[%s4529_s9 + $0x40] sm:$0xff] }
 0x937   :  { %v3084_v44 = vpack.c.bf16 %v2814_v11, %v2813_v3 }
 0x939   :  { %3085 = vmatprep.subr.bf16.mxu0 %v3084_v44 }
 0x93a   :  { %2004 = vbcast.lane.b32.xlu0 %v1809_v27, 344  ;;  %2000 = vbcast.lane.b32.xlu1 %v1809_v27, 336 }
 0x93b   :  { %3087 = vmatpush3.bf16.msra.mxu0 %v3084_v44 }
 0x93e   :  { %2068 = vbcast.lane.b32.xlu0 %v4130_v50, 344  ;;  %2064 = vbcast.lane.b32.xlu1 %v4130_v50, 336  ;;  %v2815_v50 = vld [vmem:[%s4529_s9 + $0x50] sm:$0xff] }
 0x93f   :  { %v3088_v20 = vpack.c.bf16 %v2816_v6, %v2815_v50  ;;  %v2812_v6 = vmul.f32 -1.442695, %v4074_v46 }
 0x941   :  { %3089 = vmatprep.subr.bf16.mxu0 %v3088_v20 }
 0x942   :  { %2012 = vbcast.lane.b32.xlu0 %v1821_v37, 344  ;;  %2008 = vbcast.lane.b32.xlu1 %v1821_v37, 336 }
 0x943   :  { %3091 = vmatpush3.bf16.msra.mxu0 %v3088_v20 }
 0x946   :  { %2076 = vbcast.lane.b32.xlu0 %v4137_v55, 344  ;;  %2072 = vbcast.lane.b32.xlu1 %v4137_v55, 336  ;;  %v1722_v55 = vmul.f32 1.442695, %v1720_v32  ;;  %v1716_v32 = vmax.f32 %v4114_v9, 0.0 }
 0x948   :  { %v4177_v47 = vpop.permute.xlu0 %1864  ;;  %v4179_v39 = vpop.permute.xlu1 %1860  ;;  %3197 = vpow2.f32 %v1722_v55 }
 0x94a   :  { %2020 = vbcast.lane.b32.xlu0 %v1833_v26, 344  ;;  %2016 = vbcast.lane.b32.xlu1 %v1833_v26, 336 }
 0x94c   :  { %v4181_v31 = vpop.permute.xlu0 %1876  ;;  %v4183_v43 = vpop.permute.xlu1 %1872 }
 0x94e   :  { %2084 = vbcast.lane.b32.xlu0 %v4143_v59, 344  ;;  %2080 = vbcast.lane.b32.xlu1 %v4143_v59, 336  ;;  %v2818_v59 = vld [vmem:[%s4529_s9 + $0x68] sm:$0xff] }
 0x94f   :  { %v3092_v12 = vpack.c.bf16 %v2818_v59, %v2817_v18 }
 0x950   :  { %v4187_v62 = vpop.permute.xlu0 %1888  ;;  %v4189_v35 = vpop.permute.xlu1 %1884 }
 0x951   :  { %3093 = vmatprep.subr.bf16.mxu0 %v3092_v12 }
 0x952   :  { %2028 = vbcast.lane.b32.xlu0 %v1845_v24, 344  ;;  %2024 = vbcast.lane.b32.xlu1 %v1845_v24, 336  ;;  %v3198_v30 = vpop.eup %3197 }
 0x953   :  { %3095 = vmatpush3.bf16.msra.mxu0 %v3092_v12  ;;  %v1726_v52 = vadd.f32 1.0, %v3198_v30  ;;  %v1729_v48 = vmul.f32 -0.5, %v3198_v30 }
 0x954   :  { %v4191_v14 = vpop.permute.xlu0 %1900  ;;  %v4193_v53 = vpop.permute.xlu1 %1896 }
 0x955   :  { %3199 = vlog2.f32 %v1726_v52  ;;  %v1730_v24 = vadd.f32 1.0, %v1729_v48 }
 0x956   :  { %2092 = vbcast.lane.b32.xlu0 %v1941_v61, 344  ;;  %2088 = vbcast.lane.b32.xlu1 %v1941_v61, 336  ;;  %v1732_v61 = vand.u32 2147483647, %v3198_v30  ;;  %3201 = vpow2.f32 %v2812_v6 }
 0x957   :  { %v1731_v8 = vmul.f32 %v3198_v30, %v1730_v24 }
 0x958   :  { %v4196_v21 = vpop.permute.xlu0 %1912  ;;  %v4198_v7 = vpop.permute.xlu1 %1908  ;;  %vm1733_vm3 = vcmp.lt.f32.partialorder %v1732_v61, 0.0004427343 }
 0x95a   :  { %2508 = vrot.lane.b32.xlu0 %v2504_v22, %s3344_s15 }
 0x95c   :  { %v4201_v58 = vpop.permute.xlu0 %1924  ;;  %v4203_v15 = vpop.permute.xlu1 %1920 }
 0x95f   :  { %v3200_v4 = vpop.eup %3199 }
 0x960   :  { %v4206_v57 = vpop.permute.xlu0 %1936  ;;  %v4208_v56 = vpop.permute.xlu1 %1932  ;;  %v1728_v33 = vmul.f32 0.6931472, %v3200_v4 }
 0x962   :  { %v1734_v28 = vsel %vm1733_vm3, %v1731_v8, %v1728_v33  ;;  %v2161_v33 = vld [vmem:[#allocation2 + $0x10] sm:$0xff] }
 0x963   :  { %v1744_v3 = vadd.f32 %v1734_v28, %v1716_v32 }
 0x964   :  { %v4210_v49 = vpop.permute.xlu0 %2036  ;;  %v4212_v63 = vpop.permute.xlu1 %2032 }
 0x965   :  { %v4248_v4 = vmul.f32 %v1744_v3, %v4094_v5 }
 0x968   :  { %v4232_v29 = vpop.permute.xlu0 %2044  ;;  %v4234_v10 = vpop.permute.xlu1 %2040 }
 0x96c   :  { %v1769_v1 = vpop.permute.xlu0 %1768  ;;  %v1765_v45 = vpop.permute.xlu1 %1764 }
 0x96d   :  { %v4252_v24 = vsel %vm392_vm7, %v1769_v1, %v4177_v47  ;;  %v4256_v61 = vsel %vm392_vm7, %v1765_v45, %v4179_v39  ;;  %v2162_v1 = vld [vmem:[#allocation2 + $0x18] sm:$0xff] }
 0x970   :  { %v1781_v19 = vpop.permute.xlu0 %1780  ;;  %v1777_v40 = vpop.permute.xlu1 %1776 }
 0x971   :  { %v4262_v32 = vsel %vm392_vm7, %v1781_v19, %v4181_v31 }
 0x974   :  { %v1793_v27 = vpop.permute.xlu0 %1792  ;;  %v1789_v37 = vpop.permute.xlu1 %1788 }
 0x975   :  { %v4270_v47 = vsel %vm392_vm7, %v1793_v27, %v4187_v62 }
 0x978   :  { %v1805_v26 = vpop.permute.xlu0 %1804  ;;  %v1801_v23 = vpop.permute.xlu1 %1800 }
 0x979   :  { %v4283_v31 = vsel %vm392_vm7, %v1805_v26, %v4191_v14  ;;  %v4288_v62 = vsel %vm392_vm7, %v1801_v23, %v4193_v53 }
 0x97c   :  { %v1817_v38 = vpop.permute.xlu0 %1816  ;;  %v1813_v2 = vpop.permute.xlu1 %1812 }
 0x980   :  { %v1829_v36 = vpop.permute.xlu0 %1828  ;;  %v1825_v17 = vpop.permute.xlu1 %1824 }
 0x981   :  { %v4300_v14 = vsel %vm392_vm7, %v1829_v36, %v4201_v58  ;;  %v4304_v53 = vsel %vm392_vm7, %v1825_v17, %v4203_v15 }
 0x984   :  { %v1841_v51 = vpop.permute.xlu0 %1840  ;;  %v1837_v25 = vpop.permute.xlu1 %1836 }
 0x985   :  { %v4312_v23 = vsel %vm392_vm7, %v1837_v25, %v4208_v56 }
 0x988   :  { %v1973_v0 = vpop.permute.xlu0 %1972  ;;  %v1969_v34 = vpop.permute.xlu1 %1968 }
 0x989   :  { %v4320_v58 = vsel %vm392_vm7, %v1973_v0, %v4210_v49  ;;  %v4324_v15 = vsel %vm392_vm7, %v1969_v34, %v4212_v63  ;;  %v4335_v63 = vpop.eup %3201 }
 0x98c   :  { %v1981_v16 = vpop.permute.xlu0 %1980  ;;  %v4236_v22 = vpop.permute.xlu1 %1976 }
 0x98d   :  { %v4340_v34 = vsel %vm392_vm7, %v4236_v22, %v4234_v10 }
 0x990   :  { %v1750_v11 = vpop.permute.xlu0 %1749  ;;  %v1985_v50 = vpop.permute.xlu1 %1984 }
 0x991   :  { %v1752_v44 = vsel %vm392_vm7, %v1744_v3, %v1750_v11  ;;  %v4266_v3 = vsel %vm392_vm7, %v1777_v40, %v4183_v43  ;;  %v4292_v40 = vsel %vm392_vm7, %v1817_v38, %v4196_v21  ;;  %v4308_v21 = vsel %vm392_vm7, %v1841_v51, %v4206_v57 }
 0x992   :  { %v2111_v55 = vcombine.high %v1752_v44, %v1752_v44  ;;  %v2118_v20 = vrot.slane %v1752_v44, %v3755_v60  ;;  %v4279_v44 = vsel %vm392_vm7, %v1789_v37, %v4189_v35  ;;  %v4296_v35 = vsel %vm392_vm7, %v1813_v2, %v4198_v7 }
 0x994   :  { %v2125_v18 = vrot.slane %v2111_v55, %v3755_v60  ;;  %v2126_v59 = vcombine.high %v2118_v20, %v2118_v20  ;;  %v2134_v12 = vrot.slane %v2118_v20, %v3755_v60  ;;  %v4244_v30 = vpop.permute.xlu0 %1988  ;;  %v2049_v52 = vpop.permute.xlu1 %2048  ;;  %v4331_v55 = vsel %vm392_vm7, %v1981_v16, %v4232_v29 }
 0x996   :  { %v2127_v9 = vcombine.high %v2125_v18, %v2125_v18  ;;  %v2148_v48 = vrot.slane %v2126_v59, %v3755_v60  ;;  %v2141_v8 = vrot.slane %v2125_v18, %v3755_v60  ;;  %v2166_v28 = vrot.slane %v2134_v12, %v3546_v41 }
 0x997   :  { %v2156_v43 = vcombine.high %v2134_v12, %v2134_v12  ;;  %v4344_v59 = vsel %vm392_vm7, %v1985_v50, %v2049_v52 }
 0x998   :  { %v2155_v39 = vrot.slane %v2127_v9, %v3755_v60  ;;  %v4273_v45 = vpop.permute.xlu0 %2052  ;;  %v4275_v11 = vpop.permute.xlu1 %1848  ;;  %v2170_v19 = vrot.slane %v2148_v48, %v3546_v41  ;;  %v2158_v27 = vcombine.high %v2148_v48, %v2148_v48  ;;  %v2203_v6 = vmul.f32 %v2166_v28, %v2161_v33 }
 0x999   :  { %v2157_v37 = vcombine.high %v2141_v8, %v2141_v8  ;;  %v2204_v26 = vmul.f32 %v2166_v28, %v2162_v1  ;;  %v2174_v57 = vrot.slane %v2156_v43, %v3546_v41  ;;  %v2182_v56 = vrot.slane %v2141_v8, %v3546_v41 }
 0x99a   :  { %v2159_v7 = vcombine.high %v2155_v39, %v2155_v39  ;;  %v2205_v36 = vmul.f32 %v2170_v19, %v2161_v33  ;;  %v2178_v17 = vrot.slane %v2158_v27, %v3546_v41  ;;  %v2206_v51 = vmul.f32 %v2170_v19, %v2162_v1 }
 0x99b   :  { %v2219_v25 = vmul.f32 1.442695, %v2203_v6  ;;  %v2186_v49 = vrot.slane %v2155_v39, %v3546_v41  ;;  %v2190_v0 = vrot.slane %v2157_v37, %v3546_v41  ;;  %v2221_v20 = vmul.f32 1.442695, %v2204_v26 }
 0x99c   :  { %v4314_v38 = vpop.permute.xlu0 %1852  ;;  %v4316_v2 = vpop.permute.xlu1 %1944  ;;  %v2194_v18 = vrot.slane %v2159_v7, %v3546_v41  ;;  %v2207_v12 = vmul.f32 %v2174_v57, %v2161_v33  ;;  %v2208_v9 = vmul.f32 %v2174_v57, %v2162_v1  ;;  %v2223_v48 = vmul.f32 1.442695, %v2205_v36 }
 0x99d   :  { %3203 = vpow2.f32 %v2219_v25  ;;  %v2209_v8 = vmul.f32 %v2178_v17, %v2161_v33  ;;  %v2210_v28 = vmul.f32 %v2178_v17, %v2162_v1  ;;  %v2211_v39 = vmul.f32 %v2182_v56, %v2161_v33 }
 0x99e   :  { %3205 = vpow2.f32 %v2221_v20  ;;  %v2225_v43 = vmul.f32 1.442695, %v2206_v51  ;;  %v2212_v19 = vmul.f32 %v2182_v56, %v2162_v1  ;;  %v2213_v10 = vmul.f32 %v2186_v49, %v2161_v33 }
 0x99f   :  { %v2214_v22 = vmul.f32 %v2186_v49, %v2162_v1  ;;  %v2215_v27 = vmul.f32 %v2190_v0, %v2161_v33  ;;  %v2216_v6 = vmul.f32 %v2190_v0, %v2162_v1  ;;  %v2217_v37 = vmul.f32 %v2194_v18, %v2161_v33 }
 0x9a0   :  { %v4346_v29 = vpop.permute.xlu0 %1948  ;;  %v1755_v16 = vpop.permute.xlu1 %1754  ;;  %v4348_v26 = vmul.f32 %v2194_v18, %v2162_v1  ;;  %3207 = vpow2.f32 %v2223_v48  ;;  %v2227_v57 = vmul.f32 1.442695, %v2207_v12  ;;  %v2229_v56 = vmul.f32 1.442695, %v2208_v9 }
 0x9a1   :  { %v1757_v50 = vsel %vm392_vm7, %v4248_v4, %v1755_v16  ;;  %3209 = vpow2.f32 %v2225_v43  ;;  %v2231_v51 = vmul.f32 1.442695, %v2209_v8  ;;  %v2233_v25 = vmul.f32 1.442695, %v2210_v28 }
 0x9a2   :  { %v2252_v36 = vcombine.high %v1757_v50, %v1757_v50  ;;  %v2259_v17 = vrot.slane %v1757_v50, %v3755_v60  ;;  %v2235_v49 = vmul.f32 1.442695, %v2211_v39  ;;  %v2237_v4 = vmul.f32 1.442695, %v2212_v19 }
 0x9a3   :  { %v2239_v20 = vmul.f32 1.442695, %v2213_v10  ;;  %v4359_v18 = vmul.f32 1.442695, %v2214_v22  ;;  %v4364_v16 = vsel %vm392_vm7, %v4244_v30, %v4273_v45  ;;  %3211 = vpow2.f32 %v2227_v57 }
 0x9a4   :  { %v4352_v52 = vpop.permute.xlu0 %1996  ;;  %v4354_v7 = vpop.permute.xlu1 %1992  ;;  %v2266_v33 = vrot.slane %v2252_v36, %v3755_v60  ;;  %v2267_v1 = vcombine.high %v2259_v17, %v2259_v17  ;;  %v2275_v0 = vrot.slane %v2259_v17, %v3755_v60  ;;  %v4370_v48 = vmul.f32 1.442695, %v2215_v27 }
 0x9a5   :  { %v4372_v8 = vmul.f32 1.442695, %v2216_v6  ;;  %3213 = vpow2.f32 %v2229_v56  ;;  %v4376_v30 = vmul.f32 1.442695, %v2217_v37 }
 0x9a6   :  { %v2289_v28 = vrot.slane %v2267_v1, %v3755_v60  ;;  %v2268_v43 = vcombine.high %v2266_v33, %v2266_v33  ;;  %v2297_v19 = vcombine.high %v2275_v0, %v2275_v0  ;;  %v2304_v10 = vrot.slane %v2275_v0, %v3546_v41 }
 0x9a7   :  { %v3204_v39 = vpop.eup %3203  ;;  %3215 = vpow2.f32 %v2231_v51  ;;  %v2282_v50 = vrot.slane %v2266_v33, %v3755_v60 }
 0x9a8   :  { %v4366_v12 = vpop.permute.xlu0 %2060  ;;  %v4368_v9 = vpop.permute.xlu1 %2056  ;;  %v2357_v45 = vmul.f32 0.0, %v3204_v39  ;;  %3217 = vpow2.f32 %v2233_v25  ;;  %v2299_v57 = vcombine.high %v2289_v28, %v2289_v28  ;;  %v2308_v6 = vrot.slane %v2289_v28, %v3546_v41 }
 0x9a9   :  { %v3206_v22 = vpop.eup %3205  ;;  %3219 = vpow2.f32 %v2235_v49  ;;  %v2312_v56 = vrot.slane %v2297_v19, %v3546_v41  ;;  %v2341_v1 = vmul.f32 %v2304_v10, %v4256_v61  ;;  %v2342_v37 = vmul.f32 %v2304_v10, %v4252_v24 }
 0x9aa   :  { %v2358_v27 = vmul.f32 0.0, %v3206_v22  ;;  %v4388_v51 = vrot.slane %v2268_v43, %v3755_v60  ;;  %v2343_v25 = vmul.f32 %v2308_v6, %v4266_v3  ;;  %v2344_v33 = vmul.f32 %v2308_v6, %v4262_v32  ;;  %v3208_v28 = vpop.eup %3207 }
 0x9ab   :  { %v2316_v0 = vrot.slane %v2299_v57, %v3546_v41  ;;  %v2298_v39 = vcombine.high %v2282_v50, %v2282_v50  ;;  %v2359_v22 = vadd.f32 %v2357_v45, %v2341_v1  ;;  %v2346_v49 = vmul.f32 %v2312_v56, %v4270_v47  ;;  %v3210_v19 = vpop.eup %3209 }
 0x9ac   :  { %v4380_v36 = vpop.permute.xlu0 %2004  ;;  %v4382_v17 = vpop.permute.xlu1 %2000  ;;  %v2360_v13 = vadd.f32 %v2358_v27, %v2342_v37  ;;  %3221 = vpow2.f32 %v2237_v4  ;;  %v2345_v24 = vmul.f32 %v2312_v56, %v4279_v44  ;;  %v2249_v47 = vmul.f32 1.442695, %v4348_v26 }
 0x9ad   :  { %v2348_v61 = vmul.f32 %v2316_v0, %v4283_v31  ;;  %v2347_v60 = vmul.f32 %v2316_v0, %v4288_v62  ;;  %v2361_v32 = vmul.f32 %v3208_v28, %v2359_v22  ;;  %v2389_v57 = vmul.f32 %v2359_v22, %v4324_v15  ;;  %v3212_v44 = vpop.eup %3211 }
 0x9ae   :  { %v2362_v10 = vmul.f32 %v3210_v19, %v2360_v13  ;;  %v2390_v45 = vmul.f32 %v2360_v13, %v4320_v58  ;;  %3223 = vpow2.f32 %v2239_v20  ;;  %v2320_v4 = vrot.slane %v2282_v50, %v3546_v41 }
 0x9af   :  { %v2324_v31 = vrot.slane %v4388_v51, %v3546_v41  ;;  %v2363_v6 = vadd.f32 %v2361_v32, %v2343_v25  ;;  %v2328_v56 = vrot.slane %v2298_v39, %v3546_v41  ;;  %v3214_v1 = vpop.eup %3213  ;;  %3225 = vpow2.f32 %v4359_v18 }
 0x9b0   :  { %v2069_v43 = vpop.permute.xlu0 %2068  ;;  %v4397_v3 = vpop.permute.xlu1 %2064  ;;  %v2405_v27 = vadd.f32 %v2390_v45, %v2389_v57  ;;  %v2364_v62 = vadd.f32 %v2362_v10, %v2344_v33  ;;  %v2350_v37 = vmul.f32 %v2320_v4, %v4292_v40  ;;  %v2349_v15 = vmul.f32 %v2320_v4, %v4296_v35 }
 0x9b1   :  { %v4409_v26 = vmul.f32 %v2324_v31, %v4300_v14  ;;  %v4412_v20 = vmul.f32 %v2324_v31, %v4304_v53  ;;  %v3216_v50 = vpop.eup %3215  ;;  %v2365_v33 = vmul.f32 %v3212_v44, %v2363_v6  ;;  %v2391_v40 = vmul.f32 %v2363_v6, %v4340_v34 }
 0x9b2   :  { %v2406_v0 = vrot.slane %v2405_v27, 4  ;;  %v2366_v28 = vmul.f32 %v3214_v1, %v2364_v62  ;;  %v2392_v25 = vmul.f32 %v2364_v62, %v4331_v55  ;;  %v3218_v39 = vpop.eup %3217  ;;  %v4418_v35 = vmul.f32 %v2328_v56, %v4308_v21 }
 0x9b3   :  { %v4421_v14 = vmul.f32 %v2328_v56, %v4312_v23  ;;  %v3220_v22 = vpop.eup %3219  ;;  %3227 = vpow2.f32 %v4370_v48  ;;  %v2367_v32 = vadd.f32 %v2365_v33, %v2345_v24  ;;  %v1964_v55 = vsel %vm392_vm7, %v4275_v11, %v4316_v2 }
 0x9b4   :  { %v2013_v13 = vpop.permute.xlu0 %2012  ;;  %v2009_v58 = vpop.permute.xlu1 %2008  ;;  %v2407_v53 = vadd.f32 %v2406_v0, %v2405_v27  ;;  %v2368_v19 = vadd.f32 %v2366_v28, %v2346_v49  ;;  %3229 = vpow2.f32 %v4372_v8  ;;  %v1965_v21 = vsel %vm392_vm7, %v4314_v38, %v4346_v29 }
 0x9b5   :  { %v2412_v34 = vadd.f32 %v2392_v25, %v2391_v40  ;;  %v2369_v45 = vmul.f32 %v3216_v50, %v2367_v32  ;;  %3231 = vpow2.f32 %v4376_v30  ;;  %v2101_v8 = vsel %vm392_vm7, %v4352_v52, %v4366_v12 }
 0x9b6   :  { %v2408_v10 = vrot.slane %v2407_v53, 2  ;;  %v2370_v57 = vmul.f32 %v3218_v39, %v2368_v19  ;;  %v2394_v48 = vmul.f32 %v2368_v19, %v4364_v16  ;;  %v3222_v49 = vpop.eup %3221  ;;  %v2393_v11 = vmul.f32 %v2367_v32, %v4344_v59 }
 0x9b7   :  { %v2413_v2 = vrot.slane %v2412_v34, 4  ;;  %3233 = vpow2.f32 %v2249_v47  ;;  %v2371_v29 = vadd.f32 %v2369_v45, %v2347_v60  ;;  %v2300_v24 = vcombine.high %v4388_v51, %v4388_v51 }
 0x9b8   :  { %v2077_v18 = vpop.permute.xlu0 %2076  ;;  %v2073_v23 = vpop.permute.xlu1 %2072  ;;  %v2372_v38 = vadd.f32 %v2370_v57, %v2348_v61  ;;  %v2100_v16 = vsel %vm392_vm7, %v4354_v7, %v4368_v9  ;;  %v2419_v30 = vadd.f32 %v2394_v48, %v2393_v11  ;;  %v2103_v44 = vsel %vm392_vm7, %v4380_v36, %v2069_v43 }
 0x9b9   :  { %v3224_v4 = vpop.eup %3223  ;;  %v2414_v31 = vadd.f32 %v2413_v2, %v2412_v34  ;;  %v2409_v59 = vadd.f32 %v2408_v10, %v2407_v53  ;;  %v2395_v47 = vmul.f32 %v2371_v29, %v2100_v16  ;;  %v2102_v51 = vsel %vm392_vm7, %v4382_v17, %v4397_v3 }
 0x9ba   :  { %v2396_v27 = vmul.f32 %v2372_v38, %v2101_v8  ;;  %v2374_v61 = vmul.f32 %v3222_v49, %v2372_v38  ;;  %v2420_v62 = vrot.slane %v2419_v30, 4  ;;  %v2373_v6 = vmul.f32 %v3220_v22, %v2371_v29  ;;  %v3226_v36 = vpop.eup %3225 }
 0x9bb   :  { %v2415_v60 = vrot.slane %v2414_v31, 2  ;;  %v2105_v9 = vsel %vm392_vm7, %v2013_v13, %v2077_v18  ;;  %v2332_v1 = vrot.slane %v2300_v24, %v3546_v41  ;;  %v2104_v28 = vsel %vm392_vm7, %v2009_v58, %v2073_v23 }
 0x9bc   :  { %v2021_v52 = vpop.permute.xlu0 %2020  ;;  %v2017_v12 = vpop.permute.xlu1 %2016  ;;  %v2426_v56 = vadd.f32 %v2396_v27, %v2395_v47  ;;  %v2376_v7 = vadd.f32 %v2374_v61, %v2350_v37  ;;  %v2421_v50 = vadd.f32 %v2420_v62, %v2419_v30  ;;  %v2375_v0 = vadd.f32 %v2373_v6, %v2349_v15 }
 0x9bd   :  { %v2416_v43 = vadd.f32 %v2415_v60, %v2414_v31  ;;  %v3228_v39 = vpop.eup %3227  ;;  %v2410_v40 = vrot.slane %v2409_v59, 1  ;;  %v2356_v18 = vmul.f32 %v2332_v1, %v1965_v21  ;;  %v2355_v10 = vmul.f32 %v2332_v1, %v1964_v55 }
 0x9be   :  { %v2427_v53 = vrot.slane %v2426_v56, 4  ;;  %v2398_v19 = vmul.f32 %v2376_v7, %v2103_v44  ;;  %v2378_v17 = vmul.f32 %v3226_v36, %v2376_v7  ;;  %v3230_v3 = vpop.eup %3229  ;;  %v2422_v37 = vrot.slane %v2421_v50, 2 }
 0x9bf   :  { %v2417_v22 = vrot.slane %v2416_v43, 1  ;;  %v2397_v32 = vmul.f32 %v2375_v0, %v2102_v51  ;;  %v2377_v13 = vmul.f32 %v3224_v4, %v2375_v0  ;;  %v3232_v15 = vpop.eup %3231  ;;  %v2411_v11 = vadd.f32 %v2410_v40, %v2409_v59 }
 0x9c0   :  { %v2085_v25 = vpop.permute.xlu0 %2084  ;;  %v2081_v33 = vpop.permute.xlu1 %2080  ;;  %v2428_v34 = vadd.f32 %v2427_v53, %v2426_v56  ;;  %v2380_v41 = vadd.f32 %v2378_v17, %v4409_v26  ;;  %v2423_v57 = vadd.f32 %v2422_v37, %v2421_v50  ;;  %v2499_v37 = vadd.f32 1.0, %v4335_v63 }
 0x9c1   :  { %v2433_v58 = vadd.f32 %v2398_v19, %v2397_v32  ;;  %v2379_v23 = vadd.f32 %v2377_v13, %v4412_v20  ;;  %v2418_v49 = vadd.f32 %v2417_v22, %v2416_v43  ;;  %v3234_v8 = vpop.eup %3233  ;;  %v2107_v55 = vsel %vm392_vm7, %v2021_v52, %v2085_v25 }
 0x9c2   :  { %v2429_v2 = vrot.slane %v2428_v34, 2  ;;  %v2400_v38 = vmul.f32 %v2380_v41, %v2105_v9  ;;  %v2382_v29 = vmul.f32 %v3230_v3, %v2380_v41  ;;  %v2424_v24 = vrot.slane %v2423_v57, 1 }
 0x9c3   :  { %v2434_v4 = vrot.slane %v2433_v58, 4  ;;  %v2399_v16 = vmul.f32 %v2379_v23, %v2104_v28  ;;  %v2381_v31 = vmul.f32 %v3228_v39, %v2379_v23  ;;  %v2469_v30 = vsel %vm1235_vm10, %v2418_v49, %v2411_v11 }
 0x9c4   :  { %v2029_v48 = vpop.permute.xlu0 %2028  ;;  %v2025_v45 = vpop.permute.xlu1 %2024  ;;  %v2430_v26 = vadd.f32 %v2429_v2, %v2428_v34  ;;  %v2384_v21 = vadd.f32 %v2382_v29, %v4418_v35  ;;  %v2425_v20 = vadd.f32 %v2424_v24, %v2423_v57  ;;  %v2106_v62 = vsel %vm392_vm7, %v2017_v12, %v2081_v33 }
 0x9c5   :  { %v2435_v44 = vadd.f32 %v2434_v4, %v2433_v58  ;;  %v2440_v27 = vadd.f32 %v2400_v38, %v2399_v16  ;;  %v2383_v47 = vadd.f32 %v2381_v31, %v4421_v14  ;;  %3235 = vrcp.f32 %v2499_v37  ;;  %v2810_v38 = vld [vmem:[%s4528_s8 + $0x1] ss:$0 sm:$0xff] }
 0x9c6   :  { %v2431_v61 = vrot.slane %v2430_v26, 1  ;;  %v2402_v60 = vmul.f32 %v2384_v21, %v2107_v55  ;;  %v2386_v51 = vmul.f32 %v3234_v8, %v2384_v21  ;;  %v2470_v43 = vsel %vm1237_vm11, %v2425_v20, %v2469_v30 }
 0x9c7   :  { %v2436_v56 = vrot.slane %v2435_v44, 2  ;;  %v2441_v7 = vrot.slane %v2440_v27, 4  ;;  %v2401_v9 = vmul.f32 %v2383_v47, %v2106_v62  ;;  %v2385_v36 = vmul.f32 %v3232_v15, %v2383_v47  ;;  %v2820_v15 = vld [vmem:[%s4529_s9 + $0x78] sm:$0xff] }
 0x9c8   :  { %v2093_v59 = vpop.permute.xlu0 %2092  ;;  %v2089_v6 = vpop.permute.xlu1 %2088  ;;  %v2432_v35 = vadd.f32 %v2431_v61, %v2430_v26  ;;  %v2388_v1 = vadd.f32 %v2386_v51, %v2356_v18  ;;  %v2488_v4 = vmul.f32 %v2810_v38, %v4094_v5  ;;  %v4584_v62 = vld [vmem:[#allocation25_spill] sm:$0xff] }
 0x9c9   :  { %v2109_v52 = vsel %vm392_vm7, %v2029_v48, %v2093_v59  ;;  %v2437_v50 = vadd.f32 %v2436_v56, %v2435_v44  ;;  %v2442_v0 = vadd.f32 %v2441_v7, %v2440_v27  ;;  %v2447_v14 = vadd.f32 %v2402_v60, %v2401_v9 }
 0x9ca   :  { %v2108_v28 = vsel %vm392_vm7, %v2025_v45, %v2089_v6  ;;  %v2404_v25 = vmul.f32 %v2388_v1, %v2109_v52  ;;  %v2387_v39 = vadd.f32 %v2385_v36, %v2355_v10  ;;  %v2471_v12 = vsel %vm1239_vm12, %v2432_v35, %v2470_v43  ;;  %v2819_v10 = vld [vmem:[%s4529_s9 + $0x70] sm:$0xff] }
 0x9cb   :  { %v2438_v33 = vrot.slane %v2437_v50, 1  ;;  %v2443_v40 = vrot.slane %v2442_v0, 2  ;;  %v2448_v53 = vrot.slane %v2447_v14, 4  ;;  %v3096_v23 = vpack.c.bf16 %v2820_v15, %v2819_v10 }
 0x9cc   :  { %v2403_v19 = vmul.f32 %v2387_v39, %v2108_v28  ;;  %v2509_v55 = vpop.permute.xlu0 %2508  ;;  %v2489_v44 = vmul.f32 %v2810_v38, %v4096_v42 }
 0x9cd   :  { %v2439_v17 = vadd.f32 %v2438_v33, %v2437_v50  ;;  %v2444_v3 = vadd.f32 %v2443_v40, %v2442_v0  ;;  %v2449_v22 = vadd.f32 %v2448_v53, %v2447_v14  ;;  %3097 = vmatprep.subr.bf16.mxu0 %v3096_v23  ;;  %v2654_v50 = vld [vmem:[%s4532_s12] sm:$0xff]  ;;  %v2655_v0 = vld [vmem:[%s4532_s12 + $0x8] sm:$0xff]  ;;  %v2656_v14 = vld [vmem:[%s4532_s12 + $0x10] sm:$0xff] }
 0x9ce   :  { %v2454_v32 = vadd.f32 %v2404_v25, %v2403_v19  ;;  %3099 = vmatpush3.bf16.msra.mxu0 %v3096_v23  ;;  %v3100_v28 = vpack.c.bf16 %v2655_v0, %v2654_v50  ;;  %v2657_v25 = vld [vmem:[%s4532_s12 + $0x18] sm:$0xff] }
 0x9cf   :  { %v2445_v13 = vrot.slane %v2444_v3, 1  ;;  %v2450_v34 = vrot.slane %v2449_v22, 2  ;;  %v2472_v41 = vsel %vm1241_vm13, %v2439_v17, %v2471_v12  ;;  %v3236_v16 = vpop.eup %3235  ;;  %v3104_v39 = vpack.c.bf16 %v2657_v25, %v2656_v14 }
 0x9d0   :  { %v2455_v18 = vrot.slane %v2454_v32, 4  ;;  %v2505_v21 = vmul.f32 %v3236_v16, %v4074_v46  ;;  %3101 = vmatprep.subr.bf16.mxu1 %v3100_v28 }
 0x9d1   :  { %v2446_v57 = vadd.f32 %v2445_v13, %v2444_v3  ;;  %v2451_v58 = vadd.f32 %v2450_v34, %v2449_v22  ;;  %3103 = vmatpush3.bf16.msra.mxu1 %v3100_v28  ;;  %v2823_v22 = vld [vmem:[#allocation5 + $0x1] ss:$0 sm:$0xff] }
 0x9d2   :  { %v2456_v48 = vadd.f32 %v2455_v18, %v2454_v32  ;;  %3105 = vmatprep.subr.bf16.mxu1 %v3104_v39  ;;  %v2824_v32 = vld [vmem:[#allocation7 + $0x1] ss:$0 sm:$0xff] }
 0x9d3   :  { %v2452_v63 = vrot.slane %v2451_v58, 1  ;;  %v2473_v45 = vsel %vm1243_vm14, %v2446_v57, %v2472_v41  ;;  %v2825_v57 = vld [vmem:[%s4533_s13] ss:$0 sm:$0xff] }
 0x9d4   :  { %v2457_v49 = vrot.slane %v2456_v48, 2 }
 0x9d5   :  { %v2453_v8 = vadd.f32 %v2452_v63, %v2451_v58  ;;  %3107 = vmatpush3.bf16.msra.mxu1 %v3104_v39 }
 0x9d6   :  { %v2458_v11 = vadd.f32 %v2457_v49, %v2456_v48 }
 0x9d7   :  { %v2474_v2 = vsel %vm1245_vm15, %v2453_v8, %v2473_v45 }
 0x9d8   :  { %v2459_v29 = vrot.slane %v2458_v11, 1 }
 0x9da   :  { %v2460_v24 = vadd.f32 %v2459_v29, %v2458_v11 }
 0x9dc   :  { %v2475_v31 = vsel %vm1247_vm1, %v2460_v24, %v2474_v2 }
 0x9dd   :  { %v2490_v26 = vadd.f32 %v2488_v4, %v2475_v31  ;;  %2477 = vrot.lane.b32.xlu1 %v2475_v31, %s3344_s15 }
 0x9df   :  { %v2514_v30 = vmul.f32 %v2509_v55, %v2490_v26 }
 0x9e1   :  { %2510 = vrot.lane.b32.xlu1 %v2505_v21, %s3344_s15  ;;  %2998 = vmatprep.mubr.msk.f32.mxu0 %vm392_vm7, %v2514_v30 }
 0xa4f   :  { %v2478_v20 = vpop.permute.xlu1 %2477 }
 0xa50   :  { %v2491_v27 = vadd.f32 %v2489_v44, %v2478_v20 }
 0xa53   :  { %v2511_v47 = vpop.permute.xlu1 %2510 }
 0xa54   :  { %v2515_v5 = vmul.f32 %v2511_v47, %v2491_v27 }
 0xa56   :  { %2999 = vmatmul.mubr.msk.f32.vlgmr.msra.gmra.mrb[6].mxu0 %vm392_vm7, %v2515_v5 }
 0xb29   :  { %v3000_v59 = vpop.f32.mrb[6].mxu0 }
 0xb2a   :  { %v2607_v61 = vadd.f32 %v3000_v59, %v4040_v54  ;;  %v2597_v60 = vpop.f32.mrb[7].mxu0 }
 0xb2b   :  { %v2606_v51 = vadd.f32 %v2597_v60, %v4584_v62 }
 0xb2c   :  { %v2611_v46 = vsel %vm109_vm0, %v2607_v61, 0.0 }
 0xb2d   :  { %2612 = vadd.xlane.f32.xlu1 %v2611_v46  ;;  %v2608_v6 = vsel %vm109_vm0, %v2606_v51, 0.0 }
 0xb2e   :  { %2609 = vadd.xlane.f32.xlu0 %v2608_v6 }
 0xbba   :  { %v2613_v56 = vpop.xlane.xlu1 %2612 }
 0xbbb   :  { %v2615_v7 = vmul.f32 0.03125, %v2613_v56  ;;  %v2610_v42 = vpop.xlane.xlu0 %2609 }
 0xbbc   :  { %v2614_v9 = vmul.f32 0.03125, %v2610_v42 }
 0xbbd   :  { %v2617_v52 = vsub.f32 %v2607_v61, %v2615_v7 }
 0xbbe   :  { %v2616_v35 = vsub.f32 %v2606_v51, %v2614_v9 }
 0xbbf   :  { %v2619_v43 = vmul.f32 %v2617_v52, %v2617_v52 }
 0xbc0   :  { %v2618_v1 = vmul.f32 %v2616_v35, %v2616_v35 }
 0xbc1   :  { %v2623_v54 = vsel %vm109_vm0, %v2619_v43, 0.0 }
 0xbc2   :  { %v2620_v36 = vsel %vm109_vm0, %v2618_v1, 0.0 }
 0xbc3   :  { %2621 = vadd.xlane.f32.xlu0 %v2620_v36 }
 0xbc7   :  { %2624 = vadd.xlane.f32.xlu0 %v2623_v54 }
 0xc50   :  { %v2622_v12 = vpop.xlane.xlu0 %2621 }
 0xc51   :  { %v2626_v33 = vmul.f32 0.03125, %v2622_v12 }
 0xc53   :  { %v2628_v40 = vadd.f32 1e-05, %v2626_v33 }
 0xc54   :  { %v2625_v53 = vpop.xlane.xlu0 %2624 }
 0xc55   :  { %3237 = vrsqrt.f32 %v2628_v40  ;;  %v2627_v19 = vmul.f32 0.03125, %v2625_v53 }
 0xc57   :  { %v2629_v17 = vadd.f32 1e-05, %v2627_v19 }
 0xc59   :  { %3239 = vrsqrt.f32 %v2629_v17 }
 0xc5f   :  { %v3238_v3 = vpop.eup %3237 }
 0xc60   :  { %v2632_v37 = vmul.f32 %v3238_v3, %v2616_v35 }
 0xc62   :  { %v2642_v13 = vmul.f32 %v2823_v22, %v2632_v37 }
 0xc63   :  { %v3240_v34 = vpop.eup %3239 }
 0xc64   :  { %v2633_v41 = vmul.f32 %v3240_v34, %v2617_v52  ;;  %v2652_v18 = vadd.f32 %v2824_v32, %v2642_v13 }
 0xc66   :  { %v2643_v10 = vmul.f32 %v2823_v22, %v2633_v41  ;;  %3009 = vmatprep.mubr.msk.f32.mxu1 %vm109_vm0, %v2652_v18 }
 0xc68   :  { %v2653_v15 = vadd.f32 %v2824_v32, %v2643_v10 }
 0xc6a   :  { %3010 = vmatmul.mubr.msk.f32.vlgmr.msra.gmra.mrb[6].mxu1 %vm109_vm0, %v2653_v15 }
 0xd3d   :  { %v3011_v58 = vpop.f32.mrb[6].mxu1 }
 0xd3e   :  { %v2743_v23 = vadd.f32 %v3011_v58, %v2825_v57  ;;  %v2737_v48 = vpop.f32.mrb[7].mxu1 }
 0xd3f   :  { %v2738_v63 = vadd.f32 %v2825_v57, %v2737_v48 }
 0xd40   :  { %2748 = vst.msk [vmem:[#allocation8 + $0x8] sm:$0xff] %vm2746_vm4, %v2743_v23 }
 0xd41   :  { %2747 = vst.msk [vmem:[#allocation8] sm:$0xff] %vm2746_vm4, %v2738_v63 }
 0xd42   :  { %3318 = shalt.err (!%p3315_p0)
}
 0xd43   :  { %s3319_s13 = scalar_lea.hbm %s4534_s14, 256 }
 0xd44   :  { %p3320_p1 = scmp.ne.s32.totalorder %s4534_s14, %s3319_s13  ;;  %p3323_p2 = scmp.lt.u32.totalorder %s3319_s13, %s4534_s14 }
 0xd46   :  { %p3325_p3 = pnand %p3323_p2, %p3320_p1 }
 0xd48   :  { %3328 = shalt.err (!%p3325_p3)
}
 0xd49   :  { %2760 = dma.vmem_to_hbm [thread:$0]  %s2755_s20, 256, %s4534_s14, [#allocation4], %s3339_s10, %s3339_s10, %s3340_s30  }
 0xd4a   :  { %3333 = dma.done.wait [#allocation4], 256  }
 0xd4b   :  { %3334 = vsyncadd [#allocation4], 4294967040 }
 0xd4c   :  { %2764 = vsyncpa [#allocation3], 1 }
 0xd4d   :  { %2765 = vsyncpa [#allocation6], 1 }
 0xd4e   :  { %2766 = vsyncpa [#allocation4], 1 }

</bundles_post_ra>
